<compile_context>
chip_gen: v7x
topology: tpu7x:2x2x1
jax: 0.10.0
libtpu: 0.0.40
codegen_flags: <defaults>
</compile_context>

<pallas_src>
import functools

import jax
import jax.numpy as jnp
import numpy as np
from jax import lax
from jax.experimental import pallas as pl
from jax.experimental.pallas import tpu as pltpu


# ----------------------------- helpers -----------------------------
def _round_up(x, m):
    return (x + m - 1) // m * m


def _largest_divisor(n, limit, multiple_of=1):
    best = 1
    for c in range(1, min(n, limit) + 1):
        if n % c == 0 and c % multiple_of == 0:
            best = c
    return best


_GATE_ORDER = [0, 1, 3, 2]   # PyTorch [i, f, g, o] -> kernel [i, f, o, g]


def pack_params(params, Hp):
    """Reorder gates so sigmoid applies to one contiguous 3H slab, fold b_ih+b_hh,
    pad hidden to Hp (lane-aligned), pre-transpose for x @ W^T / h @ W^T, stack the
    per-layer weights, and cast the matmul operands to bf16 (MXU-native)."""
    lstm = params["lstm"]
    L = len(lstm)
    H = lstm[0][1].shape[1]

    def reorder_pad(w, d_pad):
        # w: (4H, Din) PyTorch layout -> (Din_pad, 4Hp), gate-reordered, transposed.
        blk = w.reshape(4, H, w.shape[1])[_GATE_ORDER, :, :]
        blk = jnp.pad(blk, ((0, 0), (0, Hp - H), (0, d_pad - w.shape[1])))
        return blk.reshape(4 * Hp, d_pad).T

    wih_list, whh_list, b_list = [], [], []
    for li, (w_ih, w_hh, b_ih, b_hh) in enumerate(lstm):
        d_pad = w_ih.shape[1] if li == 0 else Hp        # layers > 0 consume padded h
        wih_list.append(reorder_pad(w_ih, d_pad).astype(jnp.bfloat16))
        whh_list.append(reorder_pad(w_hh, Hp).astype(jnp.bfloat16))
        bias = (b_ih + b_hh).reshape(4, H)[_GATE_ORDER, :]
        bias = jnp.pad(bias, ((0, 0), (0, Hp - H))).reshape(1, 4 * Hp)
        b_list.append(bias)
        # Padded gate columns have exactly-zero weights & bias (zero survives the
        # bf16 cast) -> padded h/c lanes stay exactly 0 through the recurrence.

    wih0 = wih_list[0]                                                # (D, 4Hp) bf16
    if L > 1:
        wih_rest = jnp.stack(wih_list[1:], axis=0)                    # (L-1, Hp, 4Hp)
    else:
        wih_rest = jnp.zeros((1, Hp, 4 * Hp), jnp.bfloat16)           # unused dummy
    whh = jnp.stack(whh_list, axis=0)                                 # (L, Hp, 4Hp)
    bias = jnp.stack(b_list, axis=0)                                  # (L, 1, 4Hp) f32
    return wih0, wih_rest, whh, bias


# ----------------------------- fused multi-layer LSTM kernel -----------------------------
def fused_lstm_kernel(x_ref, wih0_ref, wihr_ref, whh_ref, b_ref, h0_ref, c0_ref,
                      y_ref, hT_ref, cT_ref,
                      h_scr, c_scr, g_scr, ybuf,
                      *, hidden, t_chunk, num_layers, seq_len, has_tail, unroll):
    """One (batch-block, time-chunk) grid step of the whole stacked LSTM.
    Gate layout: [i | f | o | g], each `hidden` (multiple of 128) lanes wide."""
    ti = pl.program_id(1)

    @pl.when(ti == 0)
    def _():
        h_scr[...] = h0_ref[...]
        c_scr[...] = c0_ref[...]

    bb = x_ref.shape[1]
    d_in = x_ref.shape[2]

    for l in range(num_layers):
        # ---- hoisted chunk-level input projection: ONE MXU matmul per layer/chunk ----
        # (bb multiple of 8, hidden multiple of 128 -> reshapes are layout-free.)
        if l == 0:
            lhs = x_ref[...].astype(jnp.bfloat16).reshape(t_chunk * bb, d_in)
            w_in = wih0_ref[...]
        else:
            lhs = ybuf[...].reshape(t_chunk * bb, hidden)             # bf16 inter-layer y
            w_in = wihr_ref[l - 1]
        proj = jnp.dot(lhs, w_in, preferred_element_type=jnp.float32) + b_ref[l]
        g_scr[...] = proj.astype(jnp.bfloat16).reshape(t_chunk, bb, 4 * hidden)

        whh_l = whh_ref[l]                                            # (Hp, 4Hp) bf16
        last_layer = (l == num_layers - 1)

        def step(j, carry, _whh=whh_l, _last=last_layer):
            h, c = carry                                              # f32 carries
            gates = g_scr[j].astype(jnp.float32) + jnp.dot(
                h.astype(jnp.bfloat16), _whh, preferred_element_type=jnp.float32)
            sig = jax.nn.sigmoid(gates[:, :3 * hidden])   # [i|f|o] one contiguous slab
            i_g = sig[:, 0 * hidden:1 * hidden]
            f_g = sig[:, 1 * hidden:2 * hidden]
            o_g = sig[:, 2 * hidden:3 * hidden]
            g_g = jnp.tanh(gates[:, 3 * hidden:])
            c_new = f_g * c + i_g * g_g
            h_new = o_g * jnp.tanh(c_new)
            if has_tail:                                  # freeze state on padded steps
                valid = (ti * t_chunk + j) < seq_len
                c_new = jnp.where(valid, c_new, c)
                h_new = jnp.where(valid, h_new, h)
            if _last:
                y_ref[j] = h_new                          # only last layer hits HBM
            else:
                ybuf[j] = h_new.astype(jnp.bfloat16)      # inter-layer y stays in VMEM
            return h_new, c_new

        h_fin, c_fin = lax.fori_loop(0, t_chunk, step, (h_scr[l], c_scr[l]),
                                     unroll=unroll)
        h_scr[l] = h_fin
        c_scr[l] = c_fin

    # Final state: store only on the last time chunk.
    @pl.when(ti == pl.num_programs(1) - 1)
    def _():
        hT_ref[...] = h_scr[...]
        cT_ref[...] = c_scr[...]


# ------------------------------ Full module fwd --------------------------------
def vestim_lstm_forward(params, x, h_s, h_c):
    """x: (B, T, input_size); h_s, h_c: (layers, B, hidden).
    Returns (y, (h_s, h_c)) with y: (B, T, 1) — matches VEstimLSTM.forward."""
    B, T, D = x.shape
    L, _, H = h_s.shape

    Hp = _round_up(H, 128)                              # lane-align hidden / gates
    Bp = _round_up(B, 8)                                # sublane-align batch
    # Feed the MXU as many rows as possible per serial step (up to 256 = v6e/v7x rows);
    # never shrink bb below 8 just to create parallel grid blocks.
    bb = _largest_divisor(Bp, 256, multiple_of=8)

    # ---- generation-aware VMEM budget -> time-chunk size ----
    try:
        vmem_cap = int(pltpu.get_tpu_info().vmem_capacity_bytes)
    except Exception:
        vmem_cap = 64 * 1024 * 1024                     # conservative fallback
    if vmem_cap <= 64 * 1024 * 1024:                    # v7x: 64 MiB, leave headroom
        usable = 56 * 1024 * 1024
    else:                                               # v5e / v6e: 128 MiB
        usable = 100 * 1024 * 1024

    f32b, bf16b = 4, 2
    fixed = (D * 4 * Hp * bf16b                         # W_ih layer 0   (Buffered(1))
             + max(L - 1, 1) * Hp * 4 * Hp * bf16b      # W_ih layers>0  (Buffered(1))
             + L * Hp * 4 * Hp * bf16b                  # W_hh           (Buffered(1))
             + L * 4 * Hp * f32b                        # bias           (Buffered(1))
             + 2 * 2 * L * bb * Hp * f32b               # h0, c0 (double-buffered)
             + 2 * 2 * L * bb * Hp * f32b               # hT, cT outputs
             + 2 * L * bb * Hp * f32b)                  # h/c carry scratch
    per_t = (2 * bb * D * f32b                          # x chunk (double-buffered)
             + 2 * bb * Hp * f32b                       # y chunk (double-buffered)
             + bb * 4 * Hp * bf16b                      # gate scratch (bf16)
             + bb * Hp * bf16b)                         # inter-layer y scratch (bf16)
    t_budget = (usable - fixed) // per_t
    t_chunk = int(max(1, min(T, t_budget, 64)))
    if t_chunk > 8:
        t_chunk = (t_chunk // 8) * 8                    # keep unroll factor dividing
    unroll = min(t_chunk, 8)                            # partial unroll (vreg pressure)
    T_pad = _round_up(T, t_chunk)                       # pad awkward / prime T
    has_tail = T_pad != T

    wih0, wih_rest, whh, bias = pack_params(params, Hp)

    x_tm = jnp.transpose(x, (1, 0, 2))                                  # (T, B, D)
    x_tm = jnp.pad(x_tm, ((0, T_pad - T), (0, Bp - B), (0, 0)))
    h0 = jnp.pad(h_s, ((0, 0), (0, Bp - B), (0, Hp - H)))
    c0 = jnp.pad(h_c, ((0, 0), (0, Bp - B), (0, Hp - H)))

    kern = functools.partial(fused_lstm_kernel, hidden=Hp, t_chunk=t_chunk,
                             num_layers=L, seq_len=T, has_tail=has_tail,
                             unroll=unroll)
    inv = pl.Buffered(1)        # loop-invariant operands: no double-buffer allocation
    Lr = max(L - 1, 1)

    y_tm, hT, cT = pl.pallas_call(
        kern,
        out_shape=(
            jax.ShapeDtypeStruct((T_pad, Bp, Hp), jnp.float32),
            jax.ShapeDtypeStruct((L, Bp, Hp), jnp.float32),
            jax.ShapeDtypeStruct((L, Bp, Hp), jnp.float32),
        ),
        grid_spec=pltpu.PrefetchScalarGridSpec(
            num_scalar_prefetch=0,
            grid=(Bp // bb, T_pad // t_chunk),
            in_specs=[
                pl.BlockSpec((t_chunk, bb, D), lambda bi, ti: (ti, bi, 0)),    # x chunk
                pl.BlockSpec((D, 4 * Hp), lambda bi, ti: (0, 0),
                             pipeline_mode=inv),                               # W_ih^T l0
                pl.BlockSpec((Lr, Hp, 4 * Hp), lambda bi, ti: (0, 0, 0),
                             pipeline_mode=inv),                               # W_ih^T l>0
                pl.BlockSpec((L, Hp, 4 * Hp), lambda bi, ti: (0, 0, 0),
                             pipeline_mode=inv),                               # W_hh^T
                pl.BlockSpec((L, 1, 4 * Hp), lambda bi, ti: (0, 0, 0),
                             pipeline_mode=inv),                               # bias
                pl.BlockSpec((L, bb, Hp), lambda bi, ti: (0, bi, 0)),          # h0
                pl.BlockSpec((L, bb, Hp), lambda bi, ti: (0, bi, 0)),          # c0
            ],
            out_specs=[
                pl.BlockSpec((t_chunk, bb, Hp), lambda bi, ti: (ti, bi, 0)),   # y (last layer)
                pl.BlockSpec((L, bb, Hp), lambda bi, ti: (0, bi, 0)),          # h_T
                pl.BlockSpec((L, bb, Hp), lambda bi, ti: (0, bi, 0)),          # c_T
            ],
            scratch_shapes=[
                pltpu.VMEM((L, bb, Hp), jnp.float32),                 # h carries (f32)
                pltpu.VMEM((L, bb, Hp), jnp.float32),                 # c carries (f32)
                pltpu.VMEM((t_chunk, bb, 4 * Hp), jnp.bfloat16),      # chunk gates (bf16)
                pltpu.VMEM((t_chunk, bb, Hp), jnp.bfloat16),          # inter-layer y (bf16)
            ],
        ),
        compiler_params=pltpu.CompilerParams(
            # batch blocks independent -> "parallel" (v7x 2nd core when >= 2 blocks);
            # time is a serial recurrence -> "arbitrary".
            dimension_semantics=("parallel", "arbitrary"),
            vmem_limit_bytes=int(usable),
        ),
    )(x_tm, wih0, wih_rest, whh, bias, h0, c0)

    # Final Linear(H, 1): output lane-dim of 1 is the worst-case masked-store pattern
    # for a Pallas kernel and XLA fuses it trivially -> plain jnp.
    w_lin, b_lin = params["linear"]                     # (1, H), (1,)
    y_valid = y_tm[:T, :B, :H]                          # strip time/batch/hidden padding
    out = jnp.tensordot(y_valid, w_lin[0], axes=[[2], [0]])[..., None] + b_lin[0]
    out = jnp.transpose(out, (1, 0, 2))                 # (B, T, 1)

    h_out = hT[:, :B, :H]
    c_out = cT[:, :B, :H]
    return out, (h_out, c_out)


# --------------------------- Pure-JAX reference (check) ------------------------
def reference_forward(params, x, h_s, h_c):
    """Emulates PyTorch nn.LSTM (gate order [i,f,g,o]) + Linear directly, in f32."""
    B, T, _ = x.shape
    layers, _, H = h_s.shape
    cur = x
    hs_out, cs_out = [], []
    for l in range(layers):
        w_ih, w_hh, b_ih, b_hh = params["lstm"][l]
        b = b_ih + b_hh

        def step(carry, xt):
            h, c = carry
            g = xt @ w_ih.T + h @ w_hh.T + b
            i = jax.nn.sigmoid(g[:, 0 * H:1 * H])
            f = jax.nn.sigmoid(g[:, 1 * H:2 * H])
            gg = jnp.tanh(g[:, 2 * H:3 * H])
            o = jax.nn.sigmoid(g[:, 3 * H:4 * H])
            c_new = f * c + i * gg
            h_new = o * jnp.tanh(c_new)
            return (h_new, c_new), h_new

        (hT, cT), ys = lax.scan(step, (h_s[l], h_c[l]),
                                jnp.transpose(cur, (1, 0, 2)))
        cur = jnp.transpose(ys, (1, 0, 2))
        hs_out.append(hT)
        cs_out.append(cT)
    w_lin, b_lin = params["linear"]
    y = cur @ w_lin.T + b_lin
    return y, (jnp.stack(hs_out), jnp.stack(cs_out))


# --------------------------------- Param init ----------------------------------
def init_params(key, input_size, hidden, layers):
    """Raw PyTorch-layout parameters: W_ih (4H, Din), W_hh (4H, H), b_ih, b_hh."""
    scale = 1.0 / np.sqrt(hidden)
    lstm = []
    for l in range(layers):
        d_in = input_size if l == 0 else hidden
        key, k1, k2, k3, k4 = jax.random.split(key, 5)
        w_ih = jax.random.uniform(k1, (4 * hidden, d_in), jnp.float32, -scale, scale)
        w_hh = jax.random.uniform(k2, (4 * hidden, hidden), jnp.float32, -scale, scale)
        b_ih = jax.random.uniform(k3, (4 * hidden,), jnp.float32, -scale, scale)
        b_hh = jax.random.uniform(k4, (4 * hidden,), jnp.float32, -scale, scale)
        lstm.append((w_ih, w_hh, b_ih, b_hh))
    key, k5, k6 = jax.random.split(key, 3)
    w_lin = jax.random.uniform(k5, (1, hidden), jnp.float32, -scale, scale)
    b_lin = jax.random.uniform(k6, (1,), jnp.float32, -scale, scale)
    return {"lstm": lstm, "linear": (w_lin, b_lin)}


if __name__ == "__main__":
    B, T, INPUT, HIDDEN, LAYERS = 2, 8, 4, 32, 2

    key = jax.random.PRNGKey(0)
    key, kx, kh, kc, kp = jax.random.split(key, 5)
    x = jax.random.normal(kx, (B, T, INPUT), jnp.float32)
    h_s = jax.random.normal(kh, (LAYERS, B, HIDDEN), jnp.float32)
    h_c = jax.random.normal(kc, (LAYERS, B, HIDDEN), jnp.float32)
    params = init_params(kp, INPUT, HIDDEN, LAYERS)

    fwd = jax.jit(vestim_lstm_forward)
    y, (h_out, c_out) = fwd(params, x, h_s, h_c)
    jax.block_until_ready((y, h_out, c_out))

    y_ref, (h_ref, c_ref) = reference_forward(params, x, h_s, h_c)
    assert y.shape == (B, T, 1)
    assert h_out.shape == (LAYERS, B, HIDDEN) and c_out.shape == (LAYERS, B, HIDDEN)
    # bf16 MXU operands + bf16 gate/inter-layer buffers vs. f32 reference -> relaxed tol.
    np.testing.assert_allclose(np.asarray(y), np.asarray(y_ref), atol=3e-2, rtol=3e-2)
    np.testing.assert_allclose(np.asarray(h_out), np.asarray(h_ref), atol=3e-2, rtol=3e-2)
    np.testing.assert_allclose(np.asarray(c_out), np.asarray(c_ref), atol=3e-2, rtol=3e-2)

    print("KERNEL_OK")
</pallas_src>

<mosaic_0001>
module attributes {stable_mosaic.version = 11 : i64} {
  func.func @fused_lstm_kernel(%arg0: i32, %arg1: i32, %arg2: memref<8x8x4xf32, #tpu.memory_space<vmem>>, %arg3: memref<4x512xbf16, #tpu.memory_space<vmem>>, %arg4: memref<1x128x512xbf16, #tpu.memory_space<vmem>>, %arg5: memref<2x128x512xbf16, #tpu.memory_space<vmem>>, %arg6: memref<2x1x512xf32, #tpu.memory_space<vmem>>, %arg7: memref<2x8x128xf32, #tpu.memory_space<vmem>>, %arg8: memref<2x8x128xf32, #tpu.memory_space<vmem>>, %arg9: memref<8x8x128xf32, #tpu.memory_space<vmem>>, %arg10: memref<2x8x128xf32, #tpu.memory_space<vmem>>, %arg11: memref<2x8x128xf32, #tpu.memory_space<vmem>>, %arg12: memref<2x8x128xf32, #tpu.memory_space<vmem>>, %arg13: memref<2x8x128xf32, #tpu.memory_space<vmem>>, %arg14: memref<8x8x512xbf16, #tpu.memory_space<vmem>>, %arg15: memref<8x8x128xbf16, #tpu.memory_space<vmem>>) attributes {dimension_semantics = [#tpu.dimension_semantics<parallel>, #tpu.dimension_semantics<arbitrary>], iteration_bounds = array<i64: 1, 1>, scalar_prefetch = 0 : i64, scratch_operands = 4 : i64, tpu.core_type = #tpu.core_type<tc>, window_params = [{transform_indices = @transform_0, window_bounds = array<i64: 8, 8, 4>}, {pipeline_mode = #tpu.pipeline_mode<synchronous>, transform_indices = @transform_1, window_bounds = array<i64: 4, 512>}, {pipeline_mode = #tpu.pipeline_mode<synchronous>, transform_indices = @transform_2, window_bounds = array<i64: 1, 128, 512>}, {pipeline_mode = #tpu.pipeline_mode<synchronous>, transform_indices = @transform_3, window_bounds = array<i64: 2, 128, 512>}, {pipeline_mode = #tpu.pipeline_mode<synchronous>, transform_indices = @transform_4, window_bounds = array<i64: 2, 1, 512>}, {transform_indices = @transform_5, window_bounds = array<i64: 2, 8, 128>}, {transform_indices = @transform_6, window_bounds = array<i64: 2, 8, 128>}, {transform_indices = @transform_7, window_bounds = array<i64: 8, 8, 128>}, {transform_indices = @transform_8, window_bounds = array<i64: 2, 8, 128>}, {transform_indices = @transform_9, window_bounds = array<i64: 2, 8, 128>}]} {
    %c0_i32 = arith.constant 0 : i32
    %0 = arith.cmpi eq, %arg1, %c0_i32 : i32
    %1 = arith.extui %0 : i1 to i32
    %c0_i32_0 = arith.constant 0 : i32
    %2 = arith.cmpi ne, %1, %c0_i32_0 : i32
    scf.if %2 {
      %c0_161 = arith.constant 0 : index
      %c0_162 = arith.constant 0 : index
      %c0_163 = arith.constant 0 : index
      %494 = vector.load %arg7[%c0_161, %c0_162, %c0_163] : memref<2x8x128xf32, #tpu.memory_space<vmem>>, vector<2x8x128xf32>
      %c0_164 = arith.constant 0 : index
      %c0_165 = arith.constant 0 : index
      %c0_166 = arith.constant 0 : index
      %495 = vector.load %arg12[%c0_164, %c0_165, %c0_166] : memref<2x8x128xf32, #tpu.memory_space<vmem>>, vector<2x8x128xf32>
      tpu.vector_store %arg12[%c0_164, %c0_165, %c0_166], %494 {strides = array<i32>} : memref<2x8x128xf32, #tpu.memory_space<vmem>>, vector<2x8x128xf32>,
      %c0_167 = arith.constant 0 : index
      %c0_168 = arith.constant 0 : index
      %c0_169 = arith.constant 0 : index
      %496 = vector.load %arg8[%c0_167, %c0_168, %c0_169] : memref<2x8x128xf32, #tpu.memory_space<vmem>>, vector<2x8x128xf32>
      %c0_170 = arith.constant 0 : index
      %c0_171 = arith.constant 0 : index
      %c0_172 = arith.constant 0 : index
      %497 = vector.load %arg13[%c0_170, %c0_171, %c0_172] : memref<2x8x128xf32, #tpu.memory_space<vmem>>, vector<2x8x128xf32>
      tpu.vector_store %arg13[%c0_170, %c0_171, %c0_172], %496 {strides = array<i32>} : memref<2x8x128xf32, #tpu.memory_space<vmem>>, vector<2x8x128xf32>,
    } else {
    }
    %c0 = arith.constant 0 : index
    %c0_1 = arith.constant 0 : index
    %c0_2 = arith.constant 0 : index
    %3 = vector.load %arg2[%c0, %c0_1, %c0_2] : memref<8x8x4xf32, #tpu.memory_space<vmem>>, vector<8x8x4xf32>
    %4 = arith.truncf %3 : vector<8x8x4xf32> to vector<8x8x4xbf16>
    %5 = vector.shape_cast %4 : vector<8x8x4xbf16> to vector<64x4xbf16>
    %c0_3 = arith.constant 0 : index
    %c0_4 = arith.constant 0 : index
    %6 = vector.load %arg3[%c0_3, %c0_4] : memref<4x512xbf16, #tpu.memory_space<vmem>>, vector<4x512xbf16>
    %cst = arith.constant dense<0.000000e+00> : vector<64x512xf32>
    %7 = tpu.matmul %5, %6, %cst {dimension_numbers = #tpu.dot_dimension_numbers<[1], [0], [0], [1], [0, 0, 1, 1], [], []>} : vector<64x4xbf16>, vector<4x512xbf16>, vector<64x512xf32> -> vector<64x512xf32>
    %c0_5 = arith.constant 0 : index
    %c0_6 = arith.constant 0 : index
    %c0_7 = arith.constant 0 : index
    %8 = vector.load %arg6[%c0_5, %c0_6, %c0_7] : memref<2x1x512xf32, #tpu.memory_space<vmem>>, vector<1x1x512xf32>
    %9 = vector.shape_cast %8 : vector<1x1x512xf32> to vector<1x512xf32>
    %10 = vector.broadcast %9 : vector<1x512xf32> to vector<64x512xf32>
    %11 = arith.addf %7, %10 : vector<64x512xf32>
    %12 = arith.truncf %11 : vector<64x512xf32> to vector<64x512xbf16>
    %13 = vector.shape_cast %12 : vector<64x512xbf16> to vector<8x8x512xbf16>
    %c0_8 = arith.constant 0 : index
    %c0_9 = arith.constant 0 : index
    %c0_10 = arith.constant 0 : index
    %14 = vector.load %arg14[%c0_8, %c0_9, %c0_10] : memref<8x8x512xbf16, #tpu.memory_space<vmem>>, vector<8x8x512xbf16>
    tpu.vector_store %arg14[%c0_8, %c0_9, %c0_10], %13 {strides = array<i32>} : memref<8x8x512xbf16, #tpu.memory_space<vmem>>, vector<8x8x512xbf16>,
    %c0_11 = arith.constant 0 : index
    %c0_12 = arith.constant 0 : index
    %c0_13 = arith.constant 0 : index
    %15 = vector.load %arg5[%c0_11, %c0_12, %c0_13] : memref<2x128x512xbf16, #tpu.memory_space<vmem>>, vector<1x128x512xbf16>
    %16 = vector.shape_cast %15 : vector<1x128x512xbf16> to vector<128x512xbf16>
    %c0_14 = arith.constant 0 : index
    %c0_15 = arith.constant 0 : index
    %c0_16 = arith.constant 0 : index
    %17 = vector.load %arg12[%c0_14, %c0_15, %c0_16] : memref<2x8x128xf32, #tpu.memory_space<vmem>>, vector<1x8x128xf32>
    %18 = vector.shape_cast %17 : vector<1x8x128xf32> to vector<8x128xf32>
    %c0_17 = arith.constant 0 : index
    %c0_18 = arith.constant 0 : index
    %c0_19 = arith.constant 0 : index
    %19 = vector.load %arg13[%c0_17, %c0_18, %c0_19] : memref<2x8x128xf32, #tpu.memory_space<vmem>>, vector<1x8x128xf32>
    %20 = vector.shape_cast %19 : vector<1x8x128xf32> to vector<8x128xf32>
    %c0_i32_20 = arith.constant 0 : i32
    %21 = arith.index_cast %c0_i32_20 : i32 to index
    %c0_21 = arith.constant 0 : index
    %c0_22 = arith.constant 0 : index
    %22 = vector.load %arg14[%21, %c0_21, %c0_22] : memref<8x8x512xbf16, #tpu.memory_space<vmem>>, vector<1x8x512xbf16>
    %23 = vector.shape_cast %22 : vector<1x8x512xbf16> to vector<8x512xbf16>
    %24 = arith.extf %23 : vector<8x512xbf16> to vector<8x512xf32>
    %25 = arith.truncf %18 : vector<8x128xf32> to vector<8x128xbf16>
    %cst_23 = arith.constant dense<0.000000e+00> : vector<8x512xf32>
    %26 = tpu.matmul %25, %16, %cst_23 {dimension_numbers = #tpu.dot_dimension_numbers<[1], [0], [0], [1], [0, 0, 1, 1], [], []>} : vector<8x128xbf16>, vector<128x512xbf16>, vector<8x512xf32> -> vector<8x512xf32>
    %27 = arith.addf %24, %26 : vector<8x512xf32>
    %28 = vector.extract_strided_slice %27 {offsets = [0, 0], sizes = [8, 384], strides = [1, 1]} : vector<8x512xf32> to vector<8x384xf32>
    %29 = arith.negf %28 : vector<8x384xf32>
    %30 = math.exp %29 : vector<8x384xf32>
    %cst_24 = arith.constant 1.000000e+00 : f32
    %31 = vector.broadcast %cst_24 : f32 to vector<8x384xf32>
    %32 = arith.addf %31, %30 : vector<8x384xf32>
    %33 = arith.divf %31, %32 : vector<8x384xf32>
    %34 = vector.extract_strided_slice %33 {offsets = [0, 0], sizes = [8, 128], strides = [1, 1]} : vector<8x384xf32> to vector<8x128xf32>
    %35 = vector.extract_strided_slice %33 {offsets = [0, 128], sizes = [8, 128], strides = [1, 1]} : vector<8x384xf32> to vector<8x128xf32>
    %36 = vector.extract_strided_slice %33 {offsets = [0, 256], sizes = [8, 128], strides = [1, 1]} : vector<8x384xf32> to vector<8x128xf32>
    %37 = vector.extract_strided_slice %27 {offsets = [0, 384], sizes = [8, 128], strides = [1, 1]} : vector<8x512xf32> to vector<8x128xf32>
    %38 = math.tanh %37 : vector<8x128xf32>
    %39 = arith.mulf %35, %20 : vector<8x128xf32>
    %40 = arith.mulf %34, %38 : vector<8x128xf32>
    %41 = arith.addf %39, %40 : vector<8x128xf32>
    %42 = math.tanh %41 : vector<8x128xf32>
    %43 = arith.mulf %36, %42 : vector<8x128xf32>
    %44 = arith.truncf %43 : vector<8x128xf32> to vector<8x128xbf16>
    %45 = arith.index_cast %c0_i32_20 : i32 to index
    %c0_25 = arith.constant 0 : index
    %c0_26 = arith.constant 0 : index
    %46 = vector.load %arg15[%45, %c0_25, %c0_26] : memref<8x8x128xbf16, #tpu.memory_space<vmem>>, vector<1x8x128xbf16>
    %47 = vector.shape_cast %46 : vector<1x8x128xbf16> to vector<8x128xbf16>
    %48 = vector.shape_cast %44 : vector<8x128xbf16> to vector<1x8x128xbf16>
    tpu.vector_store %arg15[%45, %c0_25, %c0_26], %48 {strides = array<i32>} : memref<8x8x128xbf16, #tpu.memory_space<vmem>>, vector<1x8x128xbf16>,
    %c1_i32 = arith.constant 1 : i32
    %49 = arith.index_cast %c1_i32 : i32 to index
    %c0_27 = arith.constant 0 : index
    %c0_28 = arith.constant 0 : index
    %50 = vector.load %arg14[%49, %c0_27, %c0_28] : memref<8x8x512xbf16, #tpu.memory_space<vmem>>, vector<1x8x512xbf16>
    %51 = vector.shape_cast %50 : vector<1x8x512xbf16> to vector<8x512xbf16>
    %52 = arith.extf %51 : vector<8x512xbf16> to vector<8x512xf32>
    %53 = arith.truncf %43 : vector<8x128xf32> to vector<8x128xbf16>
    %cst_29 = arith.constant dense<0.000000e+00> : vector<8x512xf32>
    %54 = tpu.matmul %53, %16, %cst_29 {dimension_numbers = #tpu.dot_dimension_numbers<[1], [0], [0], [1], [0, 0, 1, 1], [], []>} : vector<8x128xbf16>, vector<128x512xbf16>, vector<8x512xf32> -> vector<8x512xf32>
    %55 = arith.addf %52, %54 : vector<8x512xf32>
    %56 = vector.extract_strided_slice %55 {offsets = [0, 0], sizes = [8, 384], strides = [1, 1]} : vector<8x512xf32> to vector<8x384xf32>
    %57 = arith.negf %56 : vector<8x384xf32>
    %58 = math.exp %57 : vector<8x384xf32>
    %cst_30 = arith.constant 1.000000e+00 : f32
    %59 = vector.broadcast %cst_30 : f32 to vector<8x384xf32>
    %60 = arith.addf %59, %58 : vector<8x384xf32>
    %61 = arith.divf %59, %60 : vector<8x384xf32>
    %62 = vector.extract_strided_slice %61 {offsets = [0, 0], sizes = [8, 128], strides = [1, 1]} : vector<8x384xf32> to vector<8x128xf32>
    %63 = vector.extract_strided_slice %61 {offsets = [0, 128], sizes = [8, 128], strides = [1, 1]} : vector<8x384xf32> to vector<8x128xf32>
    %64 = vector.extract_strided_slice %61 {offsets = [0, 256], sizes = [8, 128], strides = [1, 1]} : vector<8x384xf32> to vector<8x128xf32>
    %65 = vector.extract_strided_slice %55 {offsets = [0, 384], sizes = [8, 128], strides = [1, 1]} : vector<8x512xf32> to vector<8x128xf32>
    %66 = math.tanh %65 : vector<8x128xf32>
    %67 = arith.mulf %63, %41 : vector<8x128xf32>
    %68 = arith.mulf %62, %66 : vector<8x128xf32>
    %69 = arith.addf %67, %68 : vector<8x128xf32>
    %70 = math.tanh %69 : vector<8x128xf32>
    %71 = arith.mulf %64, %70 : vector<8x128xf32>
    %72 = arith.truncf %71 : vector<8x128xf32> to vector<8x128xbf16>
    %73 = arith.index_cast %c1_i32 : i32 to index
    %c0_31 = arith.constant 0 : index
    %c0_32 = arith.constant 0 : index
    %74 = vector.load %arg15[%73, %c0_31, %c0_32] : memref<8x8x128xbf16, #tpu.memory_space<vmem>>, vector<1x8x128xbf16>
    %75 = vector.shape_cast %74 : vector<1x8x128xbf16> to vector<8x128xbf16>
    %76 = vector.shape_cast %72 : vector<8x128xbf16> to vector<1x8x128xbf16>
    tpu.vector_store %arg15[%73, %c0_31, %c0_32], %76 {strides = array<i32>} : memref<8x8x128xbf16, #tpu.memory_space<vmem>>, vector<1x8x128xbf16>,
    %c2_i32 = arith.constant 2 : i32
    %77 = arith.index_cast %c2_i32 : i32 to index
    %c0_33 = arith.constant 0 : index
    %c0_34 = arith.constant 0 : index
    %78 = vector.load %arg14[%77, %c0_33, %c0_34] : memref<8x8x512xbf16, #tpu.memory_space<vmem>>, vector<1x8x512xbf16>
    %79 = vector.shape_cast %78 : vector<1x8x512xbf16> to vector<8x512xbf16>
    %80 = arith.extf %79 : vector<8x512xbf16> to vector<8x512xf32>
    %81 = arith.truncf %71 : vector<8x128xf32> to vector<8x128xbf16>
    %cst_35 = arith.constant dense<0.000000e+00> : vector<8x512xf32>
    %82 = tpu.matmul %81, %16, %cst_35 {dimension_numbers = #tpu.dot_dimension_numbers<[1], [0], [0], [1], [0, 0, 1, 1], [], []>} : vector<8x128xbf16>, vector<128x512xbf16>, vector<8x512xf32> -> vector<8x512xf32>
    %83 = arith.addf %80, %82 : vector<8x512xf32>
    %84 = vector.extract_strided_slice %83 {offsets = [0, 0], sizes = [8, 384], strides = [1, 1]} : vector<8x512xf32> to vector<8x384xf32>
    %85 = arith.negf %84 : vector<8x384xf32>
    %86 = math.exp %85 : vector<8x384xf32>
    %cst_36 = arith.constant 1.000000e+00 : f32
    %87 = vector.broadcast %cst_36 : f32 to vector<8x384xf32>
    %88 = arith.addf %87, %86 : vector<8x384xf32>
    %89 = arith.divf %87, %88 : vector<8x384xf32>
    %90 = vector.extract_strided_slice %89 {offsets = [0, 0], sizes = [8, 128], strides = [1, 1]} : vector<8x384xf32> to vector<8x128xf32>
    %91 = vector.extract_strided_slice %89 {offsets = [0, 128], sizes = [8, 128], strides = [1, 1]} : vector<8x384xf32> to vector<8x128xf32>
    %92 = vector.extract_strided_slice %89 {offsets = [0, 256], sizes = [8, 128], strides = [1, 1]} : vector<8x384xf32> to vector<8x128xf32>
    %93 = vector.extract_strided_slice %83 {offsets = [0, 384], sizes = [8, 128], strides = [1, 1]} : vector<8x512xf32> to vector<8x128xf32>
    %94 = math.tanh %93 : vector<8x128xf32>
    %95 = arith.mulf %91, %69 : vector<8x128xf32>
    %96 = arith.mulf %90, %94 : vector<8x128xf32>
    %97 = arith.addf %95, %96 : vector<8x128xf32>
    %98 = math.tanh %97 : vector<8x128xf32>
    %99 = arith.mulf %92, %98 : vector<8x128xf32>
    %100 = arith.truncf %99 : vector<8x128xf32> to vector<8x128xbf16>
    %101 = arith.index_cast %c2_i32 : i32 to index
    %c0_37 = arith.constant 0 : index
    %c0_38 = arith.constant 0 : index
    %102 = vector.load %arg15[%101, %c0_37, %c0_38] : memref<8x8x128xbf16, #tpu.memory_space<vmem>>, vector<1x8x128xbf16>
    %103 = vector.shape_cast %102 : vector<1x8x128xbf16> to vector<8x128xbf16>
    %104 = vector.shape_cast %100 : vector<8x128xbf16> to vector<1x8x128xbf16>
    tpu.vector_store %arg15[%101, %c0_37, %c0_38], %104 {strides = array<i32>} : memref<8x8x128xbf16, #tpu.memory_space<vmem>>, vector<1x8x128xbf16>,
    %c3_i32 = arith.constant 3 : i32
    %105 = arith.index_cast %c3_i32 : i32 to index
    %c0_39 = arith.constant 0 : index
    %c0_40 = arith.constant 0 : index
    %106 = vector.load %arg14[%105, %c0_39, %c0_40] : memref<8x8x512xbf16, #tpu.memory_space<vmem>>, vector<1x8x512xbf16>
    %107 = vector.shape_cast %106 : vector<1x8x512xbf16> to vector<8x512xbf16>
    %108 = arith.extf %107 : vector<8x512xbf16> to vector<8x512xf32>
    %109 = arith.truncf %99 : vector<8x128xf32> to vector<8x128xbf16>
    %cst_41 = arith.constant dense<0.000000e+00> : vector<8x512xf32>
    %110 = tpu.matmul %109, %16, %cst_41 {dimension_numbers = #tpu.dot_dimension_numbers<[1], [0], [0], [1], [0, 0, 1, 1], [], []>} : vector<8x128xbf16>, vector<128x512xbf16>, vector<8x512xf32> -> vector<8x512xf32>
    %111 = arith.addf %108, %110 : vector<8x512xf32>
    %112 = vector.extract_strided_slice %111 {offsets = [0, 0], sizes = [8, 384], strides = [1, 1]} : vector<8x512xf32> to vector<8x384xf32>
    %113 = arith.negf %112 : vector<8x384xf32>
    %114 = math.exp %113 : vector<8x384xf32>
    %cst_42 = arith.constant 1.000000e+00 : f32
    %115 = vector.broadcast %cst_42 : f32 to vector<8x384xf32>
    %116 = arith.addf %115, %114 : vector<8x384xf32>
    %117 = arith.divf %115, %116 : vector<8x384xf32>
    %118 = vector.extract_strided_slice %117 {offsets = [0, 0], sizes = [8, 128], strides = [1, 1]} : vector<8x384xf32> to vector<8x128xf32>
    %119 = vector.extract_strided_slice %117 {offsets = [0, 128], sizes = [8, 128], strides = [1, 1]} : vector<8x384xf32> to vector<8x128xf32>
    %120 = vector.extract_strided_slice %117 {offsets = [0, 256], sizes = [8, 128], strides = [1, 1]} : vector<8x384xf32> to vector<8x128xf32>
    %121 = vector.extract_strided_slice %111 {offsets = [0, 384], sizes = [8, 128], strides = [1, 1]} : vector<8x512xf32> to vector<8x128xf32>
    %122 = math.tanh %121 : vector<8x128xf32>
    %123 = arith.mulf %119, %97 : vector<8x128xf32>
    %124 = arith.mulf %118, %122 : vector<8x128xf32>
    %125 = arith.addf %123, %124 : vector<8x128xf32>
    %126 = math.tanh %125 : vector<8x128xf32>
    %127 = arith.mulf %120, %126 : vector<8x128xf32>
    %128 = arith.truncf %127 : vector<8x128xf32> to vector<8x128xbf16>
    %129 = arith.index_cast %c3_i32 : i32 to index
    %c0_43 = arith.constant 0 : index
    %c0_44 = arith.constant 0 : index
    %130 = vector.load %arg15[%129, %c0_43, %c0_44] : memref<8x8x128xbf16, #tpu.memory_space<vmem>>, vector<1x8x128xbf16>
    %131 = vector.shape_cast %130 : vector<1x8x128xbf16> to vector<8x128xbf16>
    %132 = vector.shape_cast %128 : vector<8x128xbf16> to vector<1x8x128xbf16>
    tpu.vector_store %arg15[%129, %c0_43, %c0_44], %132 {strides = array<i32>} : memref<8x8x128xbf16, #tpu.memory_space<vmem>>, vector<1x8x128xbf16>,
    %c4_i32 = arith.constant 4 : i32
    %133 = arith.index_cast %c4_i32 : i32 to index
    %c0_45 = arith.constant 0 : index
    %c0_46 = arith.constant 0 : index
    %134 = vector.load %arg14[%133, %c0_45, %c0_46] : memref<8x8x512xbf16, #tpu.memory_space<vmem>>, vector<1x8x512xbf16>
    %135 = vector.shape_cast %134 : vector<1x8x512xbf16> to vector<8x512xbf16>
    %136 = arith.extf %135 : vector<8x512xbf16> to vector<8x512xf32>
    %137 = arith.truncf %127 : vector<8x128xf32> to vector<8x128xbf16>
    %cst_47 = arith.constant dense<0.000000e+00> : vector<8x512xf32>
    %138 = tpu.matmul %137, %16, %cst_47 {dimension_numbers = #tpu.dot_dimension_numbers<[1], [0], [0], [1], [0, 0, 1, 1], [], []>} : vector<8x128xbf16>, vector<128x512xbf16>, vector<8x512xf32> -> vector<8x512xf32>
    %139 = arith.addf %136, %138 : vector<8x512xf32>
    %140 = vector.extract_strided_slice %139 {offsets = [0, 0], sizes = [8, 384], strides = [1, 1]} : vector<8x512xf32> to vector<8x384xf32>
    %141 = arith.negf %140 : vector<8x384xf32>
    %142 = math.exp %141 : vector<8x384xf32>
    %cst_48 = arith.constant 1.000000e+00 : f32
    %143 = vector.broadcast %cst_48 : f32 to vector<8x384xf32>
    %144 = arith.addf %143, %142 : vector<8x384xf32>
    %145 = arith.divf %143, %144 : vector<8x384xf32>
    %146 = vector.extract_strided_slice %145 {offsets = [0, 0], sizes = [8, 128], strides = [1, 1]} : vector<8x384xf32> to vector<8x128xf32>
    %147 = vector.extract_strided_slice %145 {offsets = [0, 128], sizes = [8, 128], strides = [1, 1]} : vector<8x384xf32> to vector<8x128xf32>
    %148 = vector.extract_strided_slice %145 {offsets = [0, 256], sizes = [8, 128], strides = [1, 1]} : vector<8x384xf32> to vector<8x128xf32>
    %149 = vector.extract_strided_slice %139 {offsets = [0, 384], sizes = [8, 128], strides = [1, 1]} : vector<8x512xf32> to vector<8x128xf32>
    %150 = math.tanh %149 : vector<8x128xf32>
    %151 = arith.mulf %147, %125 : vector<8x128xf32>
    %152 = arith.mulf %146, %150 : vector<8x128xf32>
    %153 = arith.addf %151, %152 : vector<8x128xf32>
    %154 = math.tanh %153 : vector<8x128xf32>
    %155 = arith.mulf %148, %154 : vector<8x128xf32>
    %156 = arith.truncf %155 : vector<8x128xf32> to vector<8x128xbf16>
    %157 = arith.index_cast %c4_i32 : i32 to index
    %c0_49 = arith.constant 0 : index
    %c0_50 = arith.constant 0 : index
    %158 = vector.load %arg15[%157, %c0_49, %c0_50] : memref<8x8x128xbf16, #tpu.memory_space<vmem>>, vector<1x8x128xbf16>
    %159 = vector.shape_cast %158 : vector<1x8x128xbf16> to vector<8x128xbf16>
    %160 = vector.shape_cast %156 : vector<8x128xbf16> to vector<1x8x128xbf16>
    tpu.vector_store %arg15[%157, %c0_49, %c0_50], %160 {strides = array<i32>} : memref<8x8x128xbf16, #tpu.memory_space<vmem>>, vector<1x8x128xbf16>,
    %c5_i32 = arith.constant 5 : i32
    %161 = arith.index_cast %c5_i32 : i32 to index
    %c0_51 = arith.constant 0 : index
    %c0_52 = arith.constant 0 : index
    %162 = vector.load %arg14[%161, %c0_51, %c0_52] : memref<8x8x512xbf16, #tpu.memory_space<vmem>>, vector<1x8x512xbf16>
    %163 = vector.shape_cast %162 : vector<1x8x512xbf16> to vector<8x512xbf16>
    %164 = arith.extf %163 : vector<8x512xbf16> to vector<8x512xf32>
    %165 = arith.truncf %155 : vector<8x128xf32> to vector<8x128xbf16>
    %cst_53 = arith.constant dense<0.000000e+00> : vector<8x512xf32>
    %166 = tpu.matmul %165, %16, %cst_53 {dimension_numbers = #tpu.dot_dimension_numbers<[1], [0], [0], [1], [0, 0, 1, 1], [], []>} : vector<8x128xbf16>, vector<128x512xbf16>, vector<8x512xf32> -> vector<8x512xf32>
    %167 = arith.addf %164, %166 : vector<8x512xf32>
    %168 = vector.extract_strided_slice %167 {offsets = [0, 0], sizes = [8, 384], strides = [1, 1]} : vector<8x512xf32> to vector<8x384xf32>
    %169 = arith.negf %168 : vector<8x384xf32>
    %170 = math.exp %169 : vector<8x384xf32>
    %cst_54 = arith.constant 1.000000e+00 : f32
    %171 = vector.broadcast %cst_54 : f32 to vector<8x384xf32>
    %172 = arith.addf %171, %170 : vector<8x384xf32>
    %173 = arith.divf %171, %172 : vector<8x384xf32>
    %174 = vector.extract_strided_slice %173 {offsets = [0, 0], sizes = [8, 128], strides = [1, 1]} : vector<8x384xf32> to vector<8x128xf32>
    %175 = vector.extract_strided_slice %173 {offsets = [0, 128], sizes = [8, 128], strides = [1, 1]} : vector<8x384xf32> to vector<8x128xf32>
    %176 = vector.extract_strided_slice %173 {offsets = [0, 256], sizes = [8, 128], strides = [1, 1]} : vector<8x384xf32> to vector<8x128xf32>
    %177 = vector.extract_strided_slice %167 {offsets = [0, 384], sizes = [8, 128], strides = [1, 1]} : vector<8x512xf32> to vector<8x128xf32>
    %178 = math.tanh %177 : vector<8x128xf32>
    %179 = arith.mulf %175, %153 : vector<8x128xf32>
    %180 = arith.mulf %174, %178 : vector<8x128xf32>
    %181 = arith.addf %179, %180 : vector<8x128xf32>
    %182 = math.tanh %181 : vector<8x128xf32>
    %183 = arith.mulf %176, %182 : vector<8x128xf32>
    %184 = arith.truncf %183 : vector<8x128xf32> to vector<8x128xbf16>
    %185 = arith.index_cast %c5_i32 : i32 to index
    %c0_55 = arith.constant 0 : index
    %c0_56 = arith.constant 0 : index
    %186 = vector.load %arg15[%185, %c0_55, %c0_56] : memref<8x8x128xbf16, #tpu.memory_space<vmem>>, vector<1x8x128xbf16>
    %187 = vector.shape_cast %186 : vector<1x8x128xbf16> to vector<8x128xbf16>
    %188 = vector.shape_cast %184 : vector<8x128xbf16> to vector<1x8x128xbf16>
    tpu.vector_store %arg15[%185, %c0_55, %c0_56], %188 {strides = array<i32>} : memref<8x8x128xbf16, #tpu.memory_space<vmem>>, vector<1x8x128xbf16>,
    %c6_i32 = arith.constant 6 : i32
    %189 = arith.index_cast %c6_i32 : i32 to index
    %c0_57 = arith.constant 0 : index
    %c0_58 = arith.constant 0 : index
    %190 = vector.load %arg14[%189, %c0_57, %c0_58] : memref<8x8x512xbf16, #tpu.memory_space<vmem>>, vector<1x8x512xbf16>
    %191 = vector.shape_cast %190 : vector<1x8x512xbf16> to vector<8x512xbf16>
    %192 = arith.extf %191 : vector<8x512xbf16> to vector<8x512xf32>
    %193 = arith.truncf %183 : vector<8x128xf32> to vector<8x128xbf16>
    %cst_59 = arith.constant dense<0.000000e+00> : vector<8x512xf32>
    %194 = tpu.matmul %193, %16, %cst_59 {dimension_numbers = #tpu.dot_dimension_numbers<[1], [0], [0], [1], [0, 0, 1, 1], [], []>} : vector<8x128xbf16>, vector<128x512xbf16>, vector<8x512xf32> -> vector<8x512xf32>
    %195 = arith.addf %192, %194 : vector<8x512xf32>
    %196 = vector.extract_strided_slice %195 {offsets = [0, 0], sizes = [8, 384], strides = [1, 1]} : vector<8x512xf32> to vector<8x384xf32>
    %197 = arith.negf %196 : vector<8x384xf32>
    %198 = math.exp %197 : vector<8x384xf32>
    %cst_60 = arith.constant 1.000000e+00 : f32
    %199 = vector.broadcast %cst_60 : f32 to vector<8x384xf32>
    %200 = arith.addf %199, %198 : vector<8x384xf32>
    %201 = arith.divf %199, %200 : vector<8x384xf32>
    %202 = vector.extract_strided_slice %201 {offsets = [0, 0], sizes = [8, 128], strides = [1, 1]} : vector<8x384xf32> to vector<8x128xf32>
    %203 = vector.extract_strided_slice %201 {offsets = [0, 128], sizes = [8, 128], strides = [1, 1]} : vector<8x384xf32> to vector<8x128xf32>
    %204 = vector.extract_strided_slice %201 {offsets = [0, 256], sizes = [8, 128], strides = [1, 1]} : vector<8x384xf32> to vector<8x128xf32>
    %205 = vector.extract_strided_slice %195 {offsets = [0, 384], sizes = [8, 128], strides = [1, 1]} : vector<8x512xf32> to vector<8x128xf32>
    %206 = math.tanh %205 : vector<8x128xf32>
    %207 = arith.mulf %203, %181 : vector<8x128xf32>
    %208 = arith.mulf %202, %206 : vector<8x128xf32>
    %209 = arith.addf %207, %208 : vector<8x128xf32>
    %210 = math.tanh %209 : vector<8x128xf32>
    %211 = arith.mulf %204, %210 : vector<8x128xf32>
    %212 = arith.truncf %211 : vector<8x128xf32> to vector<8x128xbf16>
    %213 = arith.index_cast %c6_i32 : i32 to index
    %c0_61 = arith.constant 0 : index
    %c0_62 = arith.constant 0 : index
    %214 = vector.load %arg15[%213, %c0_61, %c0_62] : memref<8x8x128xbf16, #tpu.memory_space<vmem>>, vector<1x8x128xbf16>
    %215 = vector.shape_cast %214 : vector<1x8x128xbf16> to vector<8x128xbf16>
    %216 = vector.shape_cast %212 : vector<8x128xbf16> to vector<1x8x128xbf16>
    tpu.vector_store %arg15[%213, %c0_61, %c0_62], %216 {strides = array<i32>} : memref<8x8x128xbf16, #tpu.memory_space<vmem>>, vector<1x8x128xbf16>,
    %c7_i32 = arith.constant 7 : i32
    %217 = arith.index_cast %c7_i32 : i32 to index
    %c0_63 = arith.constant 0 : index
    %c0_64 = arith.constant 0 : index
    %218 = vector.load %arg14[%217, %c0_63, %c0_64] : memref<8x8x512xbf16, #tpu.memory_space<vmem>>, vector<1x8x512xbf16>
    %219 = vector.shape_cast %218 : vector<1x8x512xbf16> to vector<8x512xbf16>
    %220 = arith.extf %219 : vector<8x512xbf16> to vector<8x512xf32>
    %221 = arith.truncf %211 : vector<8x128xf32> to vector<8x128xbf16>
    %cst_65 = arith.constant dense<0.000000e+00> : vector<8x512xf32>
    %222 = tpu.matmul %221, %16, %cst_65 {dimension_numbers = #tpu.dot_dimension_numbers<[1], [0], [0], [1], [0, 0, 1, 1], [], []>} : vector<8x128xbf16>, vector<128x512xbf16>, vector<8x512xf32> -> vector<8x512xf32>
    %223 = arith.addf %220, %222 : vector<8x512xf32>
    %224 = vector.extract_strided_slice %223 {offsets = [0, 0], sizes = [8, 384], strides = [1, 1]} : vector<8x512xf32> to vector<8x384xf32>
    %225 = arith.negf %224 : vector<8x384xf32>
    %226 = math.exp %225 : vector<8x384xf32>
    %cst_66 = arith.constant 1.000000e+00 : f32
    %227 = vector.broadcast %cst_66 : f32 to vector<8x384xf32>
    %228 = arith.addf %227, %226 : vector<8x384xf32>
    %229 = arith.divf %227, %228 : vector<8x384xf32>
    %230 = vector.extract_strided_slice %229 {offsets = [0, 0], sizes = [8, 128], strides = [1, 1]} : vector<8x384xf32> to vector<8x128xf32>
    %231 = vector.extract_strided_slice %229 {offsets = [0, 128], sizes = [8, 128], strides = [1, 1]} : vector<8x384xf32> to vector<8x128xf32>
    %232 = vector.extract_strided_slice %229 {offsets = [0, 256], sizes = [8, 128], strides = [1, 1]} : vector<8x384xf32> to vector<8x128xf32>
    %233 = vector.extract_strided_slice %223 {offsets = [0, 384], sizes = [8, 128], strides = [1, 1]} : vector<8x512xf32> to vector<8x128xf32>
    %234 = math.tanh %233 : vector<8x128xf32>
    %235 = arith.mulf %231, %209 : vector<8x128xf32>
    %236 = arith.mulf %230, %234 : vector<8x128xf32>
    %237 = arith.addf %235, %236 : vector<8x128xf32>
    %238 = math.tanh %237 : vector<8x128xf32>
    %239 = arith.mulf %232, %238 : vector<8x128xf32>
    %240 = arith.truncf %239 : vector<8x128xf32> to vector<8x128xbf16>
    %241 = arith.index_cast %c7_i32 : i32 to index
    %c0_67 = arith.constant 0 : index
    %c0_68 = arith.constant 0 : index
    %242 = vector.load %arg15[%241, %c0_67, %c0_68] : memref<8x8x128xbf16, #tpu.memory_space<vmem>>, vector<1x8x128xbf16>
    %243 = vector.shape_cast %242 : vector<1x8x128xbf16> to vector<8x128xbf16>
    %244 = vector.shape_cast %240 : vector<8x128xbf16> to vector<1x8x128xbf16>
    tpu.vector_store %arg15[%241, %c0_67, %c0_68], %244 {strides = array<i32>} : memref<8x8x128xbf16, #tpu.memory_space<vmem>>, vector<1x8x128xbf16>,
    %c8_i32 = arith.constant 8 : i32
    %c0_69 = arith.constant 0 : index
    %c0_70 = arith.constant 0 : index
    %c0_71 = arith.constant 0 : index
    %245 = vector.load %arg12[%c0_69, %c0_70, %c0_71] : memref<2x8x128xf32, #tpu.memory_space<vmem>>, vector<1x8x128xf32>
    %246 = vector.shape_cast %245 : vector<1x8x128xf32> to vector<8x128xf32>
    %247 = vector.shape_cast %239 : vector<8x128xf32> to vector<1x8x128xf32>
    tpu.vector_store %arg12[%c0_69, %c0_70, %c0_71], %247 {strides = array<i32>} : memref<2x8x128xf32, #tpu.memory_space<vmem>>, vector<1x8x128xf32>,
    %c0_72 = arith.constant 0 : index
    %c0_73 = arith.constant 0 : index
    %c0_74 = arith.constant 0 : index
    %248 = vector.load %arg13[%c0_72, %c0_73, %c0_74] : memref<2x8x128xf32, #tpu.memory_space<vmem>>, vector<1x8x128xf32>
    %249 = vector.shape_cast %248 : vector<1x8x128xf32> to vector<8x128xf32>
    %250 = vector.shape_cast %237 : vector<8x128xf32> to vector<1x8x128xf32>
    tpu.vector_store %arg13[%c0_72, %c0_73, %c0_74], %250 {strides = array<i32>} : memref<2x8x128xf32, #tpu.memory_space<vmem>>, vector<1x8x128xf32>,
    %c0_75 = arith.constant 0 : index
    %c0_76 = arith.constant 0 : index
    %c0_77 = arith.constant 0 : index
    %251 = vector.load %arg15[%c0_75, %c0_76, %c0_77] : memref<8x8x128xbf16, #tpu.memory_space<vmem>>, vector<8x8x128xbf16>
    %252 = vector.shape_cast %251 : vector<8x8x128xbf16> to vector<64x128xbf16>
    %c0_78 = arith.constant 0 : index
    %c0_79 = arith.constant 0 : index
    %c0_80 = arith.constant 0 : index
    %253 = vector.load %arg4[%c0_78, %c0_79, %c0_80] : memref<1x128x512xbf16, #tpu.memory_space<vmem>>, vector<1x128x512xbf16>
    %254 = vector.shape_cast %253 : vector<1x128x512xbf16> to vector<128x512xbf16>
    %cst_81 = arith.constant dense<0.000000e+00> : vector<64x512xf32>
    %255 = tpu.matmul %252, %254, %cst_81 {dimension_numbers = #tpu.dot_dimension_numbers<[1], [0], [0], [1], [0, 0, 1, 1], [], []>} : vector<64x128xbf16>, vector<128x512xbf16>, vector<64x512xf32> -> vector<64x512xf32>
    %c1 = arith.constant 1 : index
    %c0_82 = arith.constant 0 : index
    %c0_83 = arith.constant 0 : index
    %256 = vector.load %arg6[%c1, %c0_82, %c0_83] : memref<2x1x512xf32, #tpu.memory_space<vmem>>, vector<1x1x512xf32>
    %257 = vector.shape_cast %256 : vector<1x1x512xf32> to vector<1x512xf32>
    %258 = vector.broadcast %257 : vector<1x512xf32> to vector<64x512xf32>
    %259 = arith.addf %255, %258 : vector<64x512xf32>
    %260 = arith.truncf %259 : vector<64x512xf32> to vector<64x512xbf16>
    %261 = vector.shape_cast %260 : vector<64x512xbf16> to vector<8x8x512xbf16>
    %c0_84 = arith.constant 0 : index
    %c0_85 = arith.constant 0 : index
    %c0_86 = arith.constant 0 : index
    %262 = vector.load %arg14[%c0_84, %c0_85, %c0_86] : memref<8x8x512xbf16, #tpu.memory_space<vmem>>, vector<8x8x512xbf16>
    tpu.vector_store %arg14[%c0_84, %c0_85, %c0_86], %261 {strides = array<i32>} : memref<8x8x512xbf16, #tpu.memory_space<vmem>>, vector<8x8x512xbf16>,
    %c1_87 = arith.constant 1 : index
    %c0_88 = arith.constant 0 : index
    %c0_89 = arith.constant 0 : index
    %263 = vector.load %arg5[%c1_87, %c0_88, %c0_89] : memref<2x128x512xbf16, #tpu.memory_space<vmem>>, vector<1x128x512xbf16>
    %264 = vector.shape_cast %263 : vector<1x128x512xbf16> to vector<128x512xbf16>
    %c1_90 = arith.constant 1 : index
    %c0_91 = arith.constant 0 : index
    %c0_92 = arith.constant 0 : index
    %265 = vector.load %arg12[%c1_90, %c0_91, %c0_92] : memref<2x8x128xf32, #tpu.memory_space<vmem>>, vector<1x8x128xf32>
    %266 = vector.shape_cast %265 : vector<1x8x128xf32> to vector<8x128xf32>
    %c1_93 = arith.constant 1 : index
    %c0_94 = arith.constant 0 : index
    %c0_95 = arith.constant 0 : index
    %267 = vector.load %arg13[%c1_93, %c0_94, %c0_95] : memref<2x8x128xf32, #tpu.memory_space<vmem>>, vector<1x8x128xf32>
    %268 = vector.shape_cast %267 : vector<1x8x128xf32> to vector<8x128xf32>
    %c0_i32_96 = arith.constant 0 : i32
    %269 = arith.index_cast %c0_i32_96 : i32 to index
    %c0_97 = arith.constant 0 : index
    %c0_98 = arith.constant 0 : index
    %270 = vector.load %arg14[%269, %c0_97, %c0_98] : memref<8x8x512xbf16, #tpu.memory_space<vmem>>, vector<1x8x512xbf16>
    %271 = vector.shape_cast %270 : vector<1x8x512xbf16> to vector<8x512xbf16>
    %272 = arith.extf %271 : vector<8x512xbf16> to vector<8x512xf32>
    %273 = arith.truncf %266 : vector<8x128xf32> to vector<8x128xbf16>
    %cst_99 = arith.constant dense<0.000000e+00> : vector<8x512xf32>
    %274 = tpu.matmul %273, %264, %cst_99 {dimension_numbers = #tpu.dot_dimension_numbers<[1], [0], [0], [1], [0, 0, 1, 1], [], []>} : vector<8x128xbf16>, vector<128x512xbf16>, vector<8x512xf32> -> vector<8x512xf32>
    %275 = arith.addf %272, %274 : vector<8x512xf32>
    %276 = vector.extract_strided_slice %275 {offsets = [0, 0], sizes = [8, 384], strides = [1, 1]} : vector<8x512xf32> to vector<8x384xf32>
    %277 = arith.negf %276 : vector<8x384xf32>
    %278 = math.exp %277 : vector<8x384xf32>
    %cst_100 = arith.constant 1.000000e+00 : f32
    %279 = vector.broadcast %cst_100 : f32 to vector<8x384xf32>
    %280 = arith.addf %279, %278 : vector<8x384xf32>
    %281 = arith.divf %279, %280 : vector<8x384xf32>
    %282 = vector.extract_strided_slice %281 {offsets = [0, 0], sizes = [8, 128], strides = [1, 1]} : vector<8x384xf32> to vector<8x128xf32>
    %283 = vector.extract_strided_slice %281 {offsets = [0, 128], sizes = [8, 128], strides = [1, 1]} : vector<8x384xf32> to vector<8x128xf32>
    %284 = vector.extract_strided_slice %281 {offsets = [0, 256], sizes = [8, 128], strides = [1, 1]} : vector<8x384xf32> to vector<8x128xf32>
    %285 = vector.extract_strided_slice %275 {offsets = [0, 384], sizes = [8, 128], strides = [1, 1]} : vector<8x512xf32> to vector<8x128xf32>
    %286 = math.tanh %285 : vector<8x128xf32>
    %287 = arith.mulf %283, %268 : vector<8x128xf32>
    %288 = arith.mulf %282, %286 : vector<8x128xf32>
    %289 = arith.addf %287, %288 : vector<8x128xf32>
    %290 = math.tanh %289 : vector<8x128xf32>
    %291 = arith.mulf %284, %290 : vector<8x128xf32>
    %292 = arith.index_cast %c0_i32_96 : i32 to index
    %c0_101 = arith.constant 0 : index
    %c0_102 = arith.constant 0 : index
    %293 = vector.load %arg9[%292, %c0_101, %c0_102] : memref<8x8x128xf32, #tpu.memory_space<vmem>>, vector<1x8x128xf32>
    %294 = vector.shape_cast %293 : vector<1x8x128xf32> to vector<8x128xf32>
    %295 = vector.shape_cast %291 : vector<8x128xf32> to vector<1x8x128xf32>
    tpu.vector_store %arg9[%292, %c0_101, %c0_102], %295 {strides = array<i32>} : memref<8x8x128xf32, #tpu.memory_space<vmem>>, vector<1x8x128xf32>,
    %c1_i32_103 = arith.constant 1 : i32
    %296 = arith.index_cast %c1_i32_103 : i32 to index
    %c0_104 = arith.constant 0 : index
    %c0_105 = arith.constant 0 : index
    %297 = vector.load %arg14[%296, %c0_104, %c0_105] : memref<8x8x512xbf16, #tpu.memory_space<vmem>>, vector<1x8x512xbf16>
    %298 = vector.shape_cast %297 : vector<1x8x512xbf16> to vector<8x512xbf16>
    %299 = arith.extf %298 : vector<8x512xbf16> to vector<8x512xf32>
    %300 = arith.truncf %291 : vector<8x128xf32> to vector<8x128xbf16>
    %cst_106 = arith.constant dense<0.000000e+00> : vector<8x512xf32>
    %301 = tpu.matmul %300, %264, %cst_106 {dimension_numbers = #tpu.dot_dimension_numbers<[1], [0], [0], [1], [0, 0, 1, 1], [], []>} : vector<8x128xbf16>, vector<128x512xbf16>, vector<8x512xf32> -> vector<8x512xf32>
    %302 = arith.addf %299, %301 : vector<8x512xf32>
    %303 = vector.extract_strided_slice %302 {offsets = [0, 0], sizes = [8, 384], strides = [1, 1]} : vector<8x512xf32> to vector<8x384xf32>
    %304 = arith.negf %303 : vector<8x384xf32>
    %305 = math.exp %304 : vector<8x384xf32>
    %cst_107 = arith.constant 1.000000e+00 : f32
    %306 = vector.broadcast %cst_107 : f32 to vector<8x384xf32>
    %307 = arith.addf %306, %305 : vector<8x384xf32>
    %308 = arith.divf %306, %307 : vector<8x384xf32>
    %309 = vector.extract_strided_slice %308 {offsets = [0, 0], sizes = [8, 128], strides = [1, 1]} : vector<8x384xf32> to vector<8x128xf32>
    %310 = vector.extract_strided_slice %308 {offsets = [0, 128], sizes = [8, 128], strides = [1, 1]} : vector<8x384xf32> to vector<8x128xf32>
    %311 = vector.extract_strided_slice %308 {offsets = [0, 256], sizes = [8, 128], strides = [1, 1]} : vector<8x384xf32> to vector<8x128xf32>
    %312 = vector.extract_strided_slice %302 {offsets = [0, 384], sizes = [8, 128], strides = [1, 1]} : vector<8x512xf32> to vector<8x128xf32>
    %313 = math.tanh %312 : vector<8x128xf32>
    %314 = arith.mulf %310, %289 : vector<8x128xf32>
    %315 = arith.mulf %309, %313 : vector<8x128xf32>
    %316 = arith.addf %314, %315 : vector<8x128xf32>
    %317 = math.tanh %316 : vector<8x128xf32>
    %318 = arith.mulf %311, %317 : vector<8x128xf32>
    %319 = arith.index_cast %c1_i32_103 : i32 to index
    %c0_108 = arith.constant 0 : index
    %c0_109 = arith.constant 0 : index
    %320 = vector.load %arg9[%319, %c0_108, %c0_109] : memref<8x8x128xf32, #tpu.memory_space<vmem>>, vector<1x8x128xf32>
    %321 = vector.shape_cast %320 : vector<1x8x128xf32> to vector<8x128xf32>
    %322 = vector.shape_cast %318 : vector<8x128xf32> to vector<1x8x128xf32>
    tpu.vector_store %arg9[%319, %c0_108, %c0_109], %322 {strides = array<i32>} : memref<8x8x128xf32, #tpu.memory_space<vmem>>, vector<1x8x128xf32>,
    %c2_i32_110 = arith.constant 2 : i32
    %323 = arith.index_cast %c2_i32_110 : i32 to index
    %c0_111 = arith.constant 0 : index
    %c0_112 = arith.constant 0 : index
    %324 = vector.load %arg14[%323, %c0_111, %c0_112] : memref<8x8x512xbf16, #tpu.memory_space<vmem>>, vector<1x8x512xbf16>
    %325 = vector.shape_cast %324 : vector<1x8x512xbf16> to vector<8x512xbf16>
    %326 = arith.extf %325 : vector<8x512xbf16> to vector<8x512xf32>
    %327 = arith.truncf %318 : vector<8x128xf32> to vector<8x128xbf16>
    %cst_113 = arith.constant dense<0.000000e+00> : vector<8x512xf32>
    %328 = tpu.matmul %327, %264, %cst_113 {dimension_numbers = #tpu.dot_dimension_numbers<[1], [0], [0], [1], [0, 0, 1, 1], [], []>} : vector<8x128xbf16>, vector<128x512xbf16>, vector<8x512xf32> -> vector<8x512xf32>
    %329 = arith.addf %326, %328 : vector<8x512xf32>
    %330 = vector.extract_strided_slice %329 {offsets = [0, 0], sizes = [8, 384], strides = [1, 1]} : vector<8x512xf32> to vector<8x384xf32>
    %331 = arith.negf %330 : vector<8x384xf32>
    %332 = math.exp %331 : vector<8x384xf32>
    %cst_114 = arith.constant 1.000000e+00 : f32
    %333 = vector.broadcast %cst_114 : f32 to vector<8x384xf32>
    %334 = arith.addf %333, %332 : vector<8x384xf32>
    %335 = arith.divf %333, %334 : vector<8x384xf32>
    %336 = vector.extract_strided_slice %335 {offsets = [0, 0], sizes = [8, 128], strides = [1, 1]} : vector<8x384xf32> to vector<8x128xf32>
    %337 = vector.extract_strided_slice %335 {offsets = [0, 128], sizes = [8, 128], strides = [1, 1]} : vector<8x384xf32> to vector<8x128xf32>
    %338 = vector.extract_strided_slice %335 {offsets = [0, 256], sizes = [8, 128], strides = [1, 1]} : vector<8x384xf32> to vector<8x128xf32>
    %339 = vector.extract_strided_slice %329 {offsets = [0, 384], sizes = [8, 128], strides = [1, 1]} : vector<8x512xf32> to vector<8x128xf32>
    %340 = math.tanh %339 : vector<8x128xf32>
    %341 = arith.mulf %337, %316 : vector<8x128xf32>
    %342 = arith.mulf %336, %340 : vector<8x128xf32>
    %343 = arith.addf %341, %342 : vector<8x128xf32>
    %344 = math.tanh %343 : vector<8x128xf32>
    %345 = arith.mulf %338, %344 : vector<8x128xf32>
    %346 = arith.index_cast %c2_i32_110 : i32 to index
    %c0_115 = arith.constant 0 : index
    %c0_116 = arith.constant 0 : index
    %347 = vector.load %arg9[%346, %c0_115, %c0_116] : memref<8x8x128xf32, #tpu.memory_space<vmem>>, vector<1x8x128xf32>
    %348 = vector.shape_cast %347 : vector<1x8x128xf32> to vector<8x128xf32>
    %349 = vector.shape_cast %345 : vector<8x128xf32> to vector<1x8x128xf32>
    tpu.vector_store %arg9[%346, %c0_115, %c0_116], %349 {strides = array<i32>} : memref<8x8x128xf32, #tpu.memory_space<vmem>>, vector<1x8x128xf32>,
    %c3_i32_117 = arith.constant 3 : i32
    %350 = arith.index_cast %c3_i32_117 : i32 to index
    %c0_118 = arith.constant 0 : index
    %c0_119 = arith.constant 0 : index
    %351 = vector.load %arg14[%350, %c0_118, %c0_119] : memref<8x8x512xbf16, #tpu.memory_space<vmem>>, vector<1x8x512xbf16>
    %352 = vector.shape_cast %351 : vector<1x8x512xbf16> to vector<8x512xbf16>
    %353 = arith.extf %352 : vector<8x512xbf16> to vector<8x512xf32>
    %354 = arith.truncf %345 : vector<8x128xf32> to vector<8x128xbf16>
    %cst_120 = arith.constant dense<0.000000e+00> : vector<8x512xf32>
    %355 = tpu.matmul %354, %264, %cst_120 {dimension_numbers = #tpu.dot_dimension_numbers<[1], [0], [0], [1], [0, 0, 1, 1], [], []>} : vector<8x128xbf16>, vector<128x512xbf16>, vector<8x512xf32> -> vector<8x512xf32>
    %356 = arith.addf %353, %355 : vector<8x512xf32>
    %357 = vector.extract_strided_slice %356 {offsets = [0, 0], sizes = [8, 384], strides = [1, 1]} : vector<8x512xf32> to vector<8x384xf32>
    %358 = arith.negf %357 : vector<8x384xf32>
    %359 = math.exp %358 : vector<8x384xf32>
    %cst_121 = arith.constant 1.000000e+00 : f32
    %360 = vector.broadcast %cst_121 : f32 to vector<8x384xf32>
    %361 = arith.addf %360, %359 : vector<8x384xf32>
    %362 = arith.divf %360, %361 : vector<8x384xf32>
    %363 = vector.extract_strided_slice %362 {offsets = [0, 0], sizes = [8, 128], strides = [1, 1]} : vector<8x384xf32> to vector<8x128xf32>
    %364 = vector.extract_strided_slice %362 {offsets = [0, 128], sizes = [8, 128], strides = [1, 1]} : vector<8x384xf32> to vector<8x128xf32>
    %365 = vector.extract_strided_slice %362 {offsets = [0, 256], sizes = [8, 128], strides = [1, 1]} : vector<8x384xf32> to vector<8x128xf32>
    %366 = vector.extract_strided_slice %356 {offsets = [0, 384], sizes = [8, 128], strides = [1, 1]} : vector<8x512xf32> to vector<8x128xf32>
    %367 = math.tanh %366 : vector<8x128xf32>
    %368 = arith.mulf %364, %343 : vector<8x128xf32>
    %369 = arith.mulf %363, %367 : vector<8x128xf32>
    %370 = arith.addf %368, %369 : vector<8x128xf32>
    %371 = math.tanh %370 : vector<8x128xf32>
    %372 = arith.mulf %365, %371 : vector<8x128xf32>
    %373 = arith.index_cast %c3_i32_117 : i32 to index
    %c0_122 = arith.constant 0 : index
    %c0_123 = arith.constant 0 : index
    %374 = vector.load %arg9[%373, %c0_122, %c0_123] : memref<8x8x128xf32, #tpu.memory_space<vmem>>, vector<1x8x128xf32>
    %375 = vector.shape_cast %374 : vector<1x8x128xf32> to vector<8x128xf32>
    %376 = vector.shape_cast %372 : vector<8x128xf32> to vector<1x8x128xf32>
    tpu.vector_store %arg9[%373, %c0_122, %c0_123], %376 {strides = array<i32>} : memref<8x8x128xf32, #tpu.memory_space<vmem>>, vector<1x8x128xf32>,
    %c4_i32_124 = arith.constant 4 : i32
    %377 = arith.index_cast %c4_i32_124 : i32 to index
    %c0_125 = arith.constant 0 : index
    %c0_126 = arith.constant 0 : index
    %378 = vector.load %arg14[%377, %c0_125, %c0_126] : memref<8x8x512xbf16, #tpu.memory_space<vmem>>, vector<1x8x512xbf16>
    %379 = vector.shape_cast %378 : vector<1x8x512xbf16> to vector<8x512xbf16>
    %380 = arith.extf %379 : vector<8x512xbf16> to vector<8x512xf32>
    %381 = arith.truncf %372 : vector<8x128xf32> to vector<8x128xbf16>
    %cst_127 = arith.constant dense<0.000000e+00> : vector<8x512xf32>
    %382 = tpu.matmul %381, %264, %cst_127 {dimension_numbers = #tpu.dot_dimension_numbers<[1], [0], [0], [1], [0, 0, 1, 1], [], []>} : vector<8x128xbf16>, vector<128x512xbf16>, vector<8x512xf32> -> vector<8x512xf32>
    %383 = arith.addf %380, %382 : vector<8x512xf32>
    %384 = vector.extract_strided_slice %383 {offsets = [0, 0], sizes = [8, 384], strides = [1, 1]} : vector<8x512xf32> to vector<8x384xf32>
    %385 = arith.negf %384 : vector<8x384xf32>
    %386 = math.exp %385 : vector<8x384xf32>
    %cst_128 = arith.constant 1.000000e+00 : f32
    %387 = vector.broadcast %cst_128 : f32 to vector<8x384xf32>
    %388 = arith.addf %387, %386 : vector<8x384xf32>
    %389 = arith.divf %387, %388 : vector<8x384xf32>
    %390 = vector.extract_strided_slice %389 {offsets = [0, 0], sizes = [8, 128], strides = [1, 1]} : vector<8x384xf32> to vector<8x128xf32>
    %391 = vector.extract_strided_slice %389 {offsets = [0, 128], sizes = [8, 128], strides = [1, 1]} : vector<8x384xf32> to vector<8x128xf32>
    %392 = vector.extract_strided_slice %389 {offsets = [0, 256], sizes = [8, 128], strides = [1, 1]} : vector<8x384xf32> to vector<8x128xf32>
    %393 = vector.extract_strided_slice %383 {offsets = [0, 384], sizes = [8, 128], strides = [1, 1]} : vector<8x512xf32> to vector<8x128xf32>
    %394 = math.tanh %393 : vector<8x128xf32>
    %395 = arith.mulf %391, %370 : vector<8x128xf32>
    %396 = arith.mulf %390, %394 : vector<8x128xf32>
    %397 = arith.addf %395, %396 : vector<8x128xf32>
    %398 = math.tanh %397 : vector<8x128xf32>
    %399 = arith.mulf %392, %398 : vector<8x128xf32>
    %400 = arith.index_cast %c4_i32_124 : i32 to index
    %c0_129 = arith.constant 0 : index
    %c0_130 = arith.constant 0 : index
    %401 = vector.load %arg9[%400, %c0_129, %c0_130] : memref<8x8x128xf32, #tpu.memory_space<vmem>>, vector<1x8x128xf32>
    %402 = vector.shape_cast %401 : vector<1x8x128xf32> to vector<8x128xf32>
    %403 = vector.shape_cast %399 : vector<8x128xf32> to vector<1x8x128xf32>
    tpu.vector_store %arg9[%400, %c0_129, %c0_130], %403 {strides = array<i32>} : memref<8x8x128xf32, #tpu.memory_space<vmem>>, vector<1x8x128xf32>,
    %c5_i32_131 = arith.constant 5 : i32
    %404 = arith.index_cast %c5_i32_131 : i32 to index
    %c0_132 = arith.constant 0 : index
    %c0_133 = arith.constant 0 : index
    %405 = vector.load %arg14[%404, %c0_132, %c0_133] : memref<8x8x512xbf16, #tpu.memory_space<vmem>>, vector<1x8x512xbf16>
    %406 = vector.shape_cast %405 : vector<1x8x512xbf16> to vector<8x512xbf16>
    %407 = arith.extf %406 : vector<8x512xbf16> to vector<8x512xf32>
    %408 = arith.truncf %399 : vector<8x128xf32> to vector<8x128xbf16>
    %cst_134 = arith.constant dense<0.000000e+00> : vector<8x512xf32>
    %409 = tpu.matmul %408, %264, %cst_134 {dimension_numbers = #tpu.dot_dimension_numbers<[1], [0], [0], [1], [0, 0, 1, 1], [], []>} : vector<8x128xbf16>, vector<128x512xbf16>, vector<8x512xf32> -> vector<8x512xf32>
    %410 = arith.addf %407, %409 : vector<8x512xf32>
    %411 = vector.extract_strided_slice %410 {offsets = [0, 0], sizes = [8, 384], strides = [1, 1]} : vector<8x512xf32> to vector<8x384xf32>
    %412 = arith.negf %411 : vector<8x384xf32>
    %413 = math.exp %412 : vector<8x384xf32>
    %cst_135 = arith.constant 1.000000e+00 : f32
    %414 = vector.broadcast %cst_135 : f32 to vector<8x384xf32>
    %415 = arith.addf %414, %413 : vector<8x384xf32>
    %416 = arith.divf %414, %415 : vector<8x384xf32>
    %417 = vector.extract_strided_slice %416 {offsets = [0, 0], sizes = [8, 128], strides = [1, 1]} : vector<8x384xf32> to vector<8x128xf32>
    %418 = vector.extract_strided_slice %416 {offsets = [0, 128], sizes = [8, 128], strides = [1, 1]} : vector<8x384xf32> to vector<8x128xf32>
    %419 = vector.extract_strided_slice %416 {offsets = [0, 256], sizes = [8, 128], strides = [1, 1]} : vector<8x384xf32> to vector<8x128xf32>
    %420 = vector.extract_strided_slice %410 {offsets = [0, 384], sizes = [8, 128], strides = [1, 1]} : vector<8x512xf32> to vector<8x128xf32>
    %421 = math.tanh %420 : vector<8x128xf32>
    %422 = arith.mulf %418, %397 : vector<8x128xf32>
    %423 = arith.mulf %417, %421 : vector<8x128xf32>
    %424 = arith.addf %422, %423 : vector<8x128xf32>
    %425 = math.tanh %424 : vector<8x128xf32>
    %426 = arith.mulf %419, %425 : vector<8x128xf32>
    %427 = arith.index_cast %c5_i32_131 : i32 to index
    %c0_136 = arith.constant 0 : index
    %c0_137 = arith.constant 0 : index
    %428 = vector.load %arg9[%427, %c0_136, %c0_137] : memref<8x8x128xf32, #tpu.memory_space<vmem>>, vector<1x8x128xf32>
    %429 = vector.shape_cast %428 : vector<1x8x128xf32> to vector<8x128xf32>
    %430 = vector.shape_cast %426 : vector<8x128xf32> to vector<1x8x128xf32>
    tpu.vector_store %arg9[%427, %c0_136, %c0_137], %430 {strides = array<i32>} : memref<8x8x128xf32, #tpu.memory_space<vmem>>, vector<1x8x128xf32>,
    %c6_i32_138 = arith.constant 6 : i32
    %431 = arith.index_cast %c6_i32_138 : i32 to index
    %c0_139 = arith.constant 0 : index
    %c0_140 = arith.constant 0 : index
    %432 = vector.load %arg14[%431, %c0_139, %c0_140] : memref<8x8x512xbf16, #tpu.memory_space<vmem>>, vector<1x8x512xbf16>
    %433 = vector.shape_cast %432 : vector<1x8x512xbf16> to vector<8x512xbf16>
    %434 = arith.extf %433 : vector<8x512xbf16> to vector<8x512xf32>
    %435 = arith.truncf %426 : vector<8x128xf32> to vector<8x128xbf16>
    %cst_141 = arith.constant dense<0.000000e+00> : vector<8x512xf32>
    %436 = tpu.matmul %435, %264, %cst_141 {dimension_numbers = #tpu.dot_dimension_numbers<[1], [0], [0], [1], [0, 0, 1, 1], [], []>} : vector<8x128xbf16>, vector<128x512xbf16>, vector<8x512xf32> -> vector<8x512xf32>
    %437 = arith.addf %434, %436 : vector<8x512xf32>
    %438 = vector.extract_strided_slice %437 {offsets = [0, 0], sizes = [8, 384], strides = [1, 1]} : vector<8x512xf32> to vector<8x384xf32>
    %439 = arith.negf %438 : vector<8x384xf32>
    %440 = math.exp %439 : vector<8x384xf32>
    %cst_142 = arith.constant 1.000000e+00 : f32
    %441 = vector.broadcast %cst_142 : f32 to vector<8x384xf32>
    %442 = arith.addf %441, %440 : vector<8x384xf32>
    %443 = arith.divf %441, %442 : vector<8x384xf32>
    %444 = vector.extract_strided_slice %443 {offsets = [0, 0], sizes = [8, 128], strides = [1, 1]} : vector<8x384xf32> to vector<8x128xf32>
    %445 = vector.extract_strided_slice %443 {offsets = [0, 128], sizes = [8, 128], strides = [1, 1]} : vector<8x384xf32> to vector<8x128xf32>
    %446 = vector.extract_strided_slice %443 {offsets = [0, 256], sizes = [8, 128], strides = [1, 1]} : vector<8x384xf32> to vector<8x128xf32>
    %447 = vector.extract_strided_slice %437 {offsets = [0, 384], sizes = [8, 128], strides = [1, 1]} : vector<8x512xf32> to vector<8x128xf32>
    %448 = math.tanh %447 : vector<8x128xf32>
    %449 = arith.mulf %445, %424 : vector<8x128xf32>
    %450 = arith.mulf %444, %448 : vector<8x128xf32>
    %451 = arith.addf %449, %450 : vector<8x128xf32>
    %452 = math.tanh %451 : vector<8x128xf32>
    %453 = arith.mulf %446, %452 : vector<8x128xf32>
    %454 = arith.index_cast %c6_i32_138 : i32 to index
    %c0_143 = arith.constant 0 : index
    %c0_144 = arith.constant 0 : index
    %455 = vector.load %arg9[%454, %c0_143, %c0_144] : memref<8x8x128xf32, #tpu.memory_space<vmem>>, vector<1x8x128xf32>
    %456 = vector.shape_cast %455 : vector<1x8x128xf32> to vector<8x128xf32>
    %457 = vector.shape_cast %453 : vector<8x128xf32> to vector<1x8x128xf32>
    tpu.vector_store %arg9[%454, %c0_143, %c0_144], %457 {strides = array<i32>} : memref<8x8x128xf32, #tpu.memory_space<vmem>>, vector<1x8x128xf32>,
    %c7_i32_145 = arith.constant 7 : i32
    %458 = arith.index_cast %c7_i32_145 : i32 to index
    %c0_146 = arith.constant 0 : index
    %c0_147 = arith.constant 0 : index
    %459 = vector.load %arg14[%458, %c0_146, %c0_147] : memref<8x8x512xbf16, #tpu.memory_space<vmem>>, vector<1x8x512xbf16>
    %460 = vector.shape_cast %459 : vector<1x8x512xbf16> to vector<8x512xbf16>
    %461 = arith.extf %460 : vector<8x512xbf16> to vector<8x512xf32>
    %462 = arith.truncf %453 : vector<8x128xf32> to vector<8x128xbf16>
    %cst_148 = arith.constant dense<0.000000e+00> : vector<8x512xf32>
    %463 = tpu.matmul %462, %264, %cst_148 {dimension_numbers = #tpu.dot_dimension_numbers<[1], [0], [0], [1], [0, 0, 1, 1], [], []>} : vector<8x128xbf16>, vector<128x512xbf16>, vector<8x512xf32> -> vector<8x512xf32>
    %464 = arith.addf %461, %463 : vector<8x512xf32>
    %465 = vector.extract_strided_slice %464 {offsets = [0, 0], sizes = [8, 384], strides = [1, 1]} : vector<8x512xf32> to vector<8x384xf32>
    %466 = arith.negf %465 : vector<8x384xf32>
    %467 = math.exp %466 : vector<8x384xf32>
    %cst_149 = arith.constant 1.000000e+00 : f32
    %468 = vector.broadcast %cst_149 : f32 to vector<8x384xf32>
    %469 = arith.addf %468, %467 : vector<8x384xf32>
    %470 = arith.divf %468, %469 : vector<8x384xf32>
    %471 = vector.extract_strided_slice %470 {offsets = [0, 0], sizes = [8, 128], strides = [1, 1]} : vector<8x384xf32> to vector<8x128xf32>
    %472 = vector.extract_strided_slice %470 {offsets = [0, 128], sizes = [8, 128], strides = [1, 1]} : vector<8x384xf32> to vector<8x128xf32>
    %473 = vector.extract_strided_slice %470 {offsets = [0, 256], sizes = [8, 128], strides = [1, 1]} : vector<8x384xf32> to vector<8x128xf32>
    %474 = vector.extract_strided_slice %464 {offsets = [0, 384], sizes = [8, 128], strides = [1, 1]} : vector<8x512xf32> to vector<8x128xf32>
    %475 = math.tanh %474 : vector<8x128xf32>
    %476 = arith.mulf %472, %451 : vector<8x128xf32>
    %477 = arith.mulf %471, %475 : vector<8x128xf32>
    %478 = arith.addf %476, %477 : vector<8x128xf32>
    %479 = math.tanh %478 : vector<8x128xf32>
    %480 = arith.mulf %473, %479 : vector<8x128xf32>
    %481 = arith.index_cast %c7_i32_145 : i32 to index
    %c0_150 = arith.constant 0 : index
    %c0_151 = arith.constant 0 : index
    %482 = vector.load %arg9[%481, %c0_150, %c0_151] : memref<8x8x128xf32, #tpu.memory_space<vmem>>, vector<1x8x128xf32>
    %483 = vector.shape_cast %482 : vector<1x8x128xf32> to vector<8x128xf32>
    %484 = vector.shape_cast %480 : vector<8x128xf32> to vector<1x8x128xf32>
    tpu.vector_store %arg9[%481, %c0_150, %c0_151], %484 {strides = array<i32>} : memref<8x8x128xf32, #tpu.memory_space<vmem>>, vector<1x8x128xf32>,
    %c8_i32_152 = arith.constant 8 : i32
    %c1_153 = arith.constant 1 : index
    %c0_154 = arith.constant 0 : index
    %c0_155 = arith.constant 0 : index
    %485 = vector.load %arg12[%c1_153, %c0_154, %c0_155] : memref<2x8x128xf32, #tpu.memory_space<vmem>>, vector<1x8x128xf32>
    %486 = vector.shape_cast %485 : vector<1x8x128xf32> to vector<8x128xf32>
    %487 = vector.shape_cast %480 : vector<8x128xf32> to vector<1x8x128xf32>
    tpu.vector_store %arg12[%c1_153, %c0_154, %c0_155], %487 {strides = array<i32>} : memref<2x8x128xf32, #tpu.memory_space<vmem>>, vector<1x8x128xf32>,
    %c1_156 = arith.constant 1 : index
    %c0_157 = arith.constant 0 : index
    %c0_158 = arith.constant 0 : index
    %488 = vector.load %arg13[%c1_156, %c0_157, %c0_158] : memref<2x8x128xf32, #tpu.memory_space<vmem>>, vector<1x8x128xf32>
    %489 = vector.shape_cast %488 : vector<1x8x128xf32> to vector<8x128xf32>
    %490 = vector.shape_cast %478 : vector<8x128xf32> to vector<1x8x128xf32>
    tpu.vector_store %arg13[%c1_156, %c0_157, %c0_158], %490 {strides = array<i32>} : memref<2x8x128xf32, #tpu.memory_space<vmem>>, vector<1x8x128xf32>,
    %c0_i32_159 = arith.constant 0 : i32
    %491 = arith.cmpi eq, %arg1, %c0_i32_159 : i32
    %492 = arith.extui %491 : i1 to i32
    %c0_i32_160 = arith.constant 0 : i32
    %493 = arith.cmpi ne, %492, %c0_i32_160 : i32
    scf.if %493 {
      %c0_161 = arith.constant 0 : index
      %c0_162 = arith.constant 0 : index
      %c0_163 = arith.constant 0 : index
      %494 = vector.load %arg12[%c0_161, %c0_162, %c0_163] : memref<2x8x128xf32, #tpu.memory_space<vmem>>, vector<2x8x128xf32>
      %c0_164 = arith.constant 0 : index
      %c0_165 = arith.constant 0 : index
      %c0_166 = arith.constant 0 : index
      %495 = vector.load %arg10[%c0_164, %c0_165, %c0_166] : memref<2x8x128xf32, #tpu.memory_space<vmem>>, vector<2x8x128xf32>
      tpu.vector_store %arg10[%c0_164, %c0_165, %c0_166], %494 {strides = array<i32>} : memref<2x8x128xf32, #tpu.memory_space<vmem>>, vector<2x8x128xf32>,
      %c0_167 = arith.constant 0 : index
      %c0_168 = arith.constant 0 : index
      %c0_169 = arith.constant 0 : index
      %496 = vector.load %arg13[%c0_167, %c0_168, %c0_169] : memref<2x8x128xf32, #tpu.memory_space<vmem>>, vector<2x8x128xf32>
      %c0_170 = arith.constant 0 : index
      %c0_171 = arith.constant 0 : index
      %c0_172 = arith.constant 0 : index
      %497 = vector.load %arg11[%c0_170, %c0_171, %c0_172] : memref<2x8x128xf32, #tpu.memory_space<vmem>>, vector<2x8x128xf32>
      tpu.vector_store %arg11[%c0_170, %c0_171, %c0_172], %496 {strides = array<i32>} : memref<2x8x128xf32, #tpu.memory_space<vmem>>, vector<2x8x128xf32>,
    } else {
    }
    return
  }
  func.func @transform_0(%arg0: i32, %arg1: i32) -> (i32, i32, i32) {
    %c0_i32 = arith.constant 0 : i32
    %c0_i32_0 = arith.constant 0 : i32
    return %arg1, %arg0, %c0_i32 : i32, i32, i32
  }
  func.func @transform_1(%arg0: i32, %arg1: i32) -> (i32, i32) {
    %c0_i32 = arith.constant 0 : i32
    %c0_i32_0 = arith.constant 0 : i32
    %c0_i32_1 = arith.constant 0 : i32
    return %c0_i32, %c0_i32_0 : i32, i32
  }
  func.func @transform_2(%arg0: i32, %arg1: i32) -> (i32, i32, i32) {
    %c0_i32 = arith.constant 0 : i32
    %c0_i32_0 = arith.constant 0 : i32
    %c0_i32_1 = arith.constant 0 : i32
    %c0_i32_2 = arith.constant 0 : i32
    return %c0_i32, %c0_i32_0, %c0_i32_1 : i32, i32, i32
  }
  func.func @transform_3(%arg0: i32, %arg1: i32) -> (i32, i32, i32) {
    %c0_i32 = arith.constant 0 : i32
    %c0_i32_0 = arith.constant 0 : i32
    %c0_i32_1 = arith.constant 0 : i32
    %c0_i32_2 = arith.constant 0 : i32
    return %c0_i32, %c0_i32_0, %c0_i32_1 : i32, i32, i32
  }
  func.func @transform_4(%arg0: i32, %arg1: i32) -> (i32, i32, i32) {
    %c0_i32 = arith.constant 0 : i32
    %c0_i32_0 = arith.constant 0 : i32
    %c0_i32_1 = arith.constant 0 : i32
    %c0_i32_2 = arith.constant 0 : i32
    return %c0_i32, %c0_i32_0, %c0_i32_1 : i32, i32, i32
  }
  func.func @transform_5(%arg0: i32, %arg1: i32) -> (i32, i32, i32) {
    %c0_i32 = arith.constant 0 : i32
    %c0_i32_0 = arith.constant 0 : i32
    %c0_i32_1 = arith.constant 0 : i32
    return %c0_i32, %arg0, %c0_i32_0 : i32, i32, i32
  }
  func.func @transform_6(%arg0: i32, %arg1: i32) -> (i32, i32, i32) {
    %c0_i32 = arith.constant 0 : i32
    %c0_i32_0 = arith.constant 0 : i32
    %c0_i32_1 = arith.constant 0 : i32
    return %c0_i32, %arg0, %c0_i32_0 : i32, i32, i32
  }
  func.func @transform_7(%arg0: i32, %arg1: i32) -> (i32, i32, i32) {
    %c0_i32 = arith.constant 0 : i32
    %c0_i32_0 = arith.constant 0 : i32
    return %arg1, %arg0, %c0_i32 : i32, i32, i32
  }
  func.func @transform_8(%arg0: i32, %arg1: i32) -> (i32, i32, i32) {
    %c0_i32 = arith.constant 0 : i32
    %c0_i32_0 = arith.constant 0 : i32
    %c0_i32_1 = arith.constant 0 : i32
    return %c0_i32, %arg0, %c0_i32_0 : i32, i32, i32
  }
  func.func @transform_9(%arg0: i32, %arg1: i32) -> (i32, i32, i32) {
    %c0_i32 = arith.constant 0 : i32
    %c0_i32_0 = arith.constant 0 : i32
    %c0_i32_1 = arith.constant 0 : i32
    return %c0_i32, %arg0, %c0_i32_0 : i32, i32, i32
  }
}

</mosaic_0001>

<bundles_post_ra>
// kernel: vestim_lstm_forward.1
= control target key start
LH: loop header
LB: loop body
LE: loop exit
PB: predicated region body
PF: predicated region fallthrough
CT: control target
= control target key end

     0   :  { %v61_v0 = vlaneseq  ;;  %v3977_v2 = vmov 1983009808   ;;  %v5711_v4 = vmov 0   ;;  %vm132_vm0 = vcmask 1041408   ;;  %s5697_s1 = inlined_call_operand.vmem [shape: bf16[4,512], index: 1, kind: input, shape index: {}]   ;;  %s5698_s3 = inlined_call_operand.vmem [shape: bf16[2,128,512], index: 3, kind: input, shape index: {}]   ;;  %s5699_s0 = inlined_call_operand.vmem [shape: f32[8,8,4], index: 0, kind: input, shape index: {}]   ;;  %s5700_s5 = inlined_call_operand.vmem [shape: f32[2,8,128], index: 5, kind: input, shape index: {}]   ;;  %s5701_s4 = inlined_call_operand.vmem [shape: f32[2,1,512], index: 4, kind: input, shape index: {}]   ;;  %s5702_s6 = inlined_call_operand.vmem [shape: f32[2,8,128], index: 6, kind: input, shape index: {}]   ;;  %s5703_s2 = inlined_call_operand.vmem [shape: bf16[1,128,512], index: 2, kind: input, shape index: {}]   ;;  %s5704_s9 = inlined_call_operand.vmem [shape: f32[2,8,128], index: 9, kind: output, shape index: {2}]   ;;  %s5705_s8 = inlined_call_operand.vmem [shape: f32[2,8,128], index: 8, kind: output, shape index: {1}]   ;;  %s5706_s7 = inlined_call_operand.vmem [shape: f32[8,8,128], index: 7, kind: output, shape index: {0}]  }
   0x1   :  { %v58_v1 = vld [vmem:[%s5697_s1] sm:$0xff]  ;;  %v104_v3 = vunpack.c.l.s4 %v3977_v2  ;;  %177 = vmatprep.mubr.bf16.mxu0 %v5711_v4  ;;  %250 = vmatprep.mubr.bf16.mxu1 %v5711_v4  ;;  %v43_v12 = vld [vmem:[%s5699_s0 + $0x8] sm:$0xff]  ;;  %vm119_vm1 = vcmask 31744   ;;  %v44_v26 = vld [vmem:[%s5699_s0 + $0x10] sm:$0xff] }
   0x2   :  { %v4034_v5 = vshrl.u32 %v61_v0, 7  ;;  %v102_v7 = vcombine.high %v58_v1, %v58_v1  ;;  %v42_v11 = vld [vmem:[%s5699_s0] sm:$0xff]  ;;  %v4051_v18 = vld [vmem:[%s5698_s3 + $0xc] ss:$16 sps:$4 sm:$0xff]   ;;  %v4061_v21 = vld [vmem:[%s5698_s3 + $0x8] ss:$16 sps:$4 sm:$0xff]  }
   0x3   :  { %v105_v6 = vunpack.c.0.s8 %v104_v3  ;;  %v4046_v13 = vld [vmem:[%s5698_s3 + $0x4] ss:$16 sps:$4 sm:$0xff]   ;;  %v3470_v19 = vpack.c.bf16 %v43_v12, %v42_v11  ;;  %v4056_v20 = vld [vmem:[%s5698_s3] ss:$16 sps:$4 sm:$0xff]   ;;  %v4073_v23 = vld [vmem:[%s5698_s3 + $0x2c] ss:$16 sps:$4 sm:$0xff]  }
   0x4   :  { %5726 = vst [vmem:[#allocation6_spill] sm:$0xff] %v4034_v5  ;;  %v4068_v22 = vld [vmem:[%s5698_s3 + $0x24] ss:$16 sps:$4 sm:$0xff]   ;;  %v4078_v24 = vld [vmem:[%s5698_s3 + $0x20] ss:$16 sps:$4 sm:$0xff]   ;;  %v45_v27 = vld [vmem:[%s5699_s0 + $0x18] sm:$0xff] }
   0x5   :  { %v108_v8 = vsub.s32 %v105_v6, %v4034_v5  ;;  %v4083_v25 = vld [vmem:[%s5698_s3 + $0x28] ss:$16 sps:$4 sm:$0xff]   ;;  %v4098_v28 = vld [vmem:[%s5698_s3 + $0x44] ss:$16 sps:$4 sm:$0xff]   ;;  %v4105_v29 = vld [vmem:[%s5698_s3 + $0x4c] ss:$16 sps:$4 sm:$0xff]   ;;  %v3471_v30 = vpack.c.bf16 %v45_v27, %v44_v26 }
   0x6   :  { %v4112_v31 = vld [vmem:[%s5698_s3 + $0x40] ss:$16 sps:$4 sm:$0xff]   ;;  %v4117_v32 = vld [vmem:[%s5698_s3 + $0x48] ss:$16 sps:$4 sm:$0xff]   ;;  %v4124_v33 = vld [vmem:[%s5698_s3 + $0x64] ss:$16 sps:$4 sm:$0xff]  }
   0x7   :  { %v109_v9 = vrot.slane %v58_v1, %v108_v8  ;;  %v116_v10 = vrot.slane %v102_v7, %v108_v8  ;;  %v4131_v34 = vld [vmem:[%s5698_s3 + $0x6c] ss:$16 sps:$4 sm:$0xff]   ;;  %v4136_v35 = vld [vmem:[%s5698_s3 + $0x60] ss:$16 sps:$4 sm:$0xff]   ;;  %v4143_v36 = vld [vmem:[%s5698_s3 + $0x68] ss:$16 sps:$4 sm:$0xff]  }
   0x8   :  { %v46_v37 = vld [vmem:[%s5699_s0 + $0x20] sm:$0xff]  ;;  %v47_v38 = vld [vmem:[%s5699_s0 + $0x28] sm:$0xff]  ;;  %v48_v48 = vld [vmem:[%s5699_s0 + $0x30] sm:$0xff]  ;;  %v5710_v61 = vsub.s32 0, %v4034_v5  ;;  %v5709_v62 = vsub.s32 2, %v4034_v5  ;;  %v5708_v0 = vsub.s32 1, %v4034_v5 }
   0x9   :  { %v117_v14 = vcombine.high %v109_v9, %v109_v9  ;;  %v118_v15 = vcombine.high %v116_v10, %v116_v10  ;;  %v134_v16 = vsel %vm132_vm0, %v109_v9, 0  ;;  %v140_v17 = vsel %vm132_vm0, %v116_v10, 0  ;;  %v4158_v39 = vld [vmem:[%s5698_s3 + $0x84] ss:$16 sps:$4 sm:$0xff]   ;;  %v4163_v40 = vld [vmem:[%s5698_s3 + $0x8c] ss:$16 sps:$4 sm:$0xff]  }
   0xa   :  { %v4170_v41 = vld [vmem:[%s5698_s3 + $0x80] ss:$16 sps:$4 sm:$0xff]   ;;  %v4175_v42 = vld [vmem:[%s5698_s3 + $0x88] ss:$16 sps:$4 sm:$0xff]   ;;  %v3472_v43 = vpack.c.bf16 %v47_v38, %v46_v37  ;;  %v4180_v44 = vld [vmem:[%s5698_s3 + $0xa4] ss:$16 sps:$4 sm:$0xff]  }
   0xb   :  { %3240 = vmatprep.subr.msk.bf16.mxu0 %vm132_vm0, %v117_v14  ;;  %3245 = vmatprep.subr.msk.bf16.mxu1 %vm132_vm0, %v118_v15  ;;  %v4185_v45 = vld [vmem:[%s5698_s3 + $0xac] ss:$16 sps:$4 sm:$0xff]   ;;  %v4194_v46 = vld [vmem:[%s5698_s3 + $0xa0] ss:$16 sps:$4 sm:$0xff]   ;;  %v4199_v47 = vld [vmem:[%s5698_s3 + $0xa8] ss:$16 sps:$4 sm:$0xff]  }
   0xc   :  { %146 = vmatpush1.bf16.msra.mxu0 %v134_v16  ;;  %219 = vmatpush1.bf16.msra.mxu1 %v140_v17  ;;  %v49_v49 = vld [vmem:[%s5699_s0 + $0x38] sm:$0xff]  ;;  %v4212_v50 = vld [vmem:[%s5698_s3 + $0xc4] ss:$16 sps:$4 sm:$0xff]   ;;  %v4228_v52 = vld [vmem:[%s5698_s3 + $0xc0] ss:$16 sps:$4 sm:$0xff]   ;;  %v5707_v1 = vsub.s32 3, %v4034_v5 }
   0xd   :  { %604 = vmatprep.subr.bf16.mxu0 %v4046_v13  ;;  %645 = vmatprep.subr.bf16.mxu1 %v4051_v18  ;;  %v4217_v51 = vld [vmem:[%s5698_s3 + $0xcc] ss:$16 sps:$4 sm:$0xff]   ;;  %v3473_v53 = vpack.c.bf16 %v49_v49, %v48_v48  ;;  %v4235_v54 = vld [vmem:[%s5698_s3 + $0xc8] ss:$16 sps:$4 sm:$0xff]   ;;  %v4242_v55 = vld [vmem:[%s5698_s3 + $0xe4] ss:$16 sps:$4 sm:$0xff]  }
   0xe   :  { %v4247_v56 = vld [vmem:[%s5698_s3 + $0xec] ss:$16 sps:$4 sm:$0xff]   ;;  %v4256_v57 = vld [vmem:[%s5698_s3 + $0xe0] ss:$16 sps:$4 sm:$0xff]   ;;  %v4261_v58 = vld [vmem:[%s5698_s3 + $0xe8] ss:$16 sps:$4 sm:$0xff]  }
   0xf   :  { %3241 = vmatmul.mubr.msk.bf16.vlgmr.msra.gmra.mrb[0].mxu0 %vm119_vm1, %v3470_v19  ;;  %3246 = vmatmul.mubr.msk.bf16.vlgmr.msra.gmra.mrb[0].mxu1 %vm119_vm1, %v3470_v19  ;;  %v34_v59 = vld [vmem:[%s5700_s5] sm:$0xff] }
  0x10   :  { %605 = vmatpush1.bf16.msra.mxu0 %v4056_v20  ;;  %646 = vmatpush1.bf16.msra.mxu1 %v4061_v21  ;;  %v443_v60 = vpack.c.bf16 %v34_v59, %v34_v59  ;;  %v59_v63 = vld [vmem:[%s5701_s4] sm:$0xf] }
  0x11   :  { %606 = vmatprep.subr.bf16.mxu0 %v4068_v22  ;;  %647 = vmatprep.subr.bf16.mxu1 %v4073_v23  ;;  %v4317_v2 = vrot.slane %v59_v63, %v5710_v61  ;;  %v4321_v3 = vrot.slane %v59_v63, %v5709_v62  ;;  %v4325_v6 = vrot.slane %v59_v63, %v5708_v0 }
  0x12   :  { %187 = vmatprep.mubr.bf16.mxu0 %v5711_v4  ;;  %260 = vmatprep.mubr.bf16.mxu1 %v5711_v4  ;;  %v4329_v7 = vrot.slane %v59_v63, %v5707_v1 }
  0x14   :  { %607 = vmatpush1.bf16.msra.mxu0 %v4078_v24  ;;  %648 = vmatpush1.bf16.msra.mxu1 %v4083_v25 }
  0x15   :  { %608 = vmatprep.subr.bf16.mxu0 %v4098_v28  ;;  %649 = vmatprep.subr.bf16.mxu1 %v4105_v29 }
  0x17   :  { %3242 = vmatmul.mubr.msk.bf16.gmra.mrb[4].mxu0 %vm119_vm1, %v3471_v30  ;;  %3247 = vmatmul.mubr.msk.bf16.gmra.mrb[4].mxu1 %vm119_vm1, %v3471_v30 }
  0x18   :  { %609 = vmatpush1.bf16.msra.mxu0 %v4112_v31  ;;  %650 = vmatpush1.bf16.msra.mxu1 %v4117_v32 }
  0x19   :  { %610 = vmatprep.subr.bf16.mxu0 %v4124_v33  ;;  %651 = vmatprep.subr.bf16.mxu1 %v4131_v34 }
  0x1a   :  { %197 = vmatprep.mubr.bf16.mxu0 %v5711_v4  ;;  %270 = vmatprep.mubr.bf16.mxu1 %v5711_v4 }
  0x1c   :  { %611 = vmatpush1.bf16.msra.mxu0 %v4136_v35  ;;  %652 = vmatpush1.bf16.msra.mxu1 %v4143_v36 }
  0x1d   :  { %612 = vmatprep.subr.bf16.mxu0 %v4158_v39  ;;  %653 = vmatprep.subr.bf16.mxu1 %v4163_v40 }
  0x1f   :  { %3243 = vmatmul.mubr.msk.bf16.gmra.mrb[8].mxu0 %vm119_vm1, %v3472_v43  ;;  %3248 = vmatmul.mubr.msk.bf16.gmra.mrb[8].mxu1 %vm119_vm1, %v3472_v43 }
  0x20   :  { %613 = vmatpush1.bf16.msra.mxu0 %v4170_v41  ;;  %654 = vmatpush1.bf16.msra.mxu1 %v4175_v42 }
  0x21   :  { %614 = vmatprep.subr.bf16.mxu0 %v4180_v44  ;;  %655 = vmatprep.subr.bf16.mxu1 %v4185_v45 }
  0x22   :  { %207 = vmatprep.mubr.bf16.mxu0 %v5711_v4  ;;  %280 = vmatprep.mubr.bf16.mxu1 %v5711_v4 }
  0x24   :  { %615 = vmatpush1.bf16.msra.mxu0 %v4194_v46  ;;  %656 = vmatpush1.bf16.msra.mxu1 %v4199_v47 }
  0x25   :  { %616 = vmatprep.subr.bf16.mxu0 %v4212_v50  ;;  %657 = vmatprep.subr.bf16.mxu1 %v4217_v51 }
  0x27   :  { %3244 = vmatmul.mubr.msk.bf16.gmra.mrb[12].mxu0 %vm119_vm1, %v3473_v53  ;;  %3249 = vmatmul.mubr.msk.bf16.gmra.mrb[12].mxu1 %vm119_vm1, %v3473_v53 }
  0x28   :  { %617 = vmatpush1.bf16.msra.mxu0 %v4228_v52  ;;  %658 = vmatpush1.bf16.msra.mxu1 %v4235_v54 }
  0x29   :  { %618 = vmatprep.subr.bf16.mxu0 %v4242_v55  ;;  %659 = vmatprep.subr.bf16.mxu1 %v4247_v56 }
  0x2a   :  { %636 = vmatprep.mubr.bf16.mxu0 %v5711_v4  ;;  %677 = vmatprep.mubr.bf16.mxu1 %v5711_v4 }
  0x2c   :  { %619 = vmatpush1.bf16.msra.mxu0 %v4256_v57  ;;  %660 = vmatpush1.bf16.msra.mxu1 %v4261_v58 }
  0x2d   :  { %723 = vmatprep.subr.bf16.mxu0 %v4046_v13  ;;  %764 = vmatprep.subr.bf16.mxu1 %v4051_v18 }
  0x2f   :  { %637 = vmatmul.mubr.bf16.vlgmr.msra.gmra.mrb[16].mxu0 %v443_v60  ;;  %678 = vmatmul.mubr.bf16.vlgmr.msra.gmra.mrb[16].mxu1 %v443_v60 }
  0x30   :  { %724 = vmatpush1.bf16.msra.mxu0 %v4056_v20  ;;  %765 = vmatpush1.bf16.msra.mxu1 %v4061_v21 }
  0x31   :  { %725 = vmatprep.subr.bf16.mxu0 %v4068_v22  ;;  %766 = vmatprep.subr.bf16.mxu1 %v4073_v23 }
  0x32   :  { %755 = vmatprep.mubr.bf16.mxu0 %v5711_v4  ;;  %796 = vmatprep.mubr.bf16.mxu1 %v5711_v4 }
  0x34   :  { %726 = vmatpush1.bf16.msra.mxu0 %v4078_v24  ;;  %767 = vmatpush1.bf16.msra.mxu1 %v4083_v25 }
  0x35   :  { %727 = vmatprep.subr.bf16.mxu0 %v4098_v28  ;;  %768 = vmatprep.subr.bf16.mxu1 %v4105_v29 }
  0x38   :  { %728 = vmatpush1.bf16.msra.mxu0 %v4112_v31  ;;  %769 = vmatpush1.bf16.msra.mxu1 %v4117_v32 }
  0x39   :  { %729 = vmatprep.subr.bf16.mxu0 %v4124_v33  ;;  %770 = vmatprep.subr.bf16.mxu1 %v4131_v34 }
  0x3c   :  { %730 = vmatpush1.bf16.msra.mxu0 %v4136_v35  ;;  %771 = vmatpush1.bf16.msra.mxu1 %v4143_v36 }
  0x3d   :  { %731 = vmatprep.subr.bf16.mxu0 %v4158_v39  ;;  %772 = vmatprep.subr.bf16.mxu1 %v4163_v40 }
  0x40   :  { %732 = vmatpush1.bf16.msra.mxu0 %v4170_v41  ;;  %773 = vmatpush1.bf16.msra.mxu1 %v4175_v42 }
  0x41   :  { %733 = vmatprep.subr.bf16.mxu0 %v4180_v44  ;;  %774 = vmatprep.subr.bf16.mxu1 %v4185_v45 }
  0x44   :  { %734 = vmatpush1.bf16.msra.mxu0 %v4194_v46  ;;  %775 = vmatpush1.bf16.msra.mxu1 %v4199_v47 }
  0x45   :  { %735 = vmatprep.subr.bf16.mxu0 %v4212_v50  ;;  %776 = vmatprep.subr.bf16.mxu1 %v4217_v51 }
  0x48   :  { %736 = vmatpush1.bf16.msra.mxu0 %v4228_v52  ;;  %777 = vmatpush1.bf16.msra.mxu1 %v4235_v54 }
  0x49   :  { %737 = vmatprep.subr.bf16.mxu0 %v4242_v55  ;;  %778 = vmatprep.subr.bf16.mxu1 %v4247_v56 }
  0x4c   :  { %738 = vmatpush1.bf16.msra.mxu0 %v4256_v57  ;;  %779 = vmatpush1.bf16.msra.mxu1 %v4261_v58 }
  0x4d   :  { %843 = vmatprep.subr.bf16.mxu0 %v4046_v13  ;;  %884 = vmatprep.subr.bf16.mxu1 %v4051_v18 }
  0xe2   :  { %v179_v8 = vpop.f32.mrb[0].mxu0  ;;  %v252_v9 = vpop.f32.mrb[0].mxu1 }
  0xe3   :  { %v180_v10 = vadd.f32 %v179_v8, %v4317_v2  ;;  %v181_v11 = vpop.f32.mrb[1].mxu0  ;;  %v253_v12 = vadd.f32 %v252_v9, %v4321_v3  ;;  %v254_v14 = vpop.f32.mrb[1].mxu1 }
  0xe4   :  { %v182_v15 = vadd.f32 %v181_v11, %v4325_v6  ;;  %v183_v16 = vpop.f32.mrb[2].mxu0  ;;  %v255_v17 = vadd.f32 %v254_v14, %v4329_v7  ;;  %v256_v19 = vpop.f32.mrb[2].mxu1 }
  0xe5   :  { %v184_v26 = vadd.f32 %v183_v16, %v4317_v2  ;;  %v185_v27 = vpop.f32.mrb[3].mxu0  ;;  %v257_v30 = vadd.f32 %v256_v19, %v4321_v3  ;;  %v258_v37 = vpop.f32.mrb[3].mxu1 }
  0xe6   :  { %v4337_v38 = vpack.c.bf16 %v182_v15, %v180_v10  ;;  %v186_v43 = vadd.f32 %v185_v27, %v4325_v6  ;;  %v4340_v48 = vpack.c.bf16 %v255_v17, %v253_v12  ;;  %v259_v49 = vadd.f32 %v258_v37, %v4329_v7 }
  0xe8   :  { %v4343_v53 = vpack.c.bf16 %v186_v43, %v184_v26  ;;  %v4345_v59 = vpack.c.bf16 %v259_v49, %v257_v30 }
  0xea   :  { %v189_v60 = vpop.f32.mrb[4].mxu0  ;;  %v262_v63 = vpop.f32.mrb[4].mxu1 }
  0xeb   :  { %v190_v8 = vadd.f32 %v189_v60, %v4317_v2  ;;  %v191_v9 = vpop.f32.mrb[5].mxu0  ;;  %v263_v11 = vadd.f32 %v262_v63, %v4321_v3  ;;  %v264_v14 = vpop.f32.mrb[5].mxu1 }
  0xec   :  { %v192_v10 = vadd.f32 %v191_v9, %v4325_v6  ;;  %v193_v15 = vpop.f32.mrb[6].mxu0  ;;  %v265_v12 = vadd.f32 %v264_v14, %v4329_v7  ;;  %v266_v16 = vpop.f32.mrb[6].mxu1 }
  0xed   :  { %v194_v17 = vadd.f32 %v193_v15, %v4317_v2  ;;  %v195_v19 = vpop.f32.mrb[7].mxu0  ;;  %v267_v26 = vadd.f32 %v266_v16, %v4321_v3  ;;  %v268_v27 = vpop.f32.mrb[7].mxu1 }
  0xee   :  { %v4353_v30 = vpack.c.bf16 %v192_v10, %v190_v8  ;;  %v196_v37 = vadd.f32 %v195_v19, %v4325_v6  ;;  %v4356_v43 = vpack.c.bf16 %v265_v12, %v263_v11  ;;  %v269_v49 = vadd.f32 %v268_v27, %v4329_v7 }
  0xf0   :  { %v4359_v60 = vpack.c.bf16 %v196_v37, %v194_v17  ;;  %v4361_v63 = vpack.c.bf16 %v269_v49, %v267_v26 }
  0xf2   :  { %v199_v9 = vpop.f32.mrb[8].mxu0  ;;  %v272_v14 = vpop.f32.mrb[8].mxu1 }
  0xf3   :  { %v200_v15 = vadd.f32 %v199_v9, %v4317_v2  ;;  %v201_v1 = vpop.f32.mrb[9].mxu0  ;;  %v273_v16 = vadd.f32 %v272_v14, %v4321_v3  ;;  %v274_v0 = vpop.f32.mrb[9].mxu1 }
  0xf4   :  { %v202_v8 = vadd.f32 %v201_v1, %v4325_v6  ;;  %v203_v10 = vpop.f32.mrb[10].mxu0  ;;  %v275_v11 = vadd.f32 %v274_v0, %v4329_v7  ;;  %v276_v12 = vpop.f32.mrb[10].mxu1 }
  0xf5   :  { %v204_v19 = vadd.f32 %v203_v10, %v4317_v2  ;;  %v205_v17 = vpop.f32.mrb[11].mxu0  ;;  %v277_v26 = vadd.f32 %v276_v12, %v4321_v3  ;;  %v278_v27 = vpop.f32.mrb[11].mxu1 }
  0xf6   :  { %v4369_v37 = vpack.c.bf16 %v202_v8, %v200_v15  ;;  %v206_v49 = vadd.f32 %v205_v17, %v4325_v6  ;;  %v4372_v9 = vpack.c.bf16 %v275_v11, %v273_v16  ;;  %v279_v14 = vadd.f32 %v278_v27, %v4329_v7 }
  0xf8   :  { %v4375_v62 = vpack.c.bf16 %v206_v49, %v204_v19  ;;  %v4377_v1 = vpack.c.bf16 %v279_v14, %v277_v26 }
  0xfa   :  { %5727 = vst [vmem:[#allocation7_spill] sm:$0xff] %v4375_v62  ;;  %5728 = vst [vmem:[#allocation8_spill] sm:$0xff] %v4377_v1  ;;  %v209_v0 = vpop.f32.mrb[12].mxu0  ;;  %v282_v61 = vpop.f32.mrb[12].mxu1 }
  0xfb   :  { %v210_v10 = vadd.f32 %v209_v0, %v4317_v2  ;;  %v211_v4 = vpop.f32.mrb[13].mxu0  ;;  %v283_v12 = vadd.f32 %v282_v61, %v4321_v3  ;;  %v284_v5 = vpop.f32.mrb[13].mxu1 }
  0xfc   :  { %v212_v15 = vadd.f32 %v211_v4, %v4325_v6  ;;  %v213_v8 = vpop.f32.mrb[14].mxu0  ;;  %v285_v16 = vadd.f32 %v284_v5, %v4329_v7  ;;  %v286_v11 = vpop.f32.mrb[14].mxu1  ;;  %v439_v5 = vunpack.c.l.bf16 %v4337_v38 }
  0xfd   :  { %v214_v17 = vadd.f32 %v213_v8, %v4317_v2  ;;  %v215_v19 = vpop.f32.mrb[15].mxu0  ;;  %v287_v26 = vadd.f32 %v286_v11, %v4321_v3  ;;  %v288_v27 = vpop.f32.mrb[15].mxu1  ;;  %v441_v2 = vunpack.c.l.bf16 %v4340_v48  ;;  %v440_v3 = vunpack.c.h.bf16 %v4337_v38 }
  0xfe   :  { %v4385_v49 = vpack.c.bf16 %v212_v15, %v210_v10  ;;  %v216_v14 = vadd.f32 %v215_v19, %v4325_v6  ;;  %v4388_v0 = vpack.c.bf16 %v285_v16, %v283_v12  ;;  %v289_v61 = vadd.f32 %v288_v27, %v4329_v7 }
  0xff   :  { %v442_v10 = vunpack.c.h.bf16 %v4340_v48 }
 0x100   :  { %5729 = vst [vmem:[#allocation9_spill] sm:$0xff] %v4388_v0  ;;  %v4391_v1 = vpack.c.bf16 %v216_v14, %v214_v17  ;;  %v4393_v4 = vpack.c.bf16 %v289_v61, %v287_v26 }
 0x102   :  { %5730 = vst [vmem:[#allocation10_spill] sm:$0xff] %v4391_v1  ;;  %5731 = vst [vmem:[#allocation11_spill] sm:$0xff] %v4393_v4  ;;  %v638_v8 = vpop.f32.mrb[16].mxu0  ;;  %v679_v62 = vpop.f32.mrb[16].mxu1 }
 0x103   :  { %v686_v15 = vadd.f32 %v638_v8, %v439_v5  ;;  %v688_v6 = vadd.f32 %v679_v62, %v441_v2  ;;  %v640_v12 = vpop.f32.mrb[17].mxu0  ;;  %v681_v16 = vpop.f32.mrb[17].mxu1  ;;  %v38_v8 = vld [vmem:[%s5702_s6] sm:$0xff] }
 0x104   :  { %v687_v11 = vadd.f32 %v640_v12, %v440_v3  ;;  %v689_v7 = vadd.f32 %v681_v16, %v442_v10  ;;  %v642_v17 = vpop.f32.mrb[18].mxu0  ;;  %v683_v19 = vpop.f32.mrb[18].mxu1 }
 0x105   :  { %v3298_v26 = vmul.f32 -1.442695, %v686_v15  ;;  %v643_v27 = vpop.f32.mrb[19].mxu0  ;;  %v684_v14 = vpop.f32.mrb[19].mxu1  ;;  %v3300_v4 = vmul.f32 -1.442695, %v688_v6  ;;  %v721_v17 = vunpack.c.l.bf16 %v4345_v59 }
 0x106   :  { %v3299_v61 = vmul.f32 -1.442695, %v687_v11  ;;  %v5732_v11 = vmov 0   ;;  %v720_v27 = vunpack.c.h.bf16 %v4343_v53  ;;  %v722_v14 = vunpack.c.h.bf16 %v4345_v59 }
 0x107   :  { %3657 = vpow2.f32 %v3298_v26 }
 0x108   :  { %3659 = vpow2.f32 %v3299_v61 }
 0x109   :  { %3661 = vtanh.f32 %v689_v7  ;;  %v719_v7 = vunpack.c.l.bf16 %v4343_v53 }
 0x10a   :  { %3663 = vpow2.f32 %v3300_v4 }
 0x111   :  { %v3658_v1 = vpop.eup %3657 }
 0x112   :  { %v699_v0 = vadd.f32 1.0, %v3658_v1  ;;  %v3660_v38 = vpop.eup %3659 }
 0x113   :  { %v700_v62 = vadd.f32 1.0, %v3660_v38  ;;  %v3662_v48 = vpop.eup %3661 }
 0x114   :  { %3665 = vrcp.f32 %v699_v0  ;;  %v3664_v5 = vpop.eup %3663 }
 0x115   :  { %3667 = vrcp.f32 %v700_v62  ;;  %v701_v15 = vadd.f32 1.0, %v3664_v5 }
 0x117   :  { %3669 = vrcp.f32 %v701_v15 }
 0x11e   :  { %v3666_v2 = vpop.eup %3665 }
 0x11f   :  { %v710_v3 = vmul.f32 %v3666_v2, %v3662_v48  ;;  %v3668_v10 = vpop.eup %3667 }
 0x120   :  { %v709_v12 = vmul.f32 %v3668_v10, %v38_v8 }
 0x121   :  { %v3670_v1 = vpop.eup %3669 }
 0x122   :  { %v4402_v6 = vadd.f32 %v710_v3, %v709_v12 }
 0x124   :  { %3671 = vtanh.f32 %v4402_v6 }
 0x12e   :  { %v3672_v0 = vpop.eup %3671 }
 0x12f   :  { %v713_v4 = vmul.f32 %v3672_v0, %v3670_v1 }
 0x131   :  { %v714_v16 = vpack.c.bf16 %v713_v4, %v713_v4 }
 0x133   :  { %715 = vst [vmem:[#allocation5] sm:$0xf] %v714_v16  ;;  %756 = vmatmul.mubr.bf16.vlgmr.msra.gmra.mrb[20].mxu0 %v714_v16  ;;  %797 = vmatmul.mubr.bf16.vlgmr.msra.gmra.mrb[20].mxu1 %v714_v16 }
 0x134   :  { %844 = vmatpush1.bf16.msra.mxu0 %v4056_v20  ;;  %885 = vmatpush1.bf16.msra.mxu1 %v4061_v21 }
 0x135   :  { %845 = vmatprep.subr.bf16.mxu0 %v4068_v22  ;;  %886 = vmatprep.subr.bf16.mxu1 %v4073_v23 }
 0x136   :  { %875 = vmatprep.mubr.bf16.mxu0 %v5732_v11  ;;  %916 = vmatprep.mubr.bf16.mxu1 %v5732_v11 }
 0x138   :  { %846 = vmatpush1.bf16.msra.mxu0 %v4078_v24  ;;  %887 = vmatpush1.bf16.msra.mxu1 %v4083_v25 }
 0x139   :  { %847 = vmatprep.subr.bf16.mxu0 %v4098_v28  ;;  %888 = vmatprep.subr.bf16.mxu1 %v4105_v29 }
 0x13c   :  { %848 = vmatpush1.bf16.msra.mxu0 %v4112_v31  ;;  %889 = vmatpush1.bf16.msra.mxu1 %v4117_v32 }
 0x13d   :  { %849 = vmatprep.subr.bf16.mxu0 %v4124_v33  ;;  %890 = vmatprep.subr.bf16.mxu1 %v4131_v34 }
 0x140   :  { %850 = vmatpush1.bf16.msra.mxu0 %v4136_v35  ;;  %891 = vmatpush1.bf16.msra.mxu1 %v4143_v36 }
 0x141   :  { %851 = vmatprep.subr.bf16.mxu0 %v4158_v39  ;;  %892 = vmatprep.subr.bf16.mxu1 %v4163_v40 }
 0x144   :  { %852 = vmatpush1.bf16.msra.mxu0 %v4170_v41  ;;  %893 = vmatpush1.bf16.msra.mxu1 %v4175_v42 }
 0x145   :  { %853 = vmatprep.subr.bf16.mxu0 %v4180_v44  ;;  %894 = vmatprep.subr.bf16.mxu1 %v4185_v45 }
 0x148   :  { %854 = vmatpush1.bf16.msra.mxu0 %v4194_v46  ;;  %895 = vmatpush1.bf16.msra.mxu1 %v4199_v47 }
 0x149   :  { %855 = vmatprep.subr.bf16.mxu0 %v4212_v50  ;;  %896 = vmatprep.subr.bf16.mxu1 %v4217_v51 }
 0x14c   :  { %856 = vmatpush1.bf16.msra.mxu0 %v4228_v52  ;;  %897 = vmatpush1.bf16.msra.mxu1 %v4235_v54 }
 0x14d   :  { %857 = vmatprep.subr.bf16.mxu0 %v4242_v55  ;;  %898 = vmatprep.subr.bf16.mxu1 %v4247_v56 }
 0x150   :  { %858 = vmatpush1.bf16.msra.mxu0 %v4256_v57  ;;  %899 = vmatpush1.bf16.msra.mxu1 %v4261_v58 }
 0x151   :  { %963 = vmatprep.subr.bf16.mxu0 %v4046_v13  ;;  %1004 = vmatprep.subr.bf16.mxu1 %v4051_v18 }
 0x206   :  { %v757_v19 = vpop.f32.mrb[20].mxu0  ;;  %v798_v26 = vpop.f32.mrb[20].mxu1 }
 0x207   :  { %v805_v61 = vadd.f32 %v757_v19, %v719_v7  ;;  %v807_v38 = vadd.f32 %v798_v26, %v721_v17  ;;  %v759_v62 = vpop.f32.mrb[21].mxu0  ;;  %v800_v48 = vpop.f32.mrb[21].mxu1 }
 0x208   :  { %v806_v5 = vadd.f32 %v759_v62, %v720_v27  ;;  %v808_v2 = vadd.f32 %v800_v48, %v722_v14  ;;  %v761_v8 = vpop.f32.mrb[22].mxu0  ;;  %v802_v3 = vpop.f32.mrb[22].mxu1 }
 0x209   :  { %v3301_v10 = vmul.f32 -1.442695, %v805_v61  ;;  %v762_v15 = vpop.f32.mrb[23].mxu0  ;;  %v803_v12 = vpop.f32.mrb[23].mxu1  ;;  %v3303_v0 = vmul.f32 -1.442695, %v807_v38  ;;  %v841_v8 = vunpack.c.l.bf16 %v4356_v43 }
 0x20a   :  { %v3302_v1 = vmul.f32 -1.442695, %v806_v5  ;;  %v840_v15 = vunpack.c.h.bf16 %v4353_v30  ;;  %v842_v12 = vunpack.c.h.bf16 %v4356_v43 }
 0x20b   :  { %3673 = vpow2.f32 %v3301_v10 }
 0x20c   :  { %3675 = vpow2.f32 %v3302_v1 }
 0x20d   :  { %3677 = vtanh.f32 %v808_v2 }
 0x20e   :  { %3679 = vpow2.f32 %v3303_v0 }
 0x215   :  { %v3674_v4 = vpop.eup %3673 }
 0x216   :  { %v818_v16 = vadd.f32 1.0, %v3674_v4  ;;  %v3676_v53 = vpop.eup %3675 }
 0x217   :  { %v819_v59 = vadd.f32 1.0, %v3676_v53  ;;  %v3678_v7 = vpop.eup %3677 }
 0x218   :  { %3681 = vrcp.f32 %v818_v16  ;;  %v3680_v17 = vpop.eup %3679 }
 0x219   :  { %3683 = vrcp.f32 %v819_v59  ;;  %v820_v14 = vadd.f32 1.0, %v3680_v17 }
 0x21b   :  { %3685 = vrcp.f32 %v820_v14 }
 0x222   :  { %v3682_v19 = vpop.eup %3681 }
 0x223   :  { %v829_v26 = vmul.f32 %v3682_v19, %v3678_v7  ;;  %v3684_v27 = vpop.eup %3683 }
 0x224   :  { %v828_v61 = vmul.f32 %v3684_v27, %v4402_v6  ;;  %v839_v6 = vunpack.c.l.bf16 %v4353_v30 }
 0x225   :  { %v3686_v38 = vpop.eup %3685 }
 0x226   :  { %v4444_v62 = vadd.f32 %v829_v26, %v828_v61 }
 0x228   :  { %3687 = vtanh.f32 %v4444_v62 }
 0x232   :  { %v3688_v48 = vpop.eup %3687 }
 0x233   :  { %v832_v5 = vmul.f32 %v3688_v48, %v3686_v38 }
 0x235   :  { %v833_v2 = vpack.c.bf16 %v832_v5, %v832_v5 }
 0x237   :  { %835 = vst [vmem:[#allocation5 + $0x4] sm:$0xf] %v833_v2  ;;  %876 = vmatmul.mubr.bf16.vlgmr.msra.gmra.mrb[24].mxu0 %v833_v2  ;;  %917 = vmatmul.mubr.bf16.vlgmr.msra.gmra.mrb[24].mxu1 %v833_v2 }
 0x238   :  { %964 = vmatpush1.bf16.msra.mxu0 %v4056_v20  ;;  %1005 = vmatpush1.bf16.msra.mxu1 %v4061_v21 }
 0x239   :  { %965 = vmatprep.subr.bf16.mxu0 %v4068_v22  ;;  %1006 = vmatprep.subr.bf16.mxu1 %v4073_v23 }
 0x23a   :  { %995 = vmatprep.mubr.bf16.mxu0 %v5732_v11  ;;  %1036 = vmatprep.mubr.bf16.mxu1 %v5732_v11 }
 0x23c   :  { %966 = vmatpush1.bf16.msra.mxu0 %v4078_v24  ;;  %1007 = vmatpush1.bf16.msra.mxu1 %v4083_v25 }
 0x23d   :  { %967 = vmatprep.subr.bf16.mxu0 %v4098_v28  ;;  %1008 = vmatprep.subr.bf16.mxu1 %v4105_v29 }
 0x240   :  { %968 = vmatpush1.bf16.msra.mxu0 %v4112_v31  ;;  %1009 = vmatpush1.bf16.msra.mxu1 %v4117_v32 }
 0x241   :  { %969 = vmatprep.subr.bf16.mxu0 %v4124_v33  ;;  %1010 = vmatprep.subr.bf16.mxu1 %v4131_v34 }
 0x244   :  { %970 = vmatpush1.bf16.msra.mxu0 %v4136_v35  ;;  %1011 = vmatpush1.bf16.msra.mxu1 %v4143_v36 }
 0x245   :  { %971 = vmatprep.subr.bf16.mxu0 %v4158_v39  ;;  %1012 = vmatprep.subr.bf16.mxu1 %v4163_v40 }
 0x248   :  { %972 = vmatpush1.bf16.msra.mxu0 %v4170_v41  ;;  %1013 = vmatpush1.bf16.msra.mxu1 %v4175_v42 }
 0x249   :  { %973 = vmatprep.subr.bf16.mxu0 %v4180_v44  ;;  %1014 = vmatprep.subr.bf16.mxu1 %v4185_v45 }
 0x24c   :  { %974 = vmatpush1.bf16.msra.mxu0 %v4194_v46  ;;  %1015 = vmatpush1.bf16.msra.mxu1 %v4199_v47 }
 0x24d   :  { %975 = vmatprep.subr.bf16.mxu0 %v4212_v50  ;;  %1016 = vmatprep.subr.bf16.mxu1 %v4217_v51 }
 0x250   :  { %976 = vmatpush1.bf16.msra.mxu0 %v4228_v52  ;;  %1017 = vmatpush1.bf16.msra.mxu1 %v4235_v54 }
 0x251   :  { %977 = vmatprep.subr.bf16.mxu0 %v4242_v55  ;;  %1018 = vmatprep.subr.bf16.mxu1 %v4247_v56 }
 0x254   :  { %978 = vmatpush1.bf16.msra.mxu0 %v4256_v57  ;;  %1019 = vmatpush1.bf16.msra.mxu1 %v4261_v58 }
 0x255   :  { %1083 = vmatprep.subr.bf16.mxu0 %v4046_v13  ;;  %1124 = vmatprep.subr.bf16.mxu1 %v4051_v18 }
 0x30a   :  { %v877_v3 = vpop.f32.mrb[24].mxu0  ;;  %v918_v10 = vpop.f32.mrb[24].mxu1 }
 0x30b   :  { %v925_v1 = vadd.f32 %v877_v3, %v839_v6  ;;  %v927_v0 = vadd.f32 %v918_v10, %v841_v8  ;;  %v879_v4 = vpop.f32.mrb[25].mxu0  ;;  %v920_v16 = vpop.f32.mrb[25].mxu1 }
 0x30c   :  { %v926_v53 = vadd.f32 %v879_v4, %v840_v15  ;;  %v928_v59 = vadd.f32 %v920_v16, %v842_v12  ;;  %v881_v7 = vpop.f32.mrb[26].mxu0  ;;  %v922_v13 = vpop.f32.mrb[26].mxu1 }
 0x30d   :  { %v3304_v17 = vmul.f32 -1.442695, %v925_v1  ;;  %v882_v18 = vpop.f32.mrb[27].mxu0  ;;  %v923_v19 = vpop.f32.mrb[27].mxu1  ;;  %v3306_v27 = vmul.f32 -1.442695, %v927_v0 }
 0x30e   :  { %v3305_v26 = vmul.f32 -1.442695, %v926_v53 }
 0x30f   :  { %3689 = vpow2.f32 %v3304_v17 }
 0x310   :  { %3691 = vpow2.f32 %v3305_v26 }
 0x311   :  { %3693 = vtanh.f32 %v928_v59 }
 0x312   :  { %3695 = vpow2.f32 %v3306_v27 }
 0x319   :  { %v3690_v14 = vpop.eup %3689 }
 0x31a   :  { %v938_v61 = vadd.f32 1.0, %v3690_v14  ;;  %v3692_v30 = vpop.eup %3691 }
 0x31b   :  { %v939_v43 = vadd.f32 1.0, %v3692_v30  ;;  %v3694_v38 = vpop.eup %3693 }
 0x31c   :  { %3697 = vrcp.f32 %v938_v61  ;;  %v3696_v48 = vpop.eup %3695 }
 0x31d   :  { %3699 = vrcp.f32 %v939_v43  ;;  %v940_v8 = vadd.f32 1.0, %v3696_v48  ;;  %v4544_v43 = vld [vmem:[%s5698_s3] ss:$16 sps:$4 sm:$0xff]   ;;  %v4556_v48 = vld [vmem:[%s5698_s3 + $0x24] ss:$16 sps:$4 sm:$0xff]  }
 0x31f   :  { %3701 = vrcp.f32 %v940_v8  ;;  %v4582_v8 = vld [vmem:[%s5698_s3 + $0x44] ss:$16 sps:$4 sm:$0xff]  }
 0x326   :  { %v3698_v5 = vpop.eup %3697 }
 0x327   :  { %v949_v2 = vmul.f32 %v3698_v5, %v3694_v38  ;;  %v3700_v6 = vpop.eup %3699  ;;  %v4550_v38 = vld [vmem:[%s5698_s3 + $0x8] ss:$16 sps:$4 sm:$0xff]   ;;  %v4562_v5 = vld [vmem:[%s5698_s3 + $0x2c] ss:$16 sps:$4 sm:$0xff]  }
 0x328   :  { %v948_v3 = vmul.f32 %v3700_v6, %v4444_v62  ;;  %v4576_v6 = vld [vmem:[%s5698_s3 + $0x28] ss:$16 sps:$4 sm:$0xff]  }
 0x329   :  { %v3702_v15 = vpop.eup %3701 }
 0x32a   :  { %v4486_v10 = vadd.f32 %v949_v2, %v948_v3  ;;  %v4570_v2 = vld [vmem:[%s5698_s3 + $0x20] ss:$16 sps:$4 sm:$0xff]   ;;  %v4588_v3 = vld [vmem:[%s5698_s3 + $0x4c] ss:$16 sps:$4 sm:$0xff]  }
 0x32c   :  { %3703 = vtanh.f32 %v4486_v10 }
 0x336   :  { %v3704_v12 = vpop.eup %3703 }
 0x337   :  { %v952_v1 = vmul.f32 %v3704_v12, %v3702_v15  ;;  %v4600_v15 = vld [vmem:[%s5698_s3 + $0x48] ss:$16 sps:$4 sm:$0xff]   ;;  %v4606_v12 = vld [vmem:[%s5698_s3 + $0x64] ss:$16 sps:$4 sm:$0xff]  }
 0x339   :  { %v953_v0 = vpack.c.bf16 %v952_v1, %v952_v1  ;;  %v4612_v1 = vld [vmem:[%s5698_s3 + $0x6c] ss:$16 sps:$4 sm:$0xff]  }
 0x33b   :  { %955 = vst [vmem:[#allocation5 + $0x8] sm:$0xf] %v953_v0  ;;  %996 = vmatmul.mubr.bf16.vlgmr.msra.gmra.mrb[28].mxu0 %v953_v0  ;;  %1037 = vmatmul.mubr.bf16.vlgmr.msra.gmra.mrb[28].mxu1 %v953_v0  ;;  %v4618_v0 = vld [vmem:[%s5698_s3 + $0x60] ss:$16 sps:$4 sm:$0xff]  }
 0x33c   :  { %1084 = vmatpush1.bf16.msra.mxu0 %v4056_v20  ;;  %1125 = vmatpush1.bf16.msra.mxu1 %v4061_v21  ;;  %v4524_v20 = vld [vmem:[%s5698_s3 + $0x4] ss:$16 sps:$4 sm:$0xff]   ;;  %v4530_v21 = vld [vmem:[%s5698_s3 + $0xc] ss:$16 sps:$4 sm:$0xff]  }
 0x33d   :  { %1085 = vmatprep.subr.bf16.mxu0 %v4068_v22  ;;  %1126 = vmatprep.subr.bf16.mxu1 %v4073_v23  ;;  %v959_v22 = vunpack.c.l.bf16 %v4359_v60  ;;  %v961_v23 = vunpack.c.l.bf16 %v4361_v63 }
 0x33e   :  { %1115 = vmatprep.mubr.bf16.mxu0 %v5732_v11  ;;  %1156 = vmatprep.mubr.bf16.mxu1 %v5732_v11 }
 0x340   :  { %1086 = vmatpush1.bf16.msra.mxu0 %v4078_v24  ;;  %1127 = vmatpush1.bf16.msra.mxu1 %v4083_v25 }
 0x341   :  { %1087 = vmatprep.subr.bf16.mxu0 %v4098_v28  ;;  %1128 = vmatprep.subr.bf16.mxu1 %v4105_v29  ;;  %v960_v28 = vunpack.c.h.bf16 %v4359_v60  ;;  %v962_v29 = vunpack.c.h.bf16 %v4361_v63 }
 0x344   :  { %1088 = vmatpush1.bf16.msra.mxu0 %v4112_v31  ;;  %1129 = vmatpush1.bf16.msra.mxu1 %v4117_v32 }
 0x345   :  { %1089 = vmatprep.subr.bf16.mxu0 %v4124_v33  ;;  %1130 = vmatprep.subr.bf16.mxu1 %v4131_v34 }
 0x348   :  { %1090 = vmatpush1.bf16.msra.mxu0 %v4136_v35  ;;  %1131 = vmatpush1.bf16.msra.mxu1 %v4143_v36 }
 0x349   :  { %1091 = vmatprep.subr.bf16.mxu0 %v4158_v39  ;;  %1132 = vmatprep.subr.bf16.mxu1 %v4163_v40 }
 0x34c   :  { %1092 = vmatpush1.bf16.msra.mxu0 %v4170_v41  ;;  %1133 = vmatpush1.bf16.msra.mxu1 %v4175_v42 }
 0x34d   :  { %1093 = vmatprep.subr.bf16.mxu0 %v4180_v44  ;;  %1134 = vmatprep.subr.bf16.mxu1 %v4185_v45 }
 0x350   :  { %1094 = vmatpush1.bf16.msra.mxu0 %v4194_v46  ;;  %1135 = vmatpush1.bf16.msra.mxu1 %v4199_v47 }
 0x351   :  { %1095 = vmatprep.subr.bf16.mxu0 %v4212_v50  ;;  %1136 = vmatprep.subr.bf16.mxu1 %v4217_v51 }
 0x354   :  { %1096 = vmatpush1.bf16.msra.mxu0 %v4228_v52  ;;  %1137 = vmatpush1.bf16.msra.mxu1 %v4235_v54 }
 0x355   :  { %1097 = vmatprep.subr.bf16.mxu0 %v4242_v55  ;;  %1138 = vmatprep.subr.bf16.mxu1 %v4247_v56 }
 0x358   :  { %1098 = vmatpush1.bf16.msra.mxu0 %v4256_v57  ;;  %1139 = vmatpush1.bf16.msra.mxu1 %v4261_v58 }
 0x359   :  { %1203 = vmatprep.subr.bf16.mxu0 %v4524_v20  ;;  %1244 = vmatprep.subr.bf16.mxu1 %v4530_v21 }
 0x40e   :  { %v997_v24 = vpop.f32.mrb[28].mxu0  ;;  %v1038_v25 = vpop.f32.mrb[28].mxu1 }
 0x40f   :  { %v1045_v31 = vadd.f32 %v997_v24, %v959_v22  ;;  %v1047_v32 = vadd.f32 %v1038_v25, %v961_v23  ;;  %v999_v33 = vpop.f32.mrb[29].mxu0  ;;  %v1040_v34 = vpop.f32.mrb[29].mxu1  ;;  %v4624_v22 = vld [vmem:[%s5698_s3 + $0x68] ss:$16 sps:$4 sm:$0xff]   ;;  %v4630_v23 = vld [vmem:[%s5698_s3 + $0x84] ss:$16 sps:$4 sm:$0xff]  }
 0x410   :  { %v1046_v35 = vadd.f32 %v999_v33, %v960_v28  ;;  %v1048_v36 = vadd.f32 %v1040_v34, %v962_v29  ;;  %v1001_v39 = vpop.f32.mrb[30].mxu0  ;;  %v1042_v40 = vpop.f32.mrb[30].mxu1  ;;  %v4636_v24 = vld [vmem:[%s5698_s3 + $0x8c] ss:$16 sps:$4 sm:$0xff]   ;;  %v4642_v25 = vld [vmem:[%s5698_s3 + $0x80] ss:$16 sps:$4 sm:$0xff]  }
 0x411   :  { %v3307_v41 = vmul.f32 -1.442695, %v1045_v31  ;;  %v1002_v42 = vpop.f32.mrb[31].mxu0  ;;  %v1043_v44 = vpop.f32.mrb[31].mxu1  ;;  %v3309_v62 = vmul.f32 -1.442695, %v1047_v32 }
 0x412   :  { %v3308_v45 = vmul.f32 -1.442695, %v1046_v35  ;;  %v4648_v28 = vld [vmem:[%s5698_s3 + $0x88] ss:$16 sps:$4 sm:$0xff]   ;;  %v4654_v29 = vld [vmem:[%s5698_s3 + $0xa4] ss:$16 sps:$4 sm:$0xff]  }
 0x413   :  { %3705 = vpow2.f32 %v3307_v41  ;;  %v4660_v31 = vld [vmem:[%s5698_s3 + $0xac] ss:$16 sps:$4 sm:$0xff]  }
 0x414   :  { %3707 = vpow2.f32 %v3308_v45 }
 0x415   :  { %3709 = vtanh.f32 %v1048_v36 }
 0x416   :  { %3711 = vpow2.f32 %v3309_v62 }
 0x41d   :  { %v3706_v4 = vpop.eup %3705 }
 0x41e   :  { %v1058_v16 = vadd.f32 1.0, %v3706_v4  ;;  %v3708_v60 = vpop.eup %3707 }
 0x41f   :  { %v1059_v63 = vadd.f32 1.0, %v3708_v60  ;;  %v3710_v53 = vpop.eup %3709 }
 0x420   :  { %3713 = vrcp.f32 %v1058_v16  ;;  %v3712_v59 = vpop.eup %3711 }
 0x421   :  { %3715 = vrcp.f32 %v1059_v63  ;;  %v1060_v18 = vadd.f32 1.0, %v3712_v59 }
 0x423   :  { %3717 = vrcp.f32 %v1060_v18 }
 0x42a   :  { %v3714_v7 = vpop.eup %3713 }
 0x42b   :  { %v1069_v13 = vmul.f32 %v3714_v7, %v3710_v53  ;;  %v3716_v17 = vpop.eup %3715 }
 0x42c   :  { %v1068_v19 = vmul.f32 %v3716_v17, %v4486_v10  ;;  %v4594_v10 = vld [vmem:[%s5698_s3 + $0x40] ss:$16 sps:$4 sm:$0xff]  }
 0x42d   :  { %v3718_v27 = vpop.eup %3717 }
 0x42e   :  { %v4538_v26 = vadd.f32 %v1069_v13, %v1068_v19 }
 0x430   :  { %3719 = vtanh.f32 %v4538_v26 }
 0x43a   :  { %v3720_v14 = vpop.eup %3719 }
 0x43b   :  { %v1072_v61 = vmul.f32 %v3720_v14, %v3718_v27  ;;  %v4714_v27 = vld [vmem:[%s5698_s3 + $0xa8] ss:$16 sps:$4 sm:$0xff]   ;;  %v4720_v14 = vld [vmem:[%s5698_s3 + $0xc4] ss:$16 sps:$4 sm:$0xff]  }
 0x43d   :  { %v1073_v30 = vpack.c.bf16 %v1072_v61, %v1072_v61  ;;  %v4726_v61 = vld [vmem:[%s5698_s3 + $0xcc] ss:$16 sps:$4 sm:$0xff]  }
 0x43f   :  { %1075 = vst [vmem:[#allocation5 + $0xc] sm:$0xf] %v1073_v30  ;;  %1116 = vmatmul.mubr.bf16.vlgmr.msra.gmra.mrb[32].mxu0 %v1073_v30  ;;  %1157 = vmatmul.mubr.bf16.vlgmr.msra.gmra.mrb[32].mxu1 %v1073_v30  ;;  %v4732_v30 = vld [vmem:[%s5698_s3 + $0xc0] ss:$16 sps:$4 sm:$0xff]  }
 0x440   :  { %1204 = vmatpush1.bf16.msra.mxu0 %v4544_v43  ;;  %1245 = vmatpush1.bf16.msra.mxu1 %v4550_v38 }
 0x441   :  { %1205 = vmatprep.subr.bf16.mxu0 %v4556_v48  ;;  %1246 = vmatprep.subr.bf16.mxu1 %v4562_v5 }
 0x442   :  { %1235 = vmatprep.mubr.bf16.mxu0 %v5732_v11  ;;  %1276 = vmatprep.mubr.bf16.mxu1 %v5732_v11 }
 0x444   :  { %1206 = vmatpush1.bf16.msra.mxu0 %v4570_v2  ;;  %1247 = vmatpush1.bf16.msra.mxu1 %v4576_v6 }
 0x445   :  { %1207 = vmatprep.subr.bf16.mxu0 %v4582_v8  ;;  %1248 = vmatprep.subr.bf16.mxu1 %v4588_v3 }
 0x448   :  { %1208 = vmatpush1.bf16.msra.mxu0 %v4594_v10  ;;  %1249 = vmatpush1.bf16.msra.mxu1 %v4600_v15 }
 0x449   :  { %1209 = vmatprep.subr.bf16.mxu0 %v4606_v12  ;;  %1250 = vmatprep.subr.bf16.mxu1 %v4612_v1 }
 0x44c   :  { %1210 = vmatpush1.bf16.msra.mxu0 %v4618_v0  ;;  %1251 = vmatpush1.bf16.msra.mxu1 %v4624_v22 }
 0x44d   :  { %1211 = vmatprep.subr.bf16.mxu0 %v4630_v23  ;;  %1252 = vmatprep.subr.bf16.mxu1 %v4636_v24 }
 0x450   :  { %1212 = vmatpush1.bf16.msra.mxu0 %v4642_v25  ;;  %1253 = vmatpush1.bf16.msra.mxu1 %v4648_v28 }
 0x451   :  { %1213 = vmatprep.subr.bf16.mxu0 %v4654_v29  ;;  %1254 = vmatprep.subr.bf16.mxu1 %v4660_v31 }
 0x454   :  { %1214 = vmatpush1.bf16.msra.mxu0 %v4194_v46  ;;  %1255 = vmatpush1.bf16.msra.mxu1 %v4199_v47  ;;  %v1079_v46 = vunpack.c.l.bf16 %v4369_v37  ;;  %v1081_v47 = vunpack.c.l.bf16 %v4372_v9 }
 0x455   :  { %1215 = vmatprep.subr.bf16.mxu0 %v4212_v50  ;;  %1256 = vmatprep.subr.bf16.mxu1 %v4217_v51 }
 0x458   :  { %1216 = vmatpush1.bf16.msra.mxu0 %v4228_v52  ;;  %1257 = vmatpush1.bf16.msra.mxu1 %v4235_v54  ;;  %v1080_v52 = vunpack.c.h.bf16 %v4369_v37  ;;  %v1082_v54 = vunpack.c.h.bf16 %v4372_v9 }
 0x459   :  { %1217 = vmatprep.subr.bf16.mxu0 %v4242_v55  ;;  %1258 = vmatprep.subr.bf16.mxu1 %v4247_v56 }
 0x45c   :  { %1218 = vmatpush1.bf16.msra.mxu0 %v4256_v57  ;;  %1259 = vmatpush1.bf16.msra.mxu1 %v4261_v58 }
 0x45d   :  { %1323 = vmatprep.subr.bf16.mxu0 %v4524_v20  ;;  %1364 = vmatprep.subr.bf16.mxu1 %v4530_v21 }
 0x512   :  { %v1117_v50 = vpop.f32.mrb[32].mxu0  ;;  %v1158_v51 = vpop.f32.mrb[32].mxu1 }
 0x513   :  { %v1165_v55 = vadd.f32 %v1117_v50, %v1079_v46  ;;  %v1167_v56 = vadd.f32 %v1158_v51, %v1081_v47  ;;  %v1119_v32 = vpop.f32.mrb[33].mxu0  ;;  %v1160_v57 = vpop.f32.mrb[33].mxu1  ;;  %v4738_v46 = vld [vmem:[%s5698_s3 + $0xc8] ss:$16 sps:$4 sm:$0xff]   ;;  %v4744_v47 = vld [vmem:[%s5698_s3 + $0xe4] ss:$16 sps:$4 sm:$0xff]  }
 0x514   :  { %v1166_v33 = vadd.f32 %v1119_v32, %v1080_v52  ;;  %v1168_v58 = vadd.f32 %v1160_v57, %v1082_v54  ;;  %v1121_v34 = vpop.f32.mrb[34].mxu0  ;;  %v1162_v35 = vpop.f32.mrb[34].mxu1  ;;  %v4750_v50 = vld [vmem:[%s5698_s3 + $0xec] ss:$16 sps:$4 sm:$0xff]   ;;  %v4756_v51 = vld [vmem:[%s5698_s3 + $0xe0] ss:$16 sps:$4 sm:$0xff]  }
 0x515   :  { %v3310_v36 = vmul.f32 -1.442695, %v1165_v55  ;;  %v1122_v39 = vpop.f32.mrb[35].mxu0  ;;  %v1163_v40 = vpop.f32.mrb[35].mxu1  ;;  %v3312_v42 = vmul.f32 -1.442695, %v1167_v56 }
 0x516   :  { %v3311_v41 = vmul.f32 -1.442695, %v1166_v33  ;;  %v4762_v52 = vld [vmem:[%s5698_s3 + $0xe8] ss:$16 sps:$4 sm:$0xff]   ;;  %v5734_v56 = vld [vmem:[#allocation8_spill] sm:$0xff] }
 0x517   :  { %3721 = vpow2.f32 %v3310_v36  ;;  %v5733_v54 = vld [vmem:[#allocation7_spill] sm:$0xff]  ;;  %v1201_v32 = vunpack.c.l.bf16 %v5734_v56  ;;  %v1202_v34 = vunpack.c.h.bf16 %v5734_v56 }
 0x518   :  { %3723 = vpow2.f32 %v3311_v41  ;;  %v1199_v55 = vunpack.c.l.bf16 %v5733_v54 }
 0x519   :  { %3725 = vtanh.f32 %v1168_v58  ;;  %v1200_v58 = vunpack.c.h.bf16 %v5733_v54 }
 0x51a   :  { %3727 = vpow2.f32 %v3312_v42 }
 0x521   :  { %v3722_v44 = vpop.eup %3721 }
 0x522   :  { %v1178_v45 = vadd.f32 1.0, %v3722_v44  ;;  %v3724_v37 = vpop.eup %3723 }
 0x523   :  { %v1179_v9 = vadd.f32 1.0, %v3724_v37  ;;  %v3726_v62 = vpop.eup %3725 }
 0x524   :  { %3729 = vrcp.f32 %v1178_v45  ;;  %v3728_v4 = vpop.eup %3727 }
 0x525   :  { %3731 = vrcp.f32 %v1179_v9  ;;  %v1180_v53 = vadd.f32 1.0, %v3728_v4 }
 0x527   :  { %3733 = vrcp.f32 %v1180_v53 }
 0x52e   :  { %v3730_v16 = vpop.eup %3729 }
 0x52f   :  { %v1189_v60 = vmul.f32 %v3730_v16, %v3726_v62  ;;  %v3732_v63 = vpop.eup %3731 }
 0x530   :  { %v1188_v59 = vmul.f32 %v3732_v63, %v4538_v26  ;;  %v4708_v26 = vld [vmem:[%s5698_s3 + $0xa0] ss:$16 sps:$4 sm:$0xff]  }
 0x531   :  { %v3734_v13 = vpop.eup %3733 }
 0x532   :  { %v4680_v7 = vadd.f32 %v1189_v60, %v1188_v59 }
 0x534   :  { %3735 = vtanh.f32 %v4680_v7 }
 0x53e   :  { %v3736_v17 = vpop.eup %3735 }
 0x53f   :  { %v1192_v18 = vmul.f32 %v3736_v17, %v3734_v13 }
 0x541   :  { %v1193_v19 = vpack.c.bf16 %v1192_v18, %v1192_v18 }
 0x543   :  { %1195 = vst [vmem:[#allocation5 + $0x10] sm:$0xf] %v1193_v19  ;;  %1236 = vmatmul.mubr.bf16.vlgmr.msra.gmra.mrb[36].mxu0 %v1193_v19  ;;  %1277 = vmatmul.mubr.bf16.vlgmr.msra.gmra.mrb[36].mxu1 %v1193_v19 }
 0x544   :  { %1324 = vmatpush1.bf16.msra.mxu0 %v4544_v43  ;;  %1365 = vmatpush1.bf16.msra.mxu1 %v4550_v38 }
 0x545   :  { %1325 = vmatprep.subr.bf16.mxu0 %v4556_v48  ;;  %1366 = vmatprep.subr.bf16.mxu1 %v4562_v5 }
 0x546   :  { %1355 = vmatprep.mubr.bf16.mxu0 %v5732_v11  ;;  %1396 = vmatprep.mubr.bf16.mxu1 %v5732_v11 }
 0x548   :  { %1326 = vmatpush1.bf16.msra.mxu0 %v4570_v2  ;;  %1367 = vmatpush1.bf16.msra.mxu1 %v4576_v6 }
 0x549   :  { %1327 = vmatprep.subr.bf16.mxu0 %v4582_v8  ;;  %1368 = vmatprep.subr.bf16.mxu1 %v4588_v3 }
 0x54c   :  { %1328 = vmatpush1.bf16.msra.mxu0 %v4594_v10  ;;  %1369 = vmatpush1.bf16.msra.mxu1 %v4600_v15 }
 0x54d   :  { %1329 = vmatprep.subr.bf16.mxu0 %v4606_v12  ;;  %1370 = vmatprep.subr.bf16.mxu1 %v4612_v1 }
 0x550   :  { %1330 = vmatpush1.bf16.msra.mxu0 %v4618_v0  ;;  %1371 = vmatpush1.bf16.msra.mxu1 %v4624_v22 }
 0x551   :  { %1331 = vmatprep.subr.bf16.mxu0 %v4630_v23  ;;  %1372 = vmatprep.subr.bf16.mxu1 %v4636_v24 }
 0x554   :  { %1332 = vmatpush1.bf16.msra.mxu0 %v4642_v25  ;;  %1373 = vmatpush1.bf16.msra.mxu1 %v4648_v28 }
 0x555   :  { %1333 = vmatprep.subr.bf16.mxu0 %v4654_v29  ;;  %1374 = vmatprep.subr.bf16.mxu1 %v4660_v31 }
 0x558   :  { %1334 = vmatpush1.bf16.msra.mxu0 %v4708_v26  ;;  %1375 = vmatpush1.bf16.msra.mxu1 %v4714_v27 }
 0x559   :  { %1335 = vmatprep.subr.bf16.mxu0 %v4720_v14  ;;  %1376 = vmatprep.subr.bf16.mxu1 %v4726_v61 }
 0x55c   :  { %1336 = vmatpush1.bf16.msra.mxu0 %v4732_v30  ;;  %1377 = vmatpush1.bf16.msra.mxu1 %v4738_v46 }
 0x55d   :  { %1337 = vmatprep.subr.bf16.mxu0 %v4744_v47  ;;  %1378 = vmatprep.subr.bf16.mxu1 %v4750_v50 }
 0x560   :  { %1338 = vmatpush1.bf16.msra.mxu0 %v4756_v51  ;;  %1379 = vmatpush1.bf16.msra.mxu1 %v4762_v52 }
 0x561   :  { %1443 = vmatprep.subr.bf16.mxu0 %v4524_v20  ;;  %1484 = vmatprep.subr.bf16.mxu1 %v4530_v21 }
 0x616   :  { %v1237_v57 = vpop.f32.mrb[36].mxu0  ;;  %v1278_v33 = vpop.f32.mrb[36].mxu1 }
 0x617   :  { %v1285_v35 = vadd.f32 %v1237_v57, %v1199_v55  ;;  %v1287_v36 = vadd.f32 %v1278_v33, %v1201_v32  ;;  %v1239_v39 = vpop.f32.mrb[37].mxu0  ;;  %v1280_v40 = vpop.f32.mrb[37].mxu1 }
 0x618   :  { %v1286_v41 = vadd.f32 %v1239_v39, %v1200_v58  ;;  %v1288_v42 = vadd.f32 %v1280_v40, %v1202_v34  ;;  %v1241_v44 = vpop.f32.mrb[38].mxu0  ;;  %v1282_v20 = vpop.f32.mrb[38].mxu1  ;;  %v3557_v40 = vld [vmem:[%s5703_s2] ss:$16 sps:$4 sm:$0xff]  }
 0x619   :  { %v3313_v45 = vmul.f32 -1.442695, %v1285_v35  ;;  %v1242_v21 = vpop.f32.mrb[39].mxu0  ;;  %v1283_v37 = vpop.f32.mrb[39].mxu1  ;;  %v3315_v62 = vmul.f32 -1.442695, %v1287_v36 }
 0x61a   :  { %v3314_v9 = vmul.f32 -1.442695, %v1286_v41  ;;  %v3560_v41 = vld [vmem:[%s5703_s2 + $0x8] ss:$16 sps:$4 sm:$0xff]   ;;  %v3565_v44 = vld [vmem:[%s5703_s2 + $0x24] ss:$16 sps:$4 sm:$0xff]  }
 0x61b   :  { %3737 = vpow2.f32 %v3313_v45  ;;  %v3568_v20 = vld [vmem:[%s5703_s2 + $0x2c] ss:$16 sps:$4 sm:$0xff]   ;;  %v3563_v45 = vld [vmem:[%s5703_s2 + $0x20] ss:$16 sps:$4 sm:$0xff]   ;;  %v3566_v21 = vld [vmem:[%s5703_s2 + $0x28] ss:$16 sps:$4 sm:$0xff]  }
 0x61c   :  { %3739 = vpow2.f32 %v3314_v9  ;;  %v3571_v37 = vld [vmem:[%s5703_s2 + $0x44] ss:$16 sps:$4 sm:$0xff]   ;;  %v3574_v9 = vld [vmem:[%s5703_s2 + $0x4c] ss:$16 sps:$4 sm:$0xff]  }
 0x61d   :  { %3741 = vtanh.f32 %v1288_v42 }
 0x61e   :  { %3743 = vpow2.f32 %v3315_v62  ;;  %v3569_v62 = vld [vmem:[%s5703_s2 + $0x40] ss:$16 sps:$4 sm:$0xff]  }
 0x625   :  { %v3738_v4 = vpop.eup %3737 }
 0x626   :  { %v1298_v16 = vadd.f32 1.0, %v3738_v4  ;;  %v3740_v60 = vpop.eup %3739  ;;  %v3572_v4 = vld [vmem:[%s5703_s2 + $0x48] ss:$16 sps:$4 sm:$0xff]  }
 0x627   :  { %v1299_v63 = vadd.f32 1.0, %v3740_v60  ;;  %v3742_v53 = vpop.eup %3741  ;;  %v3580_v60 = vld [vmem:[%s5703_s2 + $0x6c] ss:$16 sps:$4 sm:$0xff]  }
 0x628   :  { %3745 = vrcp.f32 %v1298_v16  ;;  %v3744_v59 = vpop.eup %3743  ;;  %v3577_v16 = vld [vmem:[%s5703_s2 + $0x64] ss:$16 sps:$4 sm:$0xff]  }
 0x629   :  { %3747 = vrcp.f32 %v1299_v63  ;;  %v1300_v19 = vadd.f32 1.0, %v3744_v59  ;;  %v3575_v63 = vld [vmem:[%s5703_s2 + $0x60] ss:$16 sps:$4 sm:$0xff]   ;;  %v3583_v59 = vld [vmem:[%s5703_s2 + $0x84] ss:$16 sps:$4 sm:$0xff]  }
 0x62b   :  { %3749 = vrcp.f32 %v1300_v19  ;;  %v3589_v19 = vld [vmem:[%s5703_s2 + $0xa4] ss:$16 sps:$4 sm:$0xff]  }
 0x632   :  { %v3746_v13 = vpop.eup %3745 }
 0x633   :  { %v1309_v17 = vmul.f32 %v3746_v13, %v3742_v53  ;;  %v3748_v18 = vpop.eup %3747  ;;  %v3578_v53 = vld [vmem:[%s5703_s2 + $0x68] ss:$16 sps:$4 sm:$0xff]   ;;  %v3586_v13 = vld [vmem:[%s5703_s2 + $0x8c] ss:$16 sps:$4 sm:$0xff]  }
 0x634   :  { %v1308_v54 = vmul.f32 %v3748_v18, %v4680_v7  ;;  %v3584_v18 = vld [vmem:[%s5703_s2 + $0x88] ss:$16 sps:$4 sm:$0xff]  }
 0x635   :  { %v3750_v56 = vpop.eup %3749 }
 0x636   :  { %v4772_v55 = vadd.f32 %v1309_v17, %v1308_v54  ;;  %v3581_v17 = vld [vmem:[%s5703_s2 + $0x80] ss:$16 sps:$4 sm:$0xff]   ;;  %v3592_v54 = vld [vmem:[%s5703_s2 + $0xac] ss:$16 sps:$4 sm:$0xff]  }
 0x638   :  { %3751 = vtanh.f32 %v4772_v55 }
 0x642   :  { %v3752_v32 = vpop.eup %3751 }
 0x643   :  { %v1312_v57 = vmul.f32 %v3752_v32, %v3750_v56  ;;  %v3590_v56 = vld [vmem:[%s5703_s2 + $0xa8] ss:$16 sps:$4 sm:$0xff]   ;;  %v3595_v32 = vld [vmem:[%s5703_s2 + $0xc4] ss:$16 sps:$4 sm:$0xff]  }
 0x645   :  { %v1313_v33 = vpack.c.bf16 %v1312_v57, %v1312_v57  ;;  %v3598_v57 = vld [vmem:[%s5703_s2 + $0xcc] ss:$16 sps:$4 sm:$0xff]  }
 0x647   :  { %1315 = vst [vmem:[#allocation5 + $0x14] sm:$0xf] %v1313_v33  ;;  %1356 = vmatmul.mubr.bf16.vlgmr.msra.gmra.mrb[40].mxu0 %v1313_v33  ;;  %1397 = vmatmul.mubr.bf16.vlgmr.msra.gmra.mrb[40].mxu1 %v1313_v33  ;;  %v3593_v33 = vld [vmem:[%s5703_s2 + $0xc0] ss:$16 sps:$4 sm:$0xff]  }
 0x648   :  { %1444 = vmatpush1.bf16.msra.mxu0 %v4544_v43  ;;  %1485 = vmatpush1.bf16.msra.mxu1 %v4550_v38  ;;  %v3559_v43 = vld [vmem:[%s5703_s2 + $0x4] ss:$16 sps:$4 sm:$0xff]   ;;  %v3562_v38 = vld [vmem:[%s5703_s2 + $0xc] ss:$16 sps:$4 sm:$0xff]  }
 0x649   :  { %1445 = vmatprep.subr.bf16.mxu0 %v4556_v48  ;;  %1486 = vmatprep.subr.bf16.mxu1 %v4562_v5  ;;  %v1319_v48 = vunpack.c.l.bf16 %v4385_v49  ;;  %v5735_v5 = vld [vmem:[#allocation9_spill] sm:$0xff] }
 0x64a   :  { %1475 = vmatprep.mubr.bf16.mxu0 %v5732_v11  ;;  %1516 = vmatprep.mubr.bf16.mxu1 %v5732_v11 }
 0x64c   :  { %1446 = vmatpush1.bf16.msra.mxu0 %v4570_v2  ;;  %1487 = vmatpush1.bf16.msra.mxu1 %v4576_v6  ;;  %v1321_v2 = vunpack.c.l.bf16 %v5735_v5 }
 0x64d   :  { %1447 = vmatprep.subr.bf16.mxu0 %v4582_v8  ;;  %1488 = vmatprep.subr.bf16.mxu1 %v4588_v3  ;;  %v1320_v3 = vunpack.c.h.bf16 %v4385_v49 }
 0x650   :  { %1448 = vmatpush1.bf16.msra.mxu0 %v4594_v10  ;;  %1489 = vmatpush1.bf16.msra.mxu1 %v4600_v15  ;;  %v1322_v10 = vunpack.c.h.bf16 %v5735_v5  ;;  %v3599_v5 = vld [vmem:[%s5703_s2 + $0xe0] ss:$16 sps:$4 sm:$0xff]  }
 0x651   :  { %1449 = vmatprep.subr.bf16.mxu0 %v4606_v12  ;;  %1490 = vmatprep.subr.bf16.mxu1 %v4612_v1 }
 0x654   :  { %1450 = vmatpush1.bf16.msra.mxu0 %v4618_v0  ;;  %1491 = vmatpush1.bf16.msra.mxu1 %v4624_v22 }
 0x655   :  { %1451 = vmatprep.subr.bf16.mxu0 %v4630_v23  ;;  %1492 = vmatprep.subr.bf16.mxu1 %v4636_v24 }
 0x658   :  { %1452 = vmatpush1.bf16.msra.mxu0 %v4642_v25  ;;  %1493 = vmatpush1.bf16.msra.mxu1 %v4648_v28 }
 0x659   :  { %1453 = vmatprep.subr.bf16.mxu0 %v4654_v29  ;;  %1494 = vmatprep.subr.bf16.mxu1 %v4660_v31 }
 0x65c   :  { %1454 = vmatpush1.bf16.msra.mxu0 %v4708_v26  ;;  %1495 = vmatpush1.bf16.msra.mxu1 %v4714_v27 }
 0x65d   :  { %1455 = vmatprep.subr.bf16.mxu0 %v4720_v14  ;;  %1496 = vmatprep.subr.bf16.mxu1 %v4726_v61 }
 0x660   :  { %1456 = vmatpush1.bf16.msra.mxu0 %v4732_v30  ;;  %1497 = vmatpush1.bf16.msra.mxu1 %v4738_v46 }
 0x661   :  { %1457 = vmatprep.subr.bf16.mxu0 %v4744_v47  ;;  %1498 = vmatprep.subr.bf16.mxu1 %v4750_v50 }
 0x664   :  { %1458 = vmatpush1.bf16.msra.mxu0 %v4756_v51  ;;  %1499 = vmatpush1.bf16.msra.mxu1 %v4762_v52 }
 0x665   :  { %1805 = vmatprep.subr.bf16.mxu0 %v3559_v43  ;;  %1878 = vmatprep.subr.bf16.mxu1 %v3562_v38  ;;  %v3596_v43 = vld [vmem:[%s5703_s2 + $0xc8] ss:$16 sps:$4 sm:$0xff]   ;;  %v3601_v38 = vld [vmem:[%s5703_s2 + $0xe4] ss:$16 sps:$4 sm:$0xff]  }
 0x71a   :  { %v1357_v6 = vpop.f32.mrb[40].mxu0  ;;  %v1398_v8 = vpop.f32.mrb[40].mxu1 }
 0x71b   :  { %v1405_v15 = vadd.f32 %v1357_v6, %v1319_v48  ;;  %v1407_v12 = vadd.f32 %v1398_v8, %v1321_v2  ;;  %v1359_v1 = vpop.f32.mrb[41].mxu0  ;;  %v1400_v0 = vpop.f32.mrb[41].mxu1  ;;  %v3604_v48 = vld [vmem:[%s5703_s2 + $0xec] ss:$16 sps:$4 sm:$0xff]   ;;  %v3602_v2 = vld [vmem:[%s5703_s2 + $0xe8] ss:$16 sps:$4 sm:$0xff]  }
 0x71c   :  { %v1406_v22 = vadd.f32 %v1359_v1, %v1320_v3  ;;  %v1408_v23 = vadd.f32 %v1400_v0, %v1322_v10  ;;  %v1361_v24 = vpop.f32.mrb[42].mxu0  ;;  %v1402_v25 = vpop.f32.mrb[42].mxu1  ;;  %v3605_v6 = vld [vmem:[#allocation5] sm:$0xff]   ;;  %v3606_v8 = vld [vmem:[#allocation5 + $0x8] sm:$0xff]   ;;  %v3607_v3 = vld [vmem:[#allocation5 + $0x10] sm:$0xff]  }
 0x71d   :  { %v3316_v28 = vmul.f32 -1.442695, %v1405_v15  ;;  %v1362_v29 = vpop.f32.mrb[43].mxu0  ;;  %v1403_v31 = vpop.f32.mrb[43].mxu1  ;;  %v3318_v26 = vmul.f32 -1.442695, %v1407_v12 }
 0x71e   :  { %v3317_v7 = vmul.f32 -1.442695, %v1406_v22  ;;  %v4922_v10 = vld [vmem:[%s5698_s3 + $0x104] ss:$16 sps:$4 sm:$0xff]   ;;  %v4927_v15 = vld [vmem:[%s5698_s3 + $0x10c] ss:$16 sps:$4 sm:$0xff]  }
 0x71f   :  { %3753 = vpow2.f32 %v3316_v28  ;;  %v4932_v12 = vld [vmem:[%s5698_s3 + $0x100] ss:$16 sps:$4 sm:$0xff]   ;;  %v4937_v1 = vld [vmem:[%s5698_s3 + $0x108] ss:$16 sps:$4 sm:$0xff]   ;;  %v4946_v0 = vld [vmem:[%s5698_s3 + $0x124] ss:$16 sps:$4 sm:$0xff]  }
 0x720   :  { %3755 = vpow2.f32 %v3317_v7  ;;  %v4951_v22 = vld [vmem:[%s5698_s3 + $0x12c] ss:$16 sps:$4 sm:$0xff]   ;;  %v4961_v24 = vld [vmem:[%s5698_s3 + $0x128] ss:$16 sps:$4 sm:$0xff]   ;;  %v4970_v25 = vld [vmem:[%s5698_s3 + $0x144] ss:$16 sps:$4 sm:$0xff]  }
 0x721   :  { %3757 = vtanh.f32 %v1408_v23  ;;  %v4956_v23 = vld [vmem:[%s5698_s3 + $0x120] ss:$16 sps:$4 sm:$0xff]   ;;  %v4975_v28 = vld [vmem:[%s5698_s3 + $0x14c] ss:$16 sps:$4 sm:$0xff]   ;;  %v4985_v31 = vld [vmem:[%s5698_s3 + $0x148] ss:$16 sps:$4 sm:$0xff]  }
 0x722   :  { %3759 = vpow2.f32 %v3318_v26  ;;  %v4980_v29 = vld [vmem:[%s5698_s3 + $0x140] ss:$16 sps:$4 sm:$0xff]   ;;  %v4994_v7 = vld [vmem:[%s5698_s3 + $0x164] ss:$16 sps:$4 sm:$0xff]   ;;  %v4999_v26 = vld [vmem:[%s5698_s3 + $0x16c] ss:$16 sps:$4 sm:$0xff]  }
 0x729   :  { %v3754_v27 = vpop.eup %3753 }
 0x72a   :  { %v1418_v14 = vadd.f32 1.0, %v3754_v27  ;;  %v3756_v49 = vpop.eup %3755  ;;  %v5004_v27 = vld [vmem:[%s5698_s3 + $0x160] ss:$16 sps:$4 sm:$0xff]  }
 0x72b   :  { %v1419_v61 = vadd.f32 1.0, %v3756_v49  ;;  %v3758_v30 = vpop.eup %3757  ;;  %v5018_v49 = vld [vmem:[%s5698_s3 + $0x184] ss:$16 sps:$4 sm:$0xff]  }
 0x72c   :  { %3761 = vrcp.f32 %v1418_v14  ;;  %v3760_v46 = vpop.eup %3759  ;;  %v5009_v14 = vld [vmem:[%s5698_s3 + $0x168] ss:$16 sps:$4 sm:$0xff]  }
 0x72d   :  { %3763 = vrcp.f32 %v1419_v61  ;;  %v1420_v52 = vadd.f32 1.0, %v3760_v46  ;;  %v5023_v61 = vld [vmem:[%s5698_s3 + $0x18c] ss:$16 sps:$4 sm:$0xff]   ;;  %v5033_v46 = vld [vmem:[%s5698_s3 + $0x188] ss:$16 sps:$4 sm:$0xff]  }
 0x72f   :  { %3765 = vrcp.f32 %v1420_v52  ;;  %v5057_v52 = vld [vmem:[%s5698_s3 + $0x1a8] ss:$16 sps:$4 sm:$0xff]  }
 0x736   :  { %v3762_v47 = vpop.eup %3761 }
 0x737   :  { %v1429_v50 = vmul.f32 %v3762_v47, %v3758_v30  ;;  %v3764_v51 = vpop.eup %3763  ;;  %v5028_v30 = vld [vmem:[%s5698_s3 + $0x180] ss:$16 sps:$4 sm:$0xff]   ;;  %v5042_v47 = vld [vmem:[%s5698_s3 + $0x1a4] ss:$16 sps:$4 sm:$0xff]  }
 0x738   :  { %v1428_v58 = vmul.f32 %v3764_v51, %v4772_v55  ;;  %v3587_v55 = vld [vmem:[%s5703_s2 + $0xa0] ss:$16 sps:$4 sm:$0xff]  }
 0x739   :  { %v3766_v35 = vpop.eup %3765  ;;  %v5052_v51 = vld [vmem:[%s5698_s3 + $0x1a0] ss:$16 sps:$4 sm:$0xff]  }
 0x73a   :  { %v4818_v34 = vadd.f32 %v1429_v50, %v1428_v58  ;;  %v5047_v50 = vld [vmem:[%s5698_s3 + $0x1ac] ss:$16 sps:$4 sm:$0xff]   ;;  %v5066_v58 = vld [vmem:[%s5698_s3 + $0x1c4] ss:$16 sps:$4 sm:$0xff]  }
 0x73c   :  { %3767 = vtanh.f32 %v4818_v34 }
 0x746   :  { %v3768_v36 = vpop.eup %3767 }
 0x747   :  { %v1432_v39 = vmul.f32 %v3768_v36, %v3766_v35  ;;  %v5071_v35 = vld [vmem:[%s5698_s3 + $0x1cc] ss:$16 sps:$4 sm:$0xff]   ;;  %v5076_v36 = vld [vmem:[%s5698_s3 + $0x1c0] ss:$16 sps:$4 sm:$0xff]  }
 0x749   :  { %v1433_v42 = vpack.c.bf16 %v1432_v39, %v1432_v39  ;;  %v5081_v39 = vld [vmem:[%s5698_s3 + $0x1c8] ss:$16 sps:$4 sm:$0xff]  }
 0x74b   :  { %1435 = vst [vmem:[#allocation5 + $0x18] sm:$0xf] %v1433_v42  ;;  %1476 = vmatmul.mubr.bf16.vlgmr.msra.gmra.mrb[44].mxu0 %v1433_v42  ;;  %1517 = vmatmul.mubr.bf16.vlgmr.msra.gmra.mrb[44].mxu1 %v1433_v42  ;;  %v5100_v42 = vld [vmem:[%s5698_s3 + $0x1e0] ss:$16 sps:$4 sm:$0xff]  }
 0x74c   :  { %1806 = vmatpush1.bf16.msra.mxu0 %v3557_v40  ;;  %1879 = vmatpush1.bf16.msra.mxu1 %v3560_v41  ;;  %v5088_v40 = vld [vmem:[%s5698_s3 + $0x1e4] ss:$16 sps:$4 sm:$0xff]   ;;  %v5093_v41 = vld [vmem:[%s5698_s3 + $0x1ec] ss:$16 sps:$4 sm:$0xff]  }
 0x74d   :  { %1807 = vmatprep.subr.bf16.mxu0 %v3565_v44  ;;  %1880 = vmatprep.subr.bf16.mxu1 %v3568_v20  ;;  %v5105_v44 = vld [vmem:[%s5698_s3 + $0x1e8] ss:$16 sps:$4 sm:$0xff]   ;;  %v5736_v20 = vld [vmem:[#allocation10_spill] sm:$0xff] }
 0x74e   :  { %1837 = vmatprep.mubr.bf16.mxu0 %v5732_v11  ;;  %1910 = vmatprep.mubr.bf16.mxu1 %v5732_v11 }
 0x750   :  { %1808 = vmatpush1.bf16.msra.mxu0 %v3563_v45  ;;  %1881 = vmatpush1.bf16.msra.mxu1 %v3566_v21  ;;  %v1439_v45 = vunpack.c.l.bf16 %v5736_v20  ;;  %v5737_v21 = vld [vmem:[#allocation11_spill] sm:$0xff] }
 0x751   :  { %1809 = vmatprep.subr.bf16.mxu0 %v3571_v37  ;;  %1882 = vmatprep.subr.bf16.mxu1 %v3574_v9  ;;  %v1441_v37 = vunpack.c.l.bf16 %v5737_v21 }
 0x754   :  { %1810 = vmatpush1.bf16.msra.mxu0 %v3569_v62  ;;  %1883 = vmatpush1.bf16.msra.mxu1 %v3572_v4  ;;  %v1440_v4 = vunpack.c.h.bf16 %v5736_v20  ;;  %v5738_v20 = vld [vmem:[#allocation6_spill] sm:$0xff] }
 0x755   :  { %1811 = vmatprep.subr.bf16.mxu0 %v3577_v16  ;;  %1884 = vmatprep.subr.bf16.mxu1 %v3580_v60  ;;  %v1442_v16 = vunpack.c.h.bf16 %v5737_v21 }
 0x758   :  { %1812 = vmatpush1.bf16.msra.mxu0 %v3575_v63  ;;  %1885 = vmatpush1.bf16.msra.mxu1 %v3578_v53 }
 0x759   :  { %1813 = vmatprep.subr.bf16.mxu0 %v3583_v59  ;;  %1886 = vmatprep.subr.bf16.mxu1 %v3586_v13 }
 0x75c   :  { %1814 = vmatpush1.bf16.msra.mxu0 %v3581_v17  ;;  %1887 = vmatpush1.bf16.msra.mxu1 %v3584_v18 }
 0x75d   :  { %1815 = vmatprep.subr.bf16.mxu0 %v3589_v19  ;;  %1888 = vmatprep.subr.bf16.mxu1 %v3592_v54 }
 0x760   :  { %1816 = vmatpush1.bf16.msra.mxu0 %v3587_v55  ;;  %1889 = vmatpush1.bf16.msra.mxu1 %v3590_v56 }
 0x761   :  { %1817 = vmatprep.subr.bf16.mxu0 %v3595_v32  ;;  %1890 = vmatprep.subr.bf16.mxu1 %v3598_v57 }
 0x764   :  { %1818 = vmatpush1.bf16.msra.mxu0 %v3593_v33  ;;  %1891 = vmatpush1.bf16.msra.mxu1 %v3596_v43 }
 0x765   :  { %1819 = vmatprep.subr.bf16.mxu0 %v3601_v38  ;;  %1892 = vmatprep.subr.bf16.mxu1 %v3604_v48 }
 0x768   :  { %1820 = vmatpush1.bf16.msra.mxu0 %v3599_v5  ;;  %1893 = vmatpush1.bf16.msra.mxu1 %v3602_v2  ;;  %v3322_v2 = vld [vmem:[%s5701_s4 + $0x4] sm:$0xf] }
 0x769   :  { %2267 = vmatprep.subr.bf16.mxu0 %v4922_v10  ;;  %2308 = vmatprep.subr.bf16.mxu1 %v4927_v15 }
 0x76b   :  { %1838 = vmatmul.mubr.bf16.vlgmr.msra.gmra.mrb[48].mxu0 %v3605_v6  ;;  %1911 = vmatmul.mubr.bf16.vlgmr.msra.gmra.mrb[48].mxu1 %v3605_v6 }
 0x76c   :  { %1847 = vmatprep.mubr.bf16.mxu0 %v5732_v11  ;;  %1920 = vmatprep.mubr.bf16.mxu1 %v5732_v11 }
 0x76d   :  { %2268 = vmatpush1.bf16.msra.mxu0 %v4932_v12  ;;  %2309 = vmatpush1.bf16.msra.mxu1 %v4937_v1 }
 0x76e   :  { %2269 = vmatprep.subr.bf16.mxu0 %v4946_v0  ;;  %2310 = vmatprep.subr.bf16.mxu1 %v4951_v22 }
 0x771   :  { %2270 = vmatpush1.bf16.msra.mxu0 %v4956_v23  ;;  %2311 = vmatpush1.bf16.msra.mxu1 %v4961_v24 }
 0x772   :  { %2271 = vmatprep.subr.bf16.mxu0 %v4970_v25  ;;  %2312 = vmatprep.subr.bf16.mxu1 %v4975_v28 }
 0x773   :  { %1848 = vmatmul.mubr.bf16.gmra.mrb[52].mxu0 %v3606_v8  ;;  %1921 = vmatmul.mubr.bf16.gmra.mrb[52].mxu1 %v3606_v8 }
 0x774   :  { %1857 = vmatprep.mubr.bf16.mxu0 %v5732_v11  ;;  %1930 = vmatprep.mubr.bf16.mxu1 %v5732_v11 }
 0x775   :  { %2272 = vmatpush1.bf16.msra.mxu0 %v4980_v29  ;;  %2313 = vmatpush1.bf16.msra.mxu1 %v4985_v31 }
 0x776   :  { %2273 = vmatprep.subr.bf16.mxu0 %v4994_v7  ;;  %2314 = vmatprep.subr.bf16.mxu1 %v4999_v26 }
 0x779   :  { %2274 = vmatpush1.bf16.msra.mxu0 %v5004_v27  ;;  %2315 = vmatpush1.bf16.msra.mxu1 %v5009_v14 }
 0x77a   :  { %2275 = vmatprep.subr.bf16.mxu0 %v5018_v49  ;;  %2316 = vmatprep.subr.bf16.mxu1 %v5023_v61 }
 0x77b   :  { %1858 = vmatmul.mubr.bf16.gmra.mrb[56].mxu0 %v3607_v3  ;;  %1931 = vmatmul.mubr.bf16.gmra.mrb[56].mxu1 %v3607_v3 }
 0x77c   :  { %1867 = vmatprep.mubr.bf16.mxu0 %v5732_v11  ;;  %1940 = vmatprep.mubr.bf16.mxu1 %v5732_v11 }
 0x77d   :  { %2276 = vmatpush1.bf16.msra.mxu0 %v5028_v30  ;;  %2317 = vmatpush1.bf16.msra.mxu1 %v5033_v46 }
 0x77e   :  { %2277 = vmatprep.subr.bf16.mxu0 %v5042_v47  ;;  %2318 = vmatprep.subr.bf16.mxu1 %v5047_v50 }
 0x781   :  { %2278 = vmatpush1.bf16.msra.mxu0 %v5052_v51  ;;  %2319 = vmatpush1.bf16.msra.mxu1 %v5057_v52 }
 0x782   :  { %2279 = vmatprep.subr.bf16.mxu0 %v5066_v58  ;;  %2320 = vmatprep.subr.bf16.mxu1 %v5071_v35 }
 0x785   :  { %2280 = vmatpush1.bf16.msra.mxu0 %v5076_v36  ;;  %2321 = vmatpush1.bf16.msra.mxu1 %v5081_v39 }
 0x786   :  { %2281 = vmatprep.subr.bf16.mxu0 %v5088_v40  ;;  %2322 = vmatprep.subr.bf16.mxu1 %v5093_v41 }
 0x789   :  { %2282 = vmatpush1.bf16.msra.mxu0 %v5100_v42  ;;  %2323 = vmatpush1.bf16.msra.mxu1 %v5105_v44 }
 0x78a   :  { %2385 = vmatprep.subr.bf16.mxu0 %v4922_v10  ;;  %2426 = vmatprep.subr.bf16.mxu1 %v4927_v15 }
 0x81e   :  { %v1477_v9 = vpop.f32.mrb[44].mxu0  ;;  %v1518_v62 = vpop.f32.mrb[44].mxu1 }
 0x81f   :  { %v1525_v60 = vadd.f32 %v1477_v9, %v1439_v45  ;;  %v1527_v63 = vadd.f32 %v1518_v62, %v1441_v37  ;;  %v1479_v53 = vpop.f32.mrb[45].mxu0  ;;  %v1520_v59 = vpop.f32.mrb[45].mxu1  ;;  %v5739_v45 = vsub.s32 0, %v5738_v20  ;;  %v5740_v37 = vsub.s32 2, %v5738_v20 }
 0x820   :  { %v1526_v13 = vadd.f32 %v1479_v53, %v1440_v4  ;;  %v1528_v17 = vadd.f32 %v1520_v59, %v1442_v16  ;;  %v1481_v18 = vpop.f32.mrb[46].mxu0  ;;  %v1522_v19 = vpop.f32.mrb[46].mxu1  ;;  %v5741_v16 = vsub.s32 1, %v5738_v20 }
 0x821   :  { %v3319_v54 = vmul.f32 -1.442695, %v1525_v60  ;;  %v1482_v55 = vpop.f32.mrb[47].mxu0  ;;  %v1523_v56 = vpop.f32.mrb[47].mxu1  ;;  %v3321_v57 = vmul.f32 -1.442695, %v1527_v63  ;;  %v5122_v21 = vrot.slane %v3322_v2, %v5739_v45  ;;  %v5126_v9 = vrot.slane %v3322_v2, %v5740_v37 }
 0x822   :  { %v3320_v32 = vmul.f32 -1.442695, %v1526_v13  ;;  %v5130_v60 = vrot.slane %v3322_v2, %v5741_v16  ;;  %v5742_v63 = vsub.s32 3, %v5738_v20 }
 0x823   :  { %3769 = vpow2.f32 %v3319_v54 }
 0x824   :  { %3771 = vpow2.f32 %v3320_v32  ;;  %v5134_v53 = vrot.slane %v3322_v2, %v5742_v63 }
 0x825   :  { %3773 = vtanh.f32 %v1528_v17 }
 0x826   :  { %3775 = vpow2.f32 %v3321_v57 }
 0x82d   :  { %v3770_v33 = vpop.eup %3769 }
 0x82e   :  { %v1538_v43 = vadd.f32 1.0, %v3770_v33  ;;  %v3772_v38 = vpop.eup %3771 }
 0x82f   :  { %v1539_v48 = vadd.f32 1.0, %v3772_v38  ;;  %v3774_v5 = vpop.eup %3773 }
 0x830   :  { %3777 = vrcp.f32 %v1538_v43  ;;  %v3776_v6 = vpop.eup %3775 }
 0x831   :  { %3779 = vrcp.f32 %v1539_v48  ;;  %v1540_v4 = vadd.f32 1.0, %v3776_v6 }
 0x833   :  { %3781 = vrcp.f32 %v1540_v4 }
 0x83a   :  { %v3778_v8 = vpop.eup %3777 }
 0x83b   :  { %v1549_v3 = vmul.f32 %v3778_v8, %v3774_v5  ;;  %v3780_v62 = vpop.eup %3779 }
 0x83c   :  { %v1548_v59 = vmul.f32 %v3780_v62, %v4818_v34 }
 0x83e   :  { %v1839_v13 = vpop.f32.mrb[48].mxu0  ;;  %v1912_v17 = vpop.f32.mrb[48].mxu1  ;;  %v1550_v18 = vadd.f32 %v1549_v3, %v1548_v59 }
 0x83f   :  { %v1840_v19 = vadd.f32 %v1839_v13, %v5122_v21  ;;  %v1913_v54 = vadd.f32 %v1912_v17, %v5126_v9  ;;  %v1841_v55 = vpop.f32.mrb[49].mxu0  ;;  %v1914_v56 = vpop.f32.mrb[49].mxu1 }
 0x840   :  { %v1842_v32 = vadd.f32 %v1841_v55, %v5130_v60  ;;  %v1915_v57 = vadd.f32 %v1914_v56, %v5134_v53  ;;  %v1843_v33 = vpop.f32.mrb[50].mxu0  ;;  %v1916_v43 = vpop.f32.mrb[50].mxu1  ;;  %3783 = vtanh.f32 %v1550_v18  ;;  %3222 = vst [vmem:[%s5704_s9] sm:$0xff] %v1550_v18 }
 0x841   :  { %v1844_v34 = vadd.f32 %v1843_v33, %v5122_v21  ;;  %v1917_v38 = vadd.f32 %v1916_v43, %v5126_v9  ;;  %v1845_v48 = vpop.f32.mrb[51].mxu0  ;;  %v1918_v5 = vpop.f32.mrb[51].mxu1 }
 0x842   :  { %v5146_v2 = vpack.c.bf16 %v1842_v32, %v1840_v19  ;;  %v5148_v6 = vpack.c.bf16 %v1915_v57, %v1913_v54  ;;  %v1846_v8 = vadd.f32 %v1845_v48, %v5130_v60  ;;  %v1919_v3 = vadd.f32 %v1918_v5, %v5134_v53  ;;  %v3782_v57 = vpop.eup %3781 }
 0x844   :  { %v5152_v20 = vpack.c.bf16 %v1846_v8, %v1844_v34  ;;  %v5154_v45 = vpack.c.bf16 %v1919_v3, %v1917_v38 }
 0x846   :  { %v1849_v37 = vpop.f32.mrb[52].mxu0  ;;  %v1922_v62 = vpop.f32.mrb[52].mxu1 }
 0x847   :  { %v1850_v4 = vadd.f32 %v1849_v37, %v5122_v21  ;;  %v1923_v16 = vadd.f32 %v1922_v62, %v5126_v9  ;;  %v1851_v63 = vpop.f32.mrb[53].mxu0  ;;  %v1924_v59 = vpop.f32.mrb[53].mxu1 }
 0x848   :  { %v1852_v13 = vadd.f32 %v1851_v63, %v5130_v60  ;;  %v1925_v17 = vadd.f32 %v1924_v59, %v5134_v53  ;;  %v1853_v18 = vpop.f32.mrb[54].mxu0  ;;  %v1926_v19 = vpop.f32.mrb[54].mxu1 }
 0x849   :  { %v1854_v54 = vadd.f32 %v1853_v18, %v5122_v21  ;;  %v1927_v55 = vadd.f32 %v1926_v19, %v5126_v9  ;;  %v1855_v56 = vpop.f32.mrb[55].mxu0  ;;  %v1928_v32 = vpop.f32.mrb[55].mxu1 }
 0x84a   :  { %v5162_v33 = vpack.c.bf16 %v1852_v13, %v1850_v4  ;;  %v5164_v43 = vpack.c.bf16 %v1925_v17, %v1923_v16  ;;  %v1856_v34 = vadd.f32 %v1855_v56, %v5130_v60  ;;  %v1929_v38 = vadd.f32 %v1928_v32, %v5134_v53  ;;  %v3784_v48 = vpop.eup %3783 }
 0x84b   :  { %v1552_v5 = vmul.f32 %v3784_v48, %v3782_v57 }
 0x84c   :  { %v5168_v8 = vpack.c.bf16 %v1856_v34, %v1854_v54  ;;  %v5170_v3 = vpack.c.bf16 %v1929_v38, %v1927_v55 }
 0x84d   :  { %v1553_v37 = vpack.c.bf16 %v1552_v5, %v1552_v5  ;;  %3218 = vst [vmem:[%s5705_s8] sm:$0xff] %v1552_v5 }
 0x84e   :  { %v1859_v62 = vpop.f32.mrb[56].mxu0  ;;  %v1932_v4 = vpop.f32.mrb[56].mxu1 }
 0x84f   :  { %v1860_v16 = vadd.f32 %v1859_v62, %v5122_v21  ;;  %v1933_v63 = vadd.f32 %v1932_v4, %v5126_v9  ;;  %v1861_v59 = vpop.f32.mrb[57].mxu0  ;;  %v1934_v13 = vpop.f32.mrb[57].mxu1  ;;  %1555 = vst [vmem:[#allocation5 + $0x1c] sm:$0xf] %v1553_v37 }
 0x850   :  { %v1862_v17 = vadd.f32 %v1861_v59, %v5130_v60  ;;  %v1935_v18 = vadd.f32 %v1934_v13, %v5134_v53  ;;  %v1863_v19 = vpop.f32.mrb[58].mxu0  ;;  %v1936_v54 = vpop.f32.mrb[58].mxu1 }
 0x851   :  { %v1864_v55 = vadd.f32 %v1863_v19, %v5122_v21  ;;  %v1937_v56 = vadd.f32 %v1936_v54, %v5126_v9  ;;  %v1865_v32 = vpop.f32.mrb[59].mxu0  ;;  %v1938_v57 = vpop.f32.mrb[59].mxu1 }
 0x852   :  { %v5181_v34 = vpack.c.bf16 %v1862_v17, %v1860_v16  ;;  %v5183_v38 = vpack.c.bf16 %v1935_v18, %v1933_v63  ;;  %v1866_v48 = vadd.f32 %v1865_v32, %v5130_v60  ;;  %v1939_v5 = vadd.f32 %v1938_v57, %v5134_v53  ;;  %v35_v16 = vld [vmem:[%s5700_s5 + $0x8] sm:$0xff] }
 0x853   :  { %v2106_v63 = vpack.c.bf16 %v35_v16, %v35_v16 }
 0x854   :  { %v5187_v37 = vpack.c.bf16 %v1866_v48, %v1864_v55  ;;  %v5189_v62 = vpack.c.bf16 %v1939_v5, %v1937_v56 }
 0x856   :  { %5743 = vst [vmem:[#allocation7_spill] sm:$0xff] %v5187_v37  ;;  %5744 = vst [vmem:[#allocation8_spill] sm:$0xff] %v5189_v62  ;;  %v3644_v4 = vld [vmem:[#allocation5 + $0x18] sm:$0xff]  }
 0x857   :  { %1868 = vmatmul.mubr.bf16.gmra.mrb[60].mxu0 %v3644_v4  ;;  %1941 = vmatmul.mubr.bf16.gmra.mrb[60].mxu1 %v3644_v4 }
 0x858   :  { %2299 = vmatprep.mubr.bf16.mxu0 %v5732_v11  ;;  %2340 = vmatprep.mubr.bf16.mxu1 %v5732_v11 }
 0x85f   :  { %2300 = vmatmul.mubr.bf16.vlgmr.msra.gmra.mrb[64].mxu0 %v2106_v63  ;;  %2341 = vmatmul.mubr.bf16.vlgmr.msra.gmra.mrb[64].mxu1 %v2106_v63 }
 0x860   :  { %2386 = vmatpush1.bf16.msra.mxu0 %v4932_v12  ;;  %2427 = vmatpush1.bf16.msra.mxu1 %v4937_v1 }
 0x861   :  { %2387 = vmatprep.subr.bf16.mxu0 %v4946_v0  ;;  %2428 = vmatprep.subr.bf16.mxu1 %v4951_v22 }
 0x862   :  { %2417 = vmatprep.mubr.bf16.mxu0 %v5732_v11  ;;  %2458 = vmatprep.mubr.bf16.mxu1 %v5732_v11 }
 0x864   :  { %2388 = vmatpush1.bf16.msra.mxu0 %v4956_v23  ;;  %2429 = vmatpush1.bf16.msra.mxu1 %v4961_v24 }
 0x865   :  { %2389 = vmatprep.subr.bf16.mxu0 %v4970_v25  ;;  %2430 = vmatprep.subr.bf16.mxu1 %v4975_v28 }
 0x868   :  { %2390 = vmatpush1.bf16.msra.mxu0 %v4980_v29  ;;  %2431 = vmatpush1.bf16.msra.mxu1 %v4985_v31 }
 0x869   :  { %2391 = vmatprep.subr.bf16.mxu0 %v4994_v7  ;;  %2432 = vmatprep.subr.bf16.mxu1 %v4999_v26 }
 0x86c   :  { %2392 = vmatpush1.bf16.msra.mxu0 %v5004_v27  ;;  %2433 = vmatpush1.bf16.msra.mxu1 %v5009_v14 }
 0x86d   :  { %2393 = vmatprep.subr.bf16.mxu0 %v5018_v49  ;;  %2434 = vmatprep.subr.bf16.mxu1 %v5023_v61 }
 0x870   :  { %2394 = vmatpush1.bf16.msra.mxu0 %v5028_v30  ;;  %2435 = vmatpush1.bf16.msra.mxu1 %v5033_v46 }
 0x871   :  { %2395 = vmatprep.subr.bf16.mxu0 %v5042_v47  ;;  %2436 = vmatprep.subr.bf16.mxu1 %v5047_v50 }
 0x874   :  { %2396 = vmatpush1.bf16.msra.mxu0 %v5052_v51  ;;  %2437 = vmatpush1.bf16.msra.mxu1 %v5057_v52 }
 0x875   :  { %2397 = vmatprep.subr.bf16.mxu0 %v5066_v58  ;;  %2438 = vmatprep.subr.bf16.mxu1 %v5071_v35 }
 0x878   :  { %2398 = vmatpush1.bf16.msra.mxu0 %v5076_v36  ;;  %2439 = vmatpush1.bf16.msra.mxu1 %v5081_v39 }
 0x879   :  { %2399 = vmatprep.subr.bf16.mxu0 %v5088_v40  ;;  %2440 = vmatprep.subr.bf16.mxu1 %v5093_v41 }
 0x87c   :  { %2400 = vmatpush1.bf16.msra.mxu0 %v5100_v42  ;;  %2441 = vmatpush1.bf16.msra.mxu1 %v5105_v44 }
 0x87d   :  { %2504 = vmatprep.subr.bf16.mxu0 %v4922_v10  ;;  %2545 = vmatprep.subr.bf16.mxu1 %v4927_v15 }
 0x92a   :  { %v1869_v59 = vpop.f32.mrb[60].mxu0  ;;  %v1942_v13 = vpop.f32.mrb[60].mxu1 }
 0x92b   :  { %v1870_v17 = vadd.f32 %v1869_v59, %v5122_v21  ;;  %v1943_v18 = vadd.f32 %v1942_v13, %v5126_v9  ;;  %v1871_v19 = vpop.f32.mrb[61].mxu0  ;;  %v1944_v54 = vpop.f32.mrb[61].mxu1 }
 0x92c   :  { %v1872_v55 = vadd.f32 %v1871_v19, %v5130_v60  ;;  %v1945_v56 = vadd.f32 %v1944_v54, %v5134_v53  ;;  %v1873_v32 = vpop.f32.mrb[62].mxu0  ;;  %v1946_v57 = vpop.f32.mrb[62].mxu1  ;;  %v2102_v54 = vunpack.c.l.bf16 %v5146_v2 }
 0x92d   :  { %v1874_v48 = vadd.f32 %v1873_v32, %v5122_v21  ;;  %v1947_v5 = vadd.f32 %v1946_v57, %v5126_v9  ;;  %v1875_v4 = vpop.f32.mrb[63].mxu0  ;;  %v1948_v16 = vpop.f32.mrb[63].mxu1  ;;  %v2104_v21 = vunpack.c.l.bf16 %v5148_v6  ;;  %v2103_v57 = vunpack.c.h.bf16 %v5146_v2 }
 0x92e   :  { %v5236_v63 = vpack.c.bf16 %v1872_v55, %v1870_v17  ;;  %v5238_v62 = vpack.c.bf16 %v1945_v56, %v1943_v18  ;;  %v1876_v59 = vadd.f32 %v1875_v4, %v5130_v60  ;;  %v1949_v13 = vadd.f32 %v1948_v16, %v5134_v53 }
 0x92f   :  { %v2105_v17 = vunpack.c.h.bf16 %v5148_v6 }
 0x930   :  { %5745 = vst [vmem:[#allocation9_spill] sm:$0xff] %v5236_v63  ;;  %5746 = vst [vmem:[#allocation10_spill] sm:$0xff] %v5238_v62  ;;  %v5242_v37 = vpack.c.bf16 %v1876_v59, %v1874_v48  ;;  %v5244_v19 = vpack.c.bf16 %v1949_v13, %v1947_v5 }
 0x932   :  { %5747 = vst [vmem:[#allocation11_spill] sm:$0xff] %v5242_v37  ;;  %5748 = vst [vmem:[#allocation6_spill] sm:$0xff] %v5244_v19  ;;  %v2301_v32 = vpop.f32.mrb[64].mxu0  ;;  %v2342_v9 = vpop.f32.mrb[64].mxu1 }
 0x933   :  { %v2349_v18 = vadd.f32 %v2301_v32, %v2102_v54  ;;  %v2351_v55 = vadd.f32 %v2342_v9, %v2104_v21  ;;  %v2303_v56 = vpop.f32.mrb[65].mxu0  ;;  %v2344_v60 = vpop.f32.mrb[65].mxu1  ;;  %v39_v9 = vld [vmem:[%s5702_s6 + $0x8] sm:$0xff] }
 0x934   :  { %v2350_v4 = vadd.f32 %v2303_v56, %v2103_v57  ;;  %v2352_v53 = vadd.f32 %v2344_v60, %v2105_v17  ;;  %v2305_v48 = vpop.f32.mrb[66].mxu0  ;;  %v2346_v16 = vpop.f32.mrb[66].mxu1  ;;  %v2380_v60 = vunpack.c.l.bf16 %v5152_v20 }
 0x935   :  { %v3439_v5 = vmul.f32 -1.442695, %v2349_v18  ;;  %v2306_v59 = vpop.f32.mrb[67].mxu0  ;;  %v2347_v13 = vpop.f32.mrb[67].mxu1  ;;  %v3441_v37 = vmul.f32 -1.442695, %v2351_v55  ;;  %v2381_v16 = vunpack.c.h.bf16 %v5152_v20 }
 0x936   :  { %v3440_v19 = vmul.f32 -1.442695, %v2350_v4  ;;  %v2382_v4 = vunpack.c.l.bf16 %v5154_v45 }
 0x937   :  { %3785 = vpow2.f32 %v3439_v5  ;;  %v2383_v5 = vunpack.c.h.bf16 %v5154_v45 }
 0x938   :  { %3787 = vpow2.f32 %v3440_v19 }
 0x939   :  { %3789 = vtanh.f32 %v2352_v53 }
 0x93a   :  { %3791 = vpow2.f32 %v3441_v37 }
 0x941   :  { %v3786_v62 = vpop.eup %3785 }
 0x942   :  { %v2362_v63 = vadd.f32 1.0, %v3786_v62  ;;  %v3788_v2 = vpop.eup %3787 }
 0x943   :  { %v2363_v6 = vadd.f32 1.0, %v3788_v2  ;;  %v3790_v54 = vpop.eup %3789 }
 0x944   :  { %3793 = vrcp.f32 %v2362_v63  ;;  %v3792_v21 = vpop.eup %3791 }
 0x945   :  { %3795 = vrcp.f32 %v2363_v6  ;;  %v2364_v18 = vadd.f32 1.0, %v3792_v21 }
 0x947   :  { %3797 = vrcp.f32 %v2364_v18 }
 0x94e   :  { %v3794_v32 = vpop.eup %3793 }
 0x94f   :  { %v2373_v57 = vmul.f32 %v3794_v32, %v3790_v54  ;;  %v3796_v17 = vpop.eup %3795 }
 0x950   :  { %v2372_v19 = vmul.f32 %v3796_v17, %v39_v9 }
 0x951   :  { %v3798_v37 = vpop.eup %3797 }
 0x952   :  { %v5253_v55 = vadd.f32 %v2373_v57, %v2372_v19 }
 0x954   :  { %3799 = vtanh.f32 %v5253_v55 }
 0x95e   :  { %v3800_v62 = vpop.eup %3799 }
 0x95f   :  { %v2376_v63 = vmul.f32 %v3800_v62, %v3798_v37 }
 0x961   :  { %2377 = vst [vmem:[%s5706_s7] sm:$0xff] %v2376_v63  ;;  %v2384_v56 = vpack.c.bf16 %v2376_v63, %v2376_v63 }
 0x963   :  { %2418 = vmatmul.mubr.bf16.vlgmr.msra.gmra.mrb[68].mxu0 %v2384_v56  ;;  %2459 = vmatmul.mubr.bf16.vlgmr.msra.gmra.mrb[68].mxu1 %v2384_v56 }
 0x964   :  { %2505 = vmatpush1.bf16.msra.mxu0 %v4932_v12  ;;  %2546 = vmatpush1.bf16.msra.mxu1 %v4937_v1 }
 0x965   :  { %2506 = vmatprep.subr.bf16.mxu0 %v4946_v0  ;;  %2547 = vmatprep.subr.bf16.mxu1 %v4951_v22 }
 0x966   :  { %2536 = vmatprep.mubr.bf16.mxu0 %v5732_v11  ;;  %2577 = vmatprep.mubr.bf16.mxu1 %v5732_v11 }
 0x968   :  { %2507 = vmatpush1.bf16.msra.mxu0 %v4956_v23  ;;  %2548 = vmatpush1.bf16.msra.mxu1 %v4961_v24 }
 0x969   :  { %2508 = vmatprep.subr.bf16.mxu0 %v4970_v25  ;;  %2549 = vmatprep.subr.bf16.mxu1 %v4975_v28 }
 0x96c   :  { %2509 = vmatpush1.bf16.msra.mxu0 %v4980_v29  ;;  %2550 = vmatpush1.bf16.msra.mxu1 %v4985_v31 }
 0x96d   :  { %2510 = vmatprep.subr.bf16.mxu0 %v4994_v7  ;;  %2551 = vmatprep.subr.bf16.mxu1 %v4999_v26 }
 0x970   :  { %2511 = vmatpush1.bf16.msra.mxu0 %v5004_v27  ;;  %2552 = vmatpush1.bf16.msra.mxu1 %v5009_v14 }
 0x971   :  { %2512 = vmatprep.subr.bf16.mxu0 %v5018_v49  ;;  %2553 = vmatprep.subr.bf16.mxu1 %v5023_v61 }
 0x974   :  { %2513 = vmatpush1.bf16.msra.mxu0 %v5028_v30  ;;  %2554 = vmatpush1.bf16.msra.mxu1 %v5033_v46 }
 0x975   :  { %2514 = vmatprep.subr.bf16.mxu0 %v5042_v47  ;;  %2555 = vmatprep.subr.bf16.mxu1 %v5047_v50 }
 0x978   :  { %2515 = vmatpush1.bf16.msra.mxu0 %v5052_v51  ;;  %2556 = vmatpush1.bf16.msra.mxu1 %v5057_v52 }
 0x979   :  { %2516 = vmatprep.subr.bf16.mxu0 %v5066_v58  ;;  %2557 = vmatprep.subr.bf16.mxu1 %v5071_v35 }
 0x97c   :  { %2517 = vmatpush1.bf16.msra.mxu0 %v5076_v36  ;;  %2558 = vmatpush1.bf16.msra.mxu1 %v5081_v39 }
 0x97d   :  { %2518 = vmatprep.subr.bf16.mxu0 %v5088_v40  ;;  %2559 = vmatprep.subr.bf16.mxu1 %v5093_v41 }
 0x980   :  { %2519 = vmatpush1.bf16.msra.mxu0 %v5100_v42  ;;  %2560 = vmatpush1.bf16.msra.mxu1 %v5105_v44 }
 0x981   :  { %2623 = vmatprep.subr.bf16.mxu0 %v4922_v10  ;;  %2664 = vmatprep.subr.bf16.mxu1 %v4927_v15 }
 0xa36   :  { %v2419_v53 = vpop.f32.mrb[68].mxu0  ;;  %v2460_v48 = vpop.f32.mrb[68].mxu1 }
 0xa37   :  { %v2467_v59 = vadd.f32 %v2419_v53, %v2380_v60  ;;  %v2469_v13 = vadd.f32 %v2460_v48, %v2382_v4  ;;  %v2421_v2 = vpop.f32.mrb[69].mxu0  ;;  %v2462_v6 = vpop.f32.mrb[69].mxu1 }
 0xa38   :  { %v2468_v54 = vadd.f32 %v2421_v2, %v2381_v16  ;;  %v2470_v21 = vadd.f32 %v2462_v6, %v2383_v5  ;;  %v2423_v32 = vpop.f32.mrb[70].mxu0  ;;  %v2464_v9 = vpop.f32.mrb[70].mxu1 }
 0xa39   :  { %v3442_v57 = vmul.f32 -1.442695, %v2467_v59  ;;  %v2424_v17 = vpop.f32.mrb[71].mxu0  ;;  %v2465_v18 = vpop.f32.mrb[71].mxu1  ;;  %v3444_v37 = vmul.f32 -1.442695, %v2469_v13 }
 0xa3a   :  { %v3443_v19 = vmul.f32 -1.442695, %v2468_v54  ;;  %v2502_v17 = vunpack.c.h.bf16 %v5164_v43 }
 0xa3b   :  { %3801 = vpow2.f32 %v3442_v57  ;;  %v2500_v57 = vunpack.c.h.bf16 %v5162_v33 }
 0xa3c   :  { %3803 = vpow2.f32 %v3443_v19 }
 0xa3d   :  { %3805 = vtanh.f32 %v2470_v21  ;;  %v2501_v21 = vunpack.c.l.bf16 %v5164_v43 }
 0xa3e   :  { %3807 = vpow2.f32 %v3444_v37 }
 0xa45   :  { %v3802_v62 = vpop.eup %3801 }
 0xa46   :  { %v2480_v63 = vadd.f32 1.0, %v3802_v62  ;;  %v3804_v20 = vpop.eup %3803 }
 0xa47   :  { %v2481_v45 = vadd.f32 1.0, %v3804_v20  ;;  %v3806_v56 = vpop.eup %3805 }
 0xa48   :  { %3809 = vrcp.f32 %v2480_v63  ;;  %v3808_v60 = vpop.eup %3807 }
 0xa49   :  { %3811 = vrcp.f32 %v2481_v45  ;;  %v2482_v16 = vadd.f32 1.0, %v3808_v60 }
 0xa4b   :  { %3813 = vrcp.f32 %v2482_v16 }
 0xa52   :  { %v3810_v4 = vpop.eup %3809 }
 0xa53   :  { %v2491_v53 = vmul.f32 %v3810_v4, %v3806_v56  ;;  %v3812_v48 = vpop.eup %3811 }
 0xa54   :  { %v2490_v5 = vmul.f32 %v3812_v48, %v5253_v55  ;;  %v2499_v55 = vunpack.c.l.bf16 %v5162_v33 }
 0xa55   :  { %v3814_v13 = vpop.eup %3813 }
 0xa56   :  { %v5298_v59 = vadd.f32 %v2491_v53, %v2490_v5 }
 0xa58   :  { %3815 = vtanh.f32 %v5298_v59 }
 0xa62   :  { %v3816_v2 = vpop.eup %3815 }
 0xa63   :  { %v2494_v6 = vmul.f32 %v3816_v2, %v3814_v13 }
 0xa65   :  { %3445 = vst [vmem:[%s5706_s7 + $0x8] sm:$0xff] %v2494_v6  ;;  %v2503_v54 = vpack.c.bf16 %v2494_v6, %v2494_v6 }
 0xa67   :  { %2537 = vmatmul.mubr.bf16.vlgmr.msra.gmra.mrb[72].mxu0 %v2503_v54  ;;  %2578 = vmatmul.mubr.bf16.vlgmr.msra.gmra.mrb[72].mxu1 %v2503_v54 }
 0xa68   :  { %2624 = vmatpush1.bf16.msra.mxu0 %v4932_v12  ;;  %2665 = vmatpush1.bf16.msra.mxu1 %v4937_v1 }
 0xa69   :  { %2625 = vmatprep.subr.bf16.mxu0 %v4946_v0  ;;  %2666 = vmatprep.subr.bf16.mxu1 %v4951_v22 }
 0xa6a   :  { %2655 = vmatprep.mubr.bf16.mxu0 %v5732_v11  ;;  %2696 = vmatprep.mubr.bf16.mxu1 %v5732_v11 }
 0xa6c   :  { %2626 = vmatpush1.bf16.msra.mxu0 %v4956_v23  ;;  %2667 = vmatpush1.bf16.msra.mxu1 %v4961_v24 }
 0xa6d   :  { %2627 = vmatprep.subr.bf16.mxu0 %v4970_v25  ;;  %2668 = vmatprep.subr.bf16.mxu1 %v4975_v28 }
 0xa70   :  { %2628 = vmatpush1.bf16.msra.mxu0 %v4980_v29  ;;  %2669 = vmatpush1.bf16.msra.mxu1 %v4985_v31 }
 0xa71   :  { %2629 = vmatprep.subr.bf16.mxu0 %v4994_v7  ;;  %2670 = vmatprep.subr.bf16.mxu1 %v4999_v26 }
 0xa74   :  { %2630 = vmatpush1.bf16.msra.mxu0 %v5004_v27  ;;  %2671 = vmatpush1.bf16.msra.mxu1 %v5009_v14 }
 0xa75   :  { %2631 = vmatprep.subr.bf16.mxu0 %v5018_v49  ;;  %2672 = vmatprep.subr.bf16.mxu1 %v5023_v61 }
 0xa78   :  { %2632 = vmatpush1.bf16.msra.mxu0 %v5028_v30  ;;  %2673 = vmatpush1.bf16.msra.mxu1 %v5033_v46 }
 0xa79   :  { %2633 = vmatprep.subr.bf16.mxu0 %v5042_v47  ;;  %2674 = vmatprep.subr.bf16.mxu1 %v5047_v50 }
 0xa7c   :  { %2634 = vmatpush1.bf16.msra.mxu0 %v5052_v51  ;;  %2675 = vmatpush1.bf16.msra.mxu1 %v5057_v52 }
 0xa7d   :  { %2635 = vmatprep.subr.bf16.mxu0 %v5066_v58  ;;  %2676 = vmatprep.subr.bf16.mxu1 %v5071_v35 }
 0xa80   :  { %2636 = vmatpush1.bf16.msra.mxu0 %v5076_v36  ;;  %2677 = vmatpush1.bf16.msra.mxu1 %v5081_v39 }
 0xa81   :  { %2637 = vmatprep.subr.bf16.mxu0 %v5088_v40  ;;  %2678 = vmatprep.subr.bf16.mxu1 %v5093_v41 }
 0xa84   :  { %2638 = vmatpush1.bf16.msra.mxu0 %v5100_v42  ;;  %2679 = vmatpush1.bf16.msra.mxu1 %v5105_v44 }
 0xa85   :  { %2742 = vmatprep.subr.bf16.mxu0 %v4922_v10  ;;  %2783 = vmatprep.subr.bf16.mxu1 %v4927_v15 }
 0xb3a   :  { %v2538_v32 = vpop.f32.mrb[72].mxu0  ;;  %v2579_v9 = vpop.f32.mrb[72].mxu1 }
 0xb3b   :  { %v2586_v18 = vadd.f32 %v2538_v32, %v2499_v55  ;;  %v2588_v19 = vadd.f32 %v2579_v9, %v2501_v21  ;;  %v2540_v37 = vpop.f32.mrb[73].mxu0  ;;  %v2581_v62 = vpop.f32.mrb[73].mxu1 }
 0xb3c   :  { %v2587_v63 = vadd.f32 %v2540_v37, %v2500_v57  ;;  %v2589_v20 = vadd.f32 %v2581_v62, %v2502_v17  ;;  %v2542_v45 = vpop.f32.mrb[74].mxu0  ;;  %v2583_v56 = vpop.f32.mrb[74].mxu1 }
 0xb3d   :  { %v3446_v60 = vmul.f32 -1.442695, %v2586_v18  ;;  %v2543_v4 = vpop.f32.mrb[75].mxu0  ;;  %v2584_v53 = vpop.f32.mrb[75].mxu1  ;;  %v3448_v16 = vmul.f32 -1.442695, %v2588_v19 }
 0xb3e   :  { %v3447_v48 = vmul.f32 -1.442695, %v2587_v63 }
 0xb3f   :  { %3817 = vpow2.f32 %v3446_v60 }
 0xb40   :  { %3819 = vpow2.f32 %v3447_v48 }
 0xb41   :  { %3821 = vtanh.f32 %v2589_v20 }
 0xb42   :  { %3823 = vpow2.f32 %v3448_v16 }
 0xb49   :  { %v3818_v5 = vpop.eup %3817 }
 0xb4a   :  { %v2599_v13 = vadd.f32 1.0, %v3818_v5  ;;  %v3820_v33 = vpop.eup %3819 }
 0xb4b   :  { %v2600_v43 = vadd.f32 1.0, %v3820_v33  ;;  %v3822_v2 = vpop.eup %3821  ;;  %v5397_v33 = vld [vmem:[%s5698_s3 + $0x100] ss:$16 sps:$4 sm:$0xff]  }
 0xb4c   :  { %3825 = vrcp.f32 %v2599_v13  ;;  %v3824_v6 = vpop.eup %3823 }
 0xb4d   :  { %3827 = vrcp.f32 %v2600_v43  ;;  %v2601_v32 = vadd.f32 1.0, %v3824_v6  ;;  %v5403_v43 = vld [vmem:[%s5698_s3 + $0x108] ss:$16 sps:$4 sm:$0xff]   ;;  %v5415_v6 = vld [vmem:[%s5698_s3 + $0x12c] ss:$16 sps:$4 sm:$0xff]  }
 0xb4f   :  { %3829 = vrcp.f32 %v2601_v32  ;;  %v5441_v32 = vld [vmem:[%s5698_s3 + $0x14c] ss:$16 sps:$4 sm:$0xff]  }
 0xb56   :  { %v3826_v54 = vpop.eup %3825 }
 0xb57   :  { %v2610_v55 = vmul.f32 %v3826_v54, %v3822_v2  ;;  %v3828_v21 = vpop.eup %3827  ;;  %v5409_v2 = vld [vmem:[%s5698_s3 + $0x124] ss:$16 sps:$4 sm:$0xff]   ;;  %v5423_v54 = vld [vmem:[%s5698_s3 + $0x120] ss:$16 sps:$4 sm:$0xff]  }
 0xb58   :  { %v2609_v9 = vmul.f32 %v3828_v21, %v5298_v59  ;;  %v5435_v21 = vld [vmem:[%s5698_s3 + $0x144] ss:$16 sps:$4 sm:$0xff]  }
 0xb59   :  { %v3830_v17 = vpop.eup %3829 }
 0xb5a   :  { %v5343_v57 = vadd.f32 %v2610_v55, %v2609_v9  ;;  %v5429_v55 = vld [vmem:[%s5698_s3 + $0x128] ss:$16 sps:$4 sm:$0xff]   ;;  %v5447_v9 = vld [vmem:[%s5698_s3 + $0x140] ss:$16 sps:$4 sm:$0xff]  }
 0xb5c   :  { %3831 = vtanh.f32 %v5343_v57 }
 0xb66   :  { %v3832_v18 = vpop.eup %3831 }
 0xb67   :  { %v2613_v19 = vmul.f32 %v3832_v18, %v3830_v17  ;;  %v5459_v17 = vld [vmem:[%s5698_s3 + $0x164] ss:$16 sps:$4 sm:$0xff]   ;;  %v5465_v18 = vld [vmem:[%s5698_s3 + $0x16c] ss:$16 sps:$4 sm:$0xff]  }
 0xb69   :  { %3449 = vst [vmem:[%s5706_s7 + $0x10] sm:$0xff] %v2613_v19  ;;  %v2622_v37 = vpack.c.bf16 %v2613_v19, %v2613_v19  ;;  %v5471_v19 = vld [vmem:[%s5698_s3 + $0x160] ss:$16 sps:$4 sm:$0xff]  }
 0xb6b   :  { %2656 = vmatmul.mubr.bf16.vlgmr.msra.gmra.mrb[76].mxu0 %v2622_v37  ;;  %2697 = vmatmul.mubr.bf16.vlgmr.msra.gmra.mrb[76].mxu1 %v2622_v37  ;;  %v5477_v37 = vld [vmem:[%s5698_s3 + $0x168] ss:$16 sps:$4 sm:$0xff]  }
 0xb6c   :  { %2743 = vmatpush1.bf16.msra.mxu0 %v4932_v12  ;;  %2784 = vmatpush1.bf16.msra.mxu1 %v4937_v1  ;;  %v2618_v12 = vunpack.c.l.bf16 %v5168_v8  ;;  %v2620_v1 = vunpack.c.l.bf16 %v5170_v3 }
 0xb6d   :  { %2744 = vmatprep.subr.bf16.mxu0 %v4946_v0  ;;  %2785 = vmatprep.subr.bf16.mxu1 %v4951_v22 }
 0xb6e   :  { %2774 = vmatprep.mubr.bf16.mxu0 %v5732_v11  ;;  %2815 = vmatprep.mubr.bf16.mxu1 %v5732_v11 }
 0xb70   :  { %2745 = vmatpush1.bf16.msra.mxu0 %v4956_v23  ;;  %2786 = vmatpush1.bf16.msra.mxu1 %v4961_v24  ;;  %v2619_v23 = vunpack.c.h.bf16 %v5168_v8  ;;  %v2621_v24 = vunpack.c.h.bf16 %v5170_v3 }
 0xb71   :  { %2746 = vmatprep.subr.bf16.mxu0 %v4970_v25  ;;  %2787 = vmatprep.subr.bf16.mxu1 %v4975_v28 }
 0xb74   :  { %2747 = vmatpush1.bf16.msra.mxu0 %v4980_v29  ;;  %2788 = vmatpush1.bf16.msra.mxu1 %v4985_v31 }
 0xb75   :  { %2748 = vmatprep.subr.bf16.mxu0 %v4994_v7  ;;  %2789 = vmatprep.subr.bf16.mxu1 %v4999_v26 }
 0xb78   :  { %2749 = vmatpush1.bf16.msra.mxu0 %v5004_v27  ;;  %2790 = vmatpush1.bf16.msra.mxu1 %v5009_v14 }
 0xb79   :  { %2750 = vmatprep.subr.bf16.mxu0 %v5018_v49  ;;  %2791 = vmatprep.subr.bf16.mxu1 %v5023_v61 }
 0xb7c   :  { %2751 = vmatpush1.bf16.msra.mxu0 %v5028_v30  ;;  %2792 = vmatpush1.bf16.msra.mxu1 %v5033_v46 }
 0xb7d   :  { %2752 = vmatprep.subr.bf16.mxu0 %v5042_v47  ;;  %2793 = vmatprep.subr.bf16.mxu1 %v5047_v50 }
 0xb80   :  { %2753 = vmatpush1.bf16.msra.mxu0 %v5052_v51  ;;  %2794 = vmatpush1.bf16.msra.mxu1 %v5057_v52 }
 0xb81   :  { %2754 = vmatprep.subr.bf16.mxu0 %v5066_v58  ;;  %2795 = vmatprep.subr.bf16.mxu1 %v5071_v35 }
 0xb84   :  { %2755 = vmatpush1.bf16.msra.mxu0 %v5076_v36  ;;  %2796 = vmatpush1.bf16.msra.mxu1 %v5081_v39 }
 0xb85   :  { %2756 = vmatprep.subr.bf16.mxu0 %v5088_v40  ;;  %2797 = vmatprep.subr.bf16.mxu1 %v5093_v41 }
 0xb88   :  { %2757 = vmatpush1.bf16.msra.mxu0 %v5100_v42  ;;  %2798 = vmatpush1.bf16.msra.mxu1 %v5105_v44 }
 0xb89   :  { %2861 = vmatprep.subr.bf16.mxu0 %v4922_v10  ;;  %2902 = vmatprep.subr.bf16.mxu1 %v4927_v15 }
 0xc3e   :  { %v2657_v0 = vpop.f32.mrb[76].mxu0  ;;  %v2698_v22 = vpop.f32.mrb[76].mxu1 }
 0xc3f   :  { %v2705_v25 = vadd.f32 %v2657_v0, %v2618_v12  ;;  %v2707_v28 = vadd.f32 %v2698_v22, %v2620_v1  ;;  %v2659_v29 = vpop.f32.mrb[77].mxu0  ;;  %v2700_v31 = vpop.f32.mrb[77].mxu1  ;;  %v5483_v12 = vld [vmem:[%s5698_s3 + $0x184] ss:$16 sps:$4 sm:$0xff]   ;;  %v5489_v1 = vld [vmem:[%s5698_s3 + $0x18c] ss:$16 sps:$4 sm:$0xff]  }
 0xc40   :  { %v2706_v7 = vadd.f32 %v2659_v29, %v2619_v23  ;;  %v2708_v26 = vadd.f32 %v2700_v31, %v2621_v24  ;;  %v2661_v27 = vpop.f32.mrb[78].mxu0  ;;  %v2702_v10 = vpop.f32.mrb[78].mxu1  ;;  %v5495_v0 = vld [vmem:[%s5698_s3 + $0x180] ss:$16 sps:$4 sm:$0xff]   ;;  %v5501_v22 = vld [vmem:[%s5698_s3 + $0x188] ss:$16 sps:$4 sm:$0xff]  }
 0xc41   :  { %v3450_v14 = vmul.f32 -1.442695, %v2705_v25  ;;  %v2662_v15 = vpop.f32.mrb[79].mxu0  ;;  %v2703_v49 = vpop.f32.mrb[79].mxu1  ;;  %v3452_v30 = vmul.f32 -1.442695, %v2707_v28 }
 0xc42   :  { %v3451_v61 = vmul.f32 -1.442695, %v2706_v7 }
 0xc43   :  { %3833 = vpow2.f32 %v3450_v14 }
 0xc44   :  { %3835 = vpow2.f32 %v3451_v61 }
 0xc45   :  { %3837 = vtanh.f32 %v2708_v26 }
 0xc46   :  { %3839 = vpow2.f32 %v3452_v30 }
 0xc4d   :  { %v3834_v46 = vpop.eup %3833 }
 0xc4e   :  { %v2718_v59 = vadd.f32 1.0, %v3834_v46  ;;  %v3836_v8 = vpop.eup %3835 }
 0xc4f   :  { %v2719_v3 = vadd.f32 1.0, %v3836_v8  ;;  %v3838_v62 = vpop.eup %3837 }
 0xc50   :  { %3841 = vrcp.f32 %v2718_v59  ;;  %v3840_v63 = vpop.eup %3839 }
 0xc51   :  { %3843 = vrcp.f32 %v2719_v3  ;;  %v2720_v60 = vadd.f32 1.0, %v3840_v63 }
 0xc53   :  { %3845 = vrcp.f32 %v2720_v60  ;;  %v5568_v60 = vld [vmem:[%s5698_s3 + $0x1ac] ss:$16 sps:$4 sm:$0xff]  }
 0xc5a   :  { %v3842_v20 = vpop.eup %3841 }
 0xc5b   :  { %v2729_v45 = vmul.f32 %v3842_v20, %v3838_v62  ;;  %v3844_v56 = vpop.eup %3843 }
 0xc5c   :  { %v2728_v4 = vmul.f32 %v3844_v56, %v5343_v57  ;;  %v5453_v57 = vld [vmem:[%s5698_s3 + $0x148] ss:$16 sps:$4 sm:$0xff]   ;;  %v5562_v56 = vld [vmem:[%s5698_s3 + $0x1a4] ss:$16 sps:$4 sm:$0xff]  }
 0xc5d   :  { %v3846_v48 = vpop.eup %3845 }
 0xc5e   :  { %v5388_v53 = vadd.f32 %v2729_v45, %v2728_v4  ;;  %v5574_v4 = vld [vmem:[%s5698_s3 + $0x1a0] ss:$16 sps:$4 sm:$0xff]  }
 0xc60   :  { %3847 = vtanh.f32 %v5388_v53 }
 0xc6a   :  { %v3848_v16 = vpop.eup %3847 }
 0xc6b   :  { %v2732_v5 = vmul.f32 %v3848_v16, %v3846_v48  ;;  %v5586_v48 = vld [vmem:[%s5698_s3 + $0x1c4] ss:$16 sps:$4 sm:$0xff]   ;;  %v5592_v16 = vld [vmem:[%s5698_s3 + $0x1cc] ss:$16 sps:$4 sm:$0xff]  }
 0xc6d   :  { %3453 = vst [vmem:[%s5706_s7 + $0x18] sm:$0xff] %v2732_v5  ;;  %v2741_v13 = vpack.c.bf16 %v2732_v5, %v2732_v5  ;;  %v5598_v5 = vld [vmem:[%s5698_s3 + $0x1c0] ss:$16 sps:$4 sm:$0xff]  }
 0xc6f   :  { %2775 = vmatmul.mubr.bf16.vlgmr.msra.gmra.mrb[80].mxu0 %v2741_v13  ;;  %2816 = vmatmul.mubr.bf16.vlgmr.msra.gmra.mrb[80].mxu1 %v2741_v13  ;;  %v5604_v13 = vld [vmem:[%s5698_s3 + $0x1c8] ss:$16 sps:$4 sm:$0xff]  }
 0xc70   :  { %2862 = vmatpush1.bf16.msra.mxu0 %v5397_v33  ;;  %2903 = vmatpush1.bf16.msra.mxu1 %v5403_v43 }
 0xc71   :  { %2863 = vmatprep.subr.bf16.mxu0 %v5409_v2  ;;  %2904 = vmatprep.subr.bf16.mxu1 %v5415_v6 }
 0xc72   :  { %2893 = vmatprep.mubr.bf16.mxu0 %v5732_v11  ;;  %2934 = vmatprep.mubr.bf16.mxu1 %v5732_v11 }
 0xc74   :  { %2864 = vmatpush1.bf16.msra.mxu0 %v5423_v54  ;;  %2905 = vmatpush1.bf16.msra.mxu1 %v5429_v55 }
 0xc75   :  { %2865 = vmatprep.subr.bf16.mxu0 %v5435_v21  ;;  %2906 = vmatprep.subr.bf16.mxu1 %v5441_v32 }
 0xc78   :  { %2866 = vmatpush1.bf16.msra.mxu0 %v5447_v9  ;;  %2907 = vmatpush1.bf16.msra.mxu1 %v5453_v57 }
 0xc79   :  { %2867 = vmatprep.subr.bf16.mxu0 %v5459_v17  ;;  %2908 = vmatprep.subr.bf16.mxu1 %v5465_v18 }
 0xc7c   :  { %2868 = vmatpush1.bf16.msra.mxu0 %v5471_v19  ;;  %2909 = vmatpush1.bf16.msra.mxu1 %v5477_v37 }
 0xc7d   :  { %2869 = vmatprep.subr.bf16.mxu0 %v5483_v12  ;;  %2910 = vmatprep.subr.bf16.mxu1 %v5489_v1 }
 0xc80   :  { %2870 = vmatpush1.bf16.msra.mxu0 %v5495_v0  ;;  %2911 = vmatpush1.bf16.msra.mxu1 %v5501_v22 }
 0xc81   :  { %2871 = vmatprep.subr.bf16.mxu0 %v5042_v47  ;;  %2912 = vmatprep.subr.bf16.mxu1 %v5047_v50  ;;  %v5519_v47 = vld [vmem:[%s5698_s3 + $0x104] ss:$16 sps:$4 sm:$0xff]   ;;  %v5525_v50 = vld [vmem:[%s5698_s3 + $0x10c] ss:$16 sps:$4 sm:$0xff]  }
 0xc84   :  { %2872 = vmatpush1.bf16.msra.mxu0 %v5052_v51  ;;  %2913 = vmatpush1.bf16.msra.mxu1 %v5057_v52  ;;  %v2737_v51 = vunpack.c.l.bf16 %v5181_v34  ;;  %v2739_v52 = vunpack.c.l.bf16 %v5183_v38 }
 0xc85   :  { %2873 = vmatprep.subr.bf16.mxu0 %v5066_v58  ;;  %2914 = vmatprep.subr.bf16.mxu1 %v5071_v35 }
 0xc88   :  { %2874 = vmatpush1.bf16.msra.mxu0 %v5076_v36  ;;  %2915 = vmatpush1.bf16.msra.mxu1 %v5081_v39  ;;  %v2738_v36 = vunpack.c.h.bf16 %v5181_v34  ;;  %v2740_v39 = vunpack.c.h.bf16 %v5183_v38 }
 0xc89   :  { %2875 = vmatprep.subr.bf16.mxu0 %v5088_v40  ;;  %2916 = vmatprep.subr.bf16.mxu1 %v5093_v41 }
 0xc8c   :  { %2876 = vmatpush1.bf16.msra.mxu0 %v5100_v42  ;;  %2917 = vmatpush1.bf16.msra.mxu1 %v5105_v44 }
 0xc8d   :  { %2980 = vmatprep.subr.bf16.mxu0 %v5519_v47  ;;  %3021 = vmatprep.subr.bf16.mxu1 %v5525_v50 }
 0xd42   :  { %v2776_v58 = vpop.f32.mrb[80].mxu0  ;;  %v2817_v35 = vpop.f32.mrb[80].mxu1 }
 0xd43   :  { %v2824_v40 = vadd.f32 %v2776_v58, %v2737_v51  ;;  %v2826_v41 = vadd.f32 %v2817_v35, %v2739_v52  ;;  %v2778_v42 = vpop.f32.mrb[81].mxu0  ;;  %v2819_v44 = vpop.f32.mrb[81].mxu1  ;;  %v5610_v51 = vld [vmem:[%s5698_s3 + $0x1e4] ss:$16 sps:$4 sm:$0xff]   ;;  %v5616_v52 = vld [vmem:[%s5698_s3 + $0x1ec] ss:$16 sps:$4 sm:$0xff]  }
 0xd44   :  { %v2825_v23 = vadd.f32 %v2778_v42, %v2738_v36  ;;  %v2827_v24 = vadd.f32 %v2819_v44, %v2740_v39  ;;  %v2780_v25 = vpop.f32.mrb[82].mxu0  ;;  %v2821_v28 = vpop.f32.mrb[82].mxu1  ;;  %v5622_v58 = vld [vmem:[%s5698_s3 + $0x1e0] ss:$16 sps:$4 sm:$0xff]   ;;  %v5628_v35 = vld [vmem:[%s5698_s3 + $0x1e8] ss:$16 sps:$4 sm:$0xff]  }
 0xd45   :  { %v3454_v29 = vmul.f32 -1.442695, %v2824_v40  ;;  %v2781_v31 = vpop.f32.mrb[83].mxu0  ;;  %v2822_v7 = vpop.f32.mrb[83].mxu1  ;;  %v3456_v27 = vmul.f32 -1.442695, %v2826_v41 }
 0xd46   :  { %v3455_v26 = vmul.f32 -1.442695, %v2825_v23  ;;  %v5749_v36 = vld [vmem:[#allocation7_spill] sm:$0xff]  ;;  %v5750_v40 = vld [vmem:[#allocation8_spill] sm:$0xff] }
 0xd47   :  { %3849 = vpow2.f32 %v3454_v29  ;;  %v2856_v39 = vunpack.c.l.bf16 %v5749_v36  ;;  %v2858_v41 = vunpack.c.l.bf16 %v5750_v40  ;;  %v2857_v23 = vunpack.c.h.bf16 %v5749_v36 }
 0xd48   :  { %3851 = vpow2.f32 %v3455_v26 }
 0xd49   :  { %3853 = vtanh.f32 %v2827_v24  ;;  %v2859_v24 = vunpack.c.h.bf16 %v5750_v40 }
 0xd4a   :  { %3855 = vpow2.f32 %v3456_v27 }
 0xd51   :  { %v3850_v10 = vpop.eup %3849 }
 0xd52   :  { %v2837_v14 = vadd.f32 1.0, %v3850_v10  ;;  %v3852_v34 = vpop.eup %3851 }
 0xd53   :  { %v2838_v38 = vadd.f32 1.0, %v3852_v34  ;;  %v3854_v15 = vpop.eup %3853 }
 0xd54   :  { %3857 = vrcp.f32 %v2837_v14  ;;  %v3856_v49 = vpop.eup %3855 }
 0xd55   :  { %3859 = vrcp.f32 %v2838_v38  ;;  %v2839_v59 = vadd.f32 1.0, %v3856_v49 }
 0xd57   :  { %3861 = vrcp.f32 %v2839_v59 }
 0xd5e   :  { %v3858_v61 = vpop.eup %3857 }
 0xd5f   :  { %v2848_v30 = vmul.f32 %v3858_v61, %v3854_v15  ;;  %v3860_v46 = vpop.eup %3859 }
 0xd60   :  { %v2847_v8 = vmul.f32 %v3860_v46, %v5388_v53  ;;  %v5580_v53 = vld [vmem:[%s5698_s3 + $0x1a8] ss:$16 sps:$4 sm:$0xff]  }
 0xd61   :  { %v3862_v62 = vpop.eup %3861 }
 0xd62   :  { %v5533_v3 = vadd.f32 %v2848_v30, %v2847_v8 }
 0xd64   :  { %3863 = vtanh.f32 %v5533_v3 }
 0xd6e   :  { %v3864_v63 = vpop.eup %3863 }
 0xd6f   :  { %v2851_v20 = vmul.f32 %v3864_v63, %v3862_v62 }
 0xd71   :  { %3457 = vst [vmem:[%s5706_s7 + $0x20] sm:$0xff] %v2851_v20  ;;  %v2860_v45 = vpack.c.bf16 %v2851_v20, %v2851_v20 }
 0xd73   :  { %2894 = vmatmul.mubr.bf16.vlgmr.msra.gmra.mrb[84].mxu0 %v2860_v45  ;;  %2935 = vmatmul.mubr.bf16.vlgmr.msra.gmra.mrb[84].mxu1 %v2860_v45 }
 0xd74   :  { %2981 = vmatpush1.bf16.msra.mxu0 %v5397_v33  ;;  %3022 = vmatpush1.bf16.msra.mxu1 %v5403_v43 }
 0xd75   :  { %2982 = vmatprep.subr.bf16.mxu0 %v5409_v2  ;;  %3023 = vmatprep.subr.bf16.mxu1 %v5415_v6 }
 0xd76   :  { %3012 = vmatprep.mubr.bf16.mxu0 %v5732_v11  ;;  %3053 = vmatprep.mubr.bf16.mxu1 %v5732_v11 }
 0xd78   :  { %2983 = vmatpush1.bf16.msra.mxu0 %v5423_v54  ;;  %3024 = vmatpush1.bf16.msra.mxu1 %v5429_v55 }
 0xd79   :  { %2984 = vmatprep.subr.bf16.mxu0 %v5435_v21  ;;  %3025 = vmatprep.subr.bf16.mxu1 %v5441_v32 }
 0xd7c   :  { %2985 = vmatpush1.bf16.msra.mxu0 %v5447_v9  ;;  %3026 = vmatpush1.bf16.msra.mxu1 %v5453_v57 }
 0xd7d   :  { %2986 = vmatprep.subr.bf16.mxu0 %v5459_v17  ;;  %3027 = vmatprep.subr.bf16.mxu1 %v5465_v18 }
 0xd80   :  { %2987 = vmatpush1.bf16.msra.mxu0 %v5471_v19  ;;  %3028 = vmatpush1.bf16.msra.mxu1 %v5477_v37 }
 0xd81   :  { %2988 = vmatprep.subr.bf16.mxu0 %v5483_v12  ;;  %3029 = vmatprep.subr.bf16.mxu1 %v5489_v1 }
 0xd84   :  { %2989 = vmatpush1.bf16.msra.mxu0 %v5495_v0  ;;  %3030 = vmatpush1.bf16.msra.mxu1 %v5501_v22 }
 0xd85   :  { %2990 = vmatprep.subr.bf16.mxu0 %v5562_v56  ;;  %3031 = vmatprep.subr.bf16.mxu1 %v5568_v60 }
 0xd88   :  { %2991 = vmatpush1.bf16.msra.mxu0 %v5574_v4  ;;  %3032 = vmatpush1.bf16.msra.mxu1 %v5580_v53 }
 0xd89   :  { %2992 = vmatprep.subr.bf16.mxu0 %v5586_v48  ;;  %3033 = vmatprep.subr.bf16.mxu1 %v5592_v16 }
 0xd8c   :  { %2993 = vmatpush1.bf16.msra.mxu0 %v5598_v5  ;;  %3034 = vmatpush1.bf16.msra.mxu1 %v5604_v13 }
 0xd8d   :  { %2994 = vmatprep.subr.bf16.mxu0 %v5610_v51  ;;  %3035 = vmatprep.subr.bf16.mxu1 %v5616_v52 }
 0xd90   :  { %2995 = vmatpush1.bf16.msra.mxu0 %v5622_v58  ;;  %3036 = vmatpush1.bf16.msra.mxu1 %v5628_v35 }
 0xd91   :  { %3099 = vmatprep.subr.bf16.mxu0 %v5519_v47  ;;  %3140 = vmatprep.subr.bf16.mxu1 %v5525_v50 }
 0xe46   :  { %v2895_v42 = vpop.f32.mrb[84].mxu0  ;;  %v2936_v44 = vpop.f32.mrb[84].mxu1 }
 0xe47   :  { %v2943_v25 = vadd.f32 %v2895_v42, %v2856_v39  ;;  %v2945_v28 = vadd.f32 %v2936_v44, %v2858_v41  ;;  %v2897_v29 = vpop.f32.mrb[85].mxu0  ;;  %v2938_v31 = vpop.f32.mrb[85].mxu1 }
 0xe48   :  { %v2944_v7 = vadd.f32 %v2897_v29, %v2857_v23  ;;  %v2946_v26 = vadd.f32 %v2938_v31, %v2859_v24  ;;  %v2899_v27 = vpop.f32.mrb[86].mxu0  ;;  %v2940_v47 = vpop.f32.mrb[86].mxu1  ;;  %v5753_v29 = vld [vmem:[#allocation11_spill] sm:$0xff] }
 0xe49   :  { %v3458_v10 = vmul.f32 -1.442695, %v2943_v25  ;;  %v2900_v50 = vpop.f32.mrb[87].mxu0  ;;  %v2941_v14 = vpop.f32.mrb[87].mxu1  ;;  %v3460_v38 = vmul.f32 -1.442695, %v2945_v28  ;;  %v3094_v31 = vunpack.c.l.bf16 %v5753_v29 }
 0xe4a   :  { %v3459_v34 = vmul.f32 -1.442695, %v2944_v7  ;;  %v5754_v7 = vld [vmem:[#allocation6_spill] sm:$0xff] }
 0xe4b   :  { %3865 = vpow2.f32 %v3458_v10  ;;  %v3095_v10 = vunpack.c.h.bf16 %v5753_v29  ;;  %v3097_v50 = vunpack.c.h.bf16 %v5754_v7 }
 0xe4c   :  { %3867 = vpow2.f32 %v3459_v34 }
 0xe4d   :  { %3869 = vtanh.f32 %v2946_v26  ;;  %v3096_v26 = vunpack.c.l.bf16 %v5754_v7 }
 0xe4e   :  { %3871 = vpow2.f32 %v3460_v38 }
 0xe55   :  { %v3866_v15 = vpop.eup %3865 }
 0xe56   :  { %v2956_v49 = vadd.f32 1.0, %v3866_v15  ;;  %v3868_v61 = vpop.eup %3867 }
 0xe57   :  { %v2957_v30 = vadd.f32 1.0, %v3868_v61  ;;  %v3870_v46 = vpop.eup %3869 }
 0xe58   :  { %3873 = vrcp.f32 %v2956_v49  ;;  %v3872_v59 = vpop.eup %3871 }
 0xe59   :  { %3875 = vrcp.f32 %v2957_v30  ;;  %v2958_v20 = vadd.f32 1.0, %v3872_v59 }
 0xe5b   :  { %3877 = vrcp.f32 %v2958_v20 }
 0xe62   :  { %v3874_v8 = vpop.eup %3873 }
 0xe63   :  { %v2967_v62 = vmul.f32 %v3874_v8, %v3870_v46  ;;  %v3876_v63 = vpop.eup %3875 }
 0xe64   :  { %v2966_v45 = vmul.f32 %v3876_v63, %v5533_v3 }
 0xe65   :  { %v3878_v39 = vpop.eup %3877 }
 0xe66   :  { %v5638_v36 = vadd.f32 %v2967_v62, %v2966_v45 }
 0xe68   :  { %3879 = vtanh.f32 %v5638_v36 }
 0xe72   :  { %v3880_v40 = vpop.eup %3879 }
 0xe73   :  { %v2970_v41 = vmul.f32 %v3880_v40, %v3878_v39 }
 0xe75   :  { %3461 = vst [vmem:[%s5706_s7 + $0x28] sm:$0xff] %v2970_v41  ;;  %v2979_v42 = vpack.c.bf16 %v2970_v41, %v2970_v41 }
 0xe77   :  { %3013 = vmatmul.mubr.bf16.vlgmr.msra.gmra.mrb[88].mxu0 %v2979_v42  ;;  %3054 = vmatmul.mubr.bf16.vlgmr.msra.gmra.mrb[88].mxu1 %v2979_v42 }
 0xe78   :  { %3100 = vmatpush1.bf16.msra.mxu0 %v5397_v33  ;;  %3141 = vmatpush1.bf16.msra.mxu1 %v5403_v43  ;;  %v5752_v43 = vld [vmem:[#allocation10_spill] sm:$0xff] }
 0xe79   :  { %3101 = vmatprep.subr.bf16.mxu0 %v5409_v2  ;;  %3142 = vmatprep.subr.bf16.mxu1 %v5415_v6  ;;  %v2977_v2 = vunpack.c.l.bf16 %v5752_v43 }
 0xe7a   :  { %3131 = vmatprep.mubr.bf16.mxu0 %v5732_v11  ;;  %3172 = vmatprep.mubr.bf16.mxu1 %v5732_v11  ;;  %v5751_v11 = vld [vmem:[#allocation9_spill] sm:$0xff] }
 0xe7b   :  { %v2975_v33 = vunpack.c.l.bf16 %v5751_v11 }
 0xe7c   :  { %3102 = vmatpush1.bf16.msra.mxu0 %v5423_v54  ;;  %3143 = vmatpush1.bf16.msra.mxu1 %v5429_v55  ;;  %v2976_v55 = vunpack.c.h.bf16 %v5751_v11 }
 0xe7d   :  { %3103 = vmatprep.subr.bf16.mxu0 %v5435_v21  ;;  %3144 = vmatprep.subr.bf16.mxu1 %v5441_v32  ;;  %v2978_v21 = vunpack.c.h.bf16 %v5752_v43 }
 0xe80   :  { %3104 = vmatpush1.bf16.msra.mxu0 %v5447_v9  ;;  %3145 = vmatpush1.bf16.msra.mxu1 %v5453_v57 }
 0xe81   :  { %3105 = vmatprep.subr.bf16.mxu0 %v5459_v17  ;;  %3146 = vmatprep.subr.bf16.mxu1 %v5465_v18 }
 0xe84   :  { %3106 = vmatpush1.bf16.msra.mxu0 %v5471_v19  ;;  %3147 = vmatpush1.bf16.msra.mxu1 %v5477_v37 }
 0xe85   :  { %3107 = vmatprep.subr.bf16.mxu0 %v5483_v12  ;;  %3148 = vmatprep.subr.bf16.mxu1 %v5489_v1 }
 0xe88   :  { %3108 = vmatpush1.bf16.msra.mxu0 %v5495_v0  ;;  %3149 = vmatpush1.bf16.msra.mxu1 %v5501_v22 }
 0xe89   :  { %3109 = vmatprep.subr.bf16.mxu0 %v5562_v56  ;;  %3150 = vmatprep.subr.bf16.mxu1 %v5568_v60 }
 0xe8c   :  { %3110 = vmatpush1.bf16.msra.mxu0 %v5574_v4  ;;  %3151 = vmatpush1.bf16.msra.mxu1 %v5580_v53 }
 0xe8d   :  { %3111 = vmatprep.subr.bf16.mxu0 %v5586_v48  ;;  %3152 = vmatprep.subr.bf16.mxu1 %v5592_v16 }
 0xe90   :  { %3112 = vmatpush1.bf16.msra.mxu0 %v5598_v5  ;;  %3153 = vmatpush1.bf16.msra.mxu1 %v5604_v13 }
 0xe91   :  { %3113 = vmatprep.subr.bf16.mxu0 %v5610_v51  ;;  %3154 = vmatprep.subr.bf16.mxu1 %v5616_v52 }
 0xe94   :  { %3114 = vmatpush1.bf16.msra.mxu0 %v5622_v58  ;;  %3155 = vmatpush1.bf16.msra.mxu1 %v5628_v35 }
 0xf4a   :  { %v3014_v6 = vpop.f32.mrb[88].mxu0  ;;  %v3055_v54 = vpop.f32.mrb[88].mxu1 }
 0xf4b   :  { %v3062_v32 = vadd.f32 %v3014_v6, %v2975_v33  ;;  %v3064_v9 = vadd.f32 %v3055_v54, %v2977_v2  ;;  %v3016_v57 = vpop.f32.mrb[89].mxu0  ;;  %v3057_v17 = vpop.f32.mrb[89].mxu1 }
 0xf4c   :  { %v3063_v18 = vadd.f32 %v3016_v57, %v2976_v55  ;;  %v3065_v19 = vadd.f32 %v3057_v17, %v2978_v21  ;;  %v3018_v37 = vpop.f32.mrb[90].mxu0  ;;  %v3059_v12 = vpop.f32.mrb[90].mxu1 }
 0xf4d   :  { %v3462_v1 = vmul.f32 -1.442695, %v3062_v32  ;;  %v3019_v0 = vpop.f32.mrb[91].mxu0  ;;  %v3060_v22 = vpop.f32.mrb[91].mxu1  ;;  %v3464_v56 = vmul.f32 -1.442695, %v3064_v9 }
 0xf4e   :  { %v3463_v3 = vmul.f32 -1.442695, %v3063_v18 }
 0xf4f   :  { %3881 = vpow2.f32 %v3462_v1 }
 0xf50   :  { %3883 = vpow2.f32 %v3463_v3 }
 0xf51   :  { %3885 = vtanh.f32 %v3065_v19 }
 0xf52   :  { %3887 = vpow2.f32 %v3464_v56 }
 0xf59   :  { %v3882_v60 = vpop.eup %3881 }
 0xf5a   :  { %v3075_v4 = vadd.f32 1.0, %v3882_v60  ;;  %v3884_v53 = vpop.eup %3883 }
 0xf5b   :  { %v3076_v48 = vadd.f32 1.0, %v3884_v53  ;;  %v3886_v16 = vpop.eup %3885 }
 0xf5c   :  { %3889 = vrcp.f32 %v3075_v4  ;;  %v3888_v5 = vpop.eup %3887 }
 0xf5d   :  { %3891 = vrcp.f32 %v3076_v48  ;;  %v3077_v58 = vadd.f32 1.0, %v3888_v5 }
 0xf5f   :  { %3893 = vrcp.f32 %v3077_v58 }
 0xf66   :  { %v3890_v13 = vpop.eup %3889 }
 0xf67   :  { %v3086_v51 = vmul.f32 %v3890_v13, %v3886_v16  ;;  %v3892_v52 = vpop.eup %3891 }
 0xf68   :  { %v3085_v35 = vmul.f32 %v3892_v52, %v5638_v36 }
 0xf69   :  { %v3894_v23 = vpop.eup %3893 }
 0xf6a   :  { %v3087_v44 = vadd.f32 %v3086_v51, %v3085_v35 }
 0xf6c   :  { %3895 = vtanh.f32 %v3087_v44 }
 0xf76   :  { %v3896_v24 = vpop.eup %3895 }
 0xf77   :  { %v3089_v25 = vmul.f32 %v3896_v24, %v3894_v23 }
 0xf79   :  { %3465 = vst [vmem:[%s5706_s7 + $0x30] sm:$0xff] %v3089_v25  ;;  %v3098_v28 = vpack.c.bf16 %v3089_v25, %v3089_v25 }
 0xf7b   :  { %3132 = vmatmul.mubr.bf16.vlgmr.msra.gmra.mrb[92].mxu0 %v3098_v28  ;;  %3173 = vmatmul.mubr.bf16.vlgmr.msra.gmra.mrb[92].mxu1 %v3098_v28 }
0x104e   :  { %v3133_v27 = vpop.f32.mrb[92].mxu0  ;;  %v3174_v47 = vpop.f32.mrb[92].mxu1 }
0x104f   :  { %v3181_v14 = vadd.f32 %v3133_v27, %v3094_v31  ;;  %v3183_v34 = vadd.f32 %v3174_v47, %v3096_v26  ;;  %v3135_v38 = vpop.f32.mrb[93].mxu0  ;;  %v3176_v15 = vpop.f32.mrb[93].mxu1 }
0x1050   :  { %v3182_v49 = vadd.f32 %v3135_v38, %v3095_v10  ;;  %v3184_v61 = vadd.f32 %v3176_v15, %v3097_v50  ;;  %v3137_v30 = vpop.f32.mrb[94].mxu0  ;;  %v3178_v46 = vpop.f32.mrb[94].mxu1 }
0x1051   :  { %v3466_v59 = vmul.f32 -1.442695, %v3181_v14  ;;  %v3138_v8 = vpop.f32.mrb[95].mxu0  ;;  %v3179_v62 = vpop.f32.mrb[95].mxu1  ;;  %v3468_v20 = vmul.f32 -1.442695, %v3183_v34 }
0x1052   :  { %v3467_v63 = vmul.f32 -1.442695, %v3182_v49 }
0x1053   :  { %3897 = vpow2.f32 %v3466_v59 }
0x1054   :  { %3899 = vpow2.f32 %v3467_v63 }
0x1055   :  { %3901 = vtanh.f32 %v3184_v61 }
0x1056   :  { %3903 = vpow2.f32 %v3468_v20 }
0x105d   :  { %v3898_v45 = vpop.eup %3897 }
0x105e   :  { %v3194_v36 = vadd.f32 1.0, %v3898_v45  ;;  %v3900_v39 = vpop.eup %3899 }
0x105f   :  { %v3195_v40 = vadd.f32 1.0, %v3900_v39  ;;  %v3902_v41 = vpop.eup %3901 }
0x1060   :  { %3905 = vrcp.f32 %v3194_v36  ;;  %v3904_v42 = vpop.eup %3903 }
0x1061   :  { %3907 = vrcp.f32 %v3195_v40  ;;  %v3196_v2 = vadd.f32 1.0, %v3904_v42 }
0x1063   :  { %3909 = vrcp.f32 %v3196_v2 }
0x106a   :  { %v3906_v11 = vpop.eup %3905 }
0x106b   :  { %v3205_v33 = vmul.f32 %v3906_v11, %v3902_v41  ;;  %v3908_v43 = vpop.eup %3907 }
0x106c   :  { %v3204_v6 = vmul.f32 %v3908_v43, %v3087_v44 }
0x106d   :  { %v3910_v55 = vpop.eup %3909 }
0x106e   :  { %v3206_v54 = vadd.f32 %v3205_v33, %v3204_v6 }
0x1070   :  { %3911 = vtanh.f32 %v3206_v54  ;;  %3223 = vst [vmem:[%s5704_s9 + $0x8] sm:$0xff] %v3206_v54 }
0x107a   :  { %v3912_v21 = vpop.eup %3911 }
0x107b   :  { %v3208_v32 = vmul.f32 %v3912_v21, %v3910_v55 }
0x107d   :  { %3469 = vst [vmem:[%s5706_s7 + $0x38] sm:$0xff] %v3208_v32  ;;  %3219 = vst [vmem:[%s5705_s8 + $0x8] sm:$0xff] %v3208_v32 }

</bundles_post_ra>
